<compile_context>
chip_gen: v6e
topology: v6e:2x2x1
jax: 0.10.0
libtpu: 0.0.40
codegen_flags: <defaults>
</compile_context>

<pallas_src>
import jax
import jax.numpy as jnp
from jax.experimental import pallas as pl
from jax.experimental.pallas import tpu as pltpu

NEG_SLOPE = 0.01  # nn.LeakyReLU default negative_slope


def _round_up(v, m):
    return (v + m - 1) // m * m


def _pick_row_tile(Ho, Wo):
    """Largest divisor of Ho with roughly <= 512 flattened matmul rows per tile."""
    target = max(1, 512 // max(Wo, 1))
    if target >= Ho:
        return Ho
    for tr in range(target, 0, -1):
        if Ho % tr == 0:
            return tr
    return Ho


def basic_block_forward(x_nhwc, params, *, stride=1, row_tile=None):
    """Fully fused BasicBlock forward in a single Pallas kernel (grid over batch x row tiles)."""
    N, H, W, Cin = x_nhwc.shape
    w1, s1, b1, w2, s2, b2, proj = params
    Cout = w1.shape[-1]
    if H % stride != 0 or W % stride != 0:
        raise ValueError(f"spatial dims ({H},{W}) must be divisible by stride={stride}")
    Ho, Wo = H // stride, W // stride

    has_proj = (stride != 1) or (Cin != Cout)
    if has_proj and proj is None:
        raise ValueError("projection shortcut parameters required for this configuration")

    f32, bf16 = jnp.float32, jnp.bfloat16
    Cp = _round_up(Cout, 128)    # lane-dense padded output-channel count
    Cxp = _round_up(Cin, 128)    # lane-dense padded input-channel count (identity => Cxp == Cp)

    TR = _pick_row_tile(Ho, Wo) if row_tile is None else int(row_tile)
    if Ho % TR != 0:
        raise ValueError(f"row_tile={TR} must divide output height {Ho}")
    T = Ho // TR                          # number of output-row tiles
    XROWS = stride * (TR + 1) + 3         # rows of the virtual padded input needed per tile
    M1 = (TR + 2) * Wo                    # conv1 matmul rows (includes +/-1 halo rows)
    M2 = TR * Wo                          # conv2 / output matmul rows

    # ---- host-side parameter prep: fold BN scale into weights, pad channels, cast bf16 ----
    def fold_pad_conv(w, scale, k_to, n_to):
        w = w.astype(f32) * scale.astype(f32)            # (3,3,K,O) * (O,)
        kh, kw, K, O = w.shape
        w = jnp.pad(w, ((0, 0), (0, 0), (0, k_to - K), (0, n_to - O)))
        # tap-major K layout: rows [t*k_to, (t+1)*k_to) hold tap t -> contiguous pair slices.
        return w.reshape(kh * kw * k_to, n_to).astype(bf16)

    def pad_bias(v):
        return jnp.pad(v.astype(f32), (0, Cp - Cout)).reshape(1, Cp)

    w1k = fold_pad_conv(w1, s1, Cxp, Cp)                  # (9*Cxp, Cp) bf16
    w2k = fold_pad_conv(w2, s2, Cp, Cp)                   # (9*Cp,  Cp) bf16
    b1k, b2k = pad_bias(b1), pad_bias(b2)                 # (1, Cp) f32

    # Channel-pad x once host-side so the x block is lane-dense, every conv-K >= 128, and the
    # identity residual matches the padded lane count with no in-kernel padding.
    xk = x_nhwc if Cxp == Cin else jnp.pad(x_nhwc, ((0, 0), (0, 0), (0, 0), (0, Cxp - Cin)))

    inputs = [xk, w1k, b1k, w2k, b2k]
    if has_proj:
        wsc, ssc, bsc = proj
        wsck = wsc.reshape(Cin, Cout).astype(f32) * ssc.astype(f32)
        wsck = jnp.pad(wsck, ((0, Cxp - Cin), (0, Cp - Cout))).astype(bf16)   # (Cxp, Cp)
        inputs += [wsck, pad_bias(bsc)]

    def kernel(*refs):
        if has_proj:
            (x_ref, w1_ref, b1_ref, w2_ref, b2_ref, wsc_ref, bsc_ref,
             out_ref, xpad_ref, hpad_ref) = refs
        else:
            (x_ref, w1_ref, b1_ref, w2_ref, b2_ref,
             out_ref, xpad_ref, hpad_ref) = refs

        t = pl.program_id(1)
        R0 = t * TR                        # first output row of this tile
        XBASE = stride * (R0 - 1)          # virtual-padded-input row held at xpad row 0

        # ---- stage input tile (+ halo) as bf16 in VMEM; zero width border ----------------
        xpad_ref[:, 0:1, :] = jnp.zeros((XROWS, 1, Cxp), bf16)
        xpad_ref[:, W + 1:W + 2, :] = jnp.zeros((XROWS, 1, Cxp), bf16)
        # bulk rows: always fully inside the image -> one contiguous dynamic-start copy
        xpad_ref[stride + 1:stride + 1 + stride * TR, 1:W + 1, :] = (
            x_ref[0, pl.ds(stride * R0, stride * TR), :, :].astype(bf16))
        # edge/halo rows: clamp the source row + scale by 0/1 (handles image top/bottom pad,
        # so scratch rows are always either real data or exact zeros -> megacore safe).
        for k in list(range(stride + 1)) + [XROWS - 2, XROWS - 1]:
            m = XBASE + k                                      # virtual padded-input row index
            src = jnp.clip(m - 1, 0, H - 1)
            inb = jnp.logical_and(m >= 1, m <= H).astype(bf16)
            row = x_ref[0, pl.ds(src, 1), :, :].astype(bf16)
            xpad_ref[k:k + 1, 1:W + 1, :] = row * inb

        # ---- shared 3x3 conv helper: pairs of taps concatenated along K (K = 2*C = 256) ---
        def conv_taps(read_tap, w_ref, cin):
            acc = None
            for g0 in range(0, 9, 2):
                taps = list(range(g0, min(g0 + 2, 9)))
                pieces = [read_tap(tt // 3, tt % 3) for tt in taps]      # (M, cin) bf16 each
                patch = pieces[0] if len(pieces) == 1 else jnp.concatenate(pieces, axis=1)
                wblk = w_ref[taps[0] * cin:(taps[-1] + 1) * cin, :]       # contiguous rows
                part = jnp.dot(patch, wblk, preferred_element_type=f32)
                acc = part if acc is None else acc + part
            return acc

        def x_tap(ky, kx):
            if stride == 1:
                v = xpad_ref[ky:ky + TR + 2, kx:kx + Wo, :]
            else:
                # TODO(synk): strided ref reads; move decimation to staging (2x2 parity planes).
                # This path is not exercised by the demo in __main__.
                v = xpad_ref[pl.ds(ky, TR + 2, stride), pl.ds(kx, Wo, stride), :]
            return v.reshape(M1, Cxp)

        # ---- conv1: 3x3, stride, pad=1  ->  + b1  ->  LeakyReLU ---------------------------
        h = conv_taps(x_tap, w1_ref, Cxp) + b1_ref[...]
        h = jnp.where(h > 0, h, NEG_SLOPE * h)

        # ---- stage conv1 output (+1 halo) as bf16; zero borders ---------------------------
        hpad_ref[:, 1:Wo + 1, :] = h.reshape(TR + 2, Wo, Cp).astype(bf16)
        hpad_ref[:, 0:1, :] = jnp.zeros((TR + 2, 1, Cp), bf16)
        hpad_ref[:, Wo + 1:Wo + 2, :] = jnp.zeros((TR + 2, 1, Cp), bf16)

        @pl.when(R0 == 0)
        def _():   # top image edge: conv2 must see zero padding, not conv1 of padding rows
            hpad_ref[0:1, :, :] = jnp.zeros((1, Wo + 2, Cp), bf16)

        @pl.when(R0 + TR == Ho)
        def _():   # bottom image edge
            hpad_ref[TR + 1:TR + 2, :, :] = jnp.zeros((1, Wo + 2, Cp), bf16)

        # ---- conv2: 3x3, stride=1, pad=1  ->  + b2 ----------------------------------------
        def h_tap(ky, kx):
            return hpad_ref[ky:ky + TR, kx:kx + Wo, :].reshape(M2, Cp)

        res = conv_taps(h_tap, w2_ref, Cp) + b2_ref[...]

        # ---- shortcut ----------------------------------------------------------------------
        if has_proj:
            if stride == 1:
                xs = x_ref[0, pl.ds(R0, TR), :, :]
            else:
                # TODO(synk): strided residual gather; not exercised by the demo below.
                xs = x_ref[0, pl.ds(stride * R0, TR, stride), pl.ds(0, Wo, stride), :]
            xs = xs.astype(bf16).reshape(M2, Cxp)
            sc = jnp.dot(xs, wsc_ref[...], preferred_element_type=f32) + bsc_ref[...]
        else:
            # Identity shortcut: exact f32 residual straight from the input block (pad lanes 0).
            sc = x_ref[0, pl.ds(R0, TR), :, :].astype(f32).reshape(M2, Cp)

        out = jnp.maximum(res + sc, 0.0)                      # final ReLU
        out_ref[0] = out.reshape(TR, Wo, Cp).astype(out_ref.dtype)

    in_specs = [
        pl.BlockSpec((1, H, W, Cxp), lambda n, t: (n, 0, 0, 0)),
        # Constant index_maps: weights/biases are DMA'd once and reused across the grid.
        pl.BlockSpec((9 * Cxp, Cp), lambda n, t: (0, 0)),
        pl.BlockSpec((1, Cp), lambda n, t: (0, 0)),
        pl.BlockSpec((9 * Cp, Cp), lambda n, t: (0, 0)),
        pl.BlockSpec((1, Cp), lambda n, t: (0, 0)),
    ]
    if has_proj:
        in_specs += [pl.BlockSpec((Cxp, Cp), lambda n, t: (0, 0)),
                     pl.BlockSpec((1, Cp), lambda n, t: (0, 0))]

    scratch_shapes = [
        pltpu.VMEM((XROWS, W + 2, Cxp), bf16),        # zero-padded input tile (bf16)
        pltpu.VMEM((TR + 2, Wo + 2, Cp), bf16),       # zero-padded conv1 output tile (bf16)
    ]

    # VMEM budget derived from the actual block / scratch sizes (keep <= ~48-56 MiB on v7x by
    # choosing a smaller row_tile; v5e/v6e have 128 MiB physical).
    bytes_in = (H * W * Cxp * xk.dtype.itemsize
                + (9 * Cxp * Cp + 9 * Cp * Cp) * 2 + 2 * Cp * 4)
    if has_proj:
        bytes_in += Cxp * Cp * 2 + Cp * 4
    bytes_out = TR * Wo * Cp * jnp.dtype(x_nhwc.dtype).itemsize
    bytes_scr = (XROWS * (W + 2) * Cxp + (TR + 2) * (Wo + 2) * Cp) * 2
    vmem_limit = int(min(max(2 * (bytes_in + bytes_out) + bytes_scr + (4 << 20), 16 << 20),
                         96 << 20))

    grid_spec = pltpu.PrefetchScalarGridSpec(
        num_scalar_prefetch=0,
        grid=(N, T),
        in_specs=in_specs,
        out_specs=pl.BlockSpec((1, TR, Wo, Cp), lambda n, t: (n, t, 0, 0)),
        scratch_shapes=scratch_shapes,
    )

    out_p = pl.pallas_call(
        kernel,
        out_shape=jax.ShapeDtypeStruct((N, Ho, Wo, Cp), x_nhwc.dtype),
        grid_spec=grid_spec,
        compiler_params=pltpu.CompilerParams(
            dimension_semantics=("parallel", "parallel"),
            vmem_limit_bytes=vmem_limit,
        ),
    )(*inputs)

    return out_p if Cp == Cout else out_p[..., :Cout]


def init_params(key, in_channels, out_channels, stride, dtype=jnp.float32):
    """Deterministic synthetic parameters (BN folded to inference-mode scale/bias)."""
    ks = jax.random.split(key, 12)
    eps = 1e-5

    def bn_fold(kg, kb, km, kv, c):
        gamma = 1.0 + 0.1 * jax.random.normal(kg, (c,), dtype)
        beta = 0.1 * jax.random.normal(kb, (c,), dtype)
        mean = 0.1 * jax.random.normal(km, (c,), dtype)
        var = jnp.abs(jax.random.normal(kv, (c,), dtype)) + 0.5
        scale = gamma / jnp.sqrt(var + eps)
        bias = beta - mean * scale
        return scale, bias

    w1 = 0.1 * jax.random.normal(ks[0], (3, 3, in_channels, out_channels), dtype)
    s1, b1 = bn_fold(ks[1], ks[2], ks[3], ks[4], out_channels)
    w2 = 0.1 * jax.random.normal(ks[5], (3, 3, out_channels, out_channels), dtype)
    s2, b2 = bn_fold(ks[6], ks[7], ks[8], ks[9], out_channels)
    proj = None
    if stride != 1 or in_channels != out_channels:
        wsc = 0.1 * jax.random.normal(ks[10], (1, 1, in_channels, out_channels), dtype)
        ssc, bsc = bn_fold(*jax.random.split(ks[11], 4), out_channels)
        proj = (wsc, ssc, bsc)
    return (w1, s1, b1, w2, s2, b2, proj)


def ref_forward(x, params, stride):
    """Pure-JAX (XLA conv) reference mirroring the kernel's numerics:
    BN folded into weights, bf16 MXU inputs, f32 accumulation, exact f32 identity residual."""
    w1, s1, b1, w2, s2, b2, proj = params
    dn = ("NHWC", "HWIO", "NHWC")
    f32, bf16 = jnp.float32, jnp.bfloat16

    w1f = (w1.astype(f32) * s1.astype(f32)).astype(bf16)
    w2f = (w2.astype(f32) * s2.astype(f32)).astype(bf16)

    h = jax.lax.conv_general_dilated(x.astype(bf16), w1f, (stride, stride), ((1, 1), (1, 1)),
                                     dimension_numbers=dn, preferred_element_type=f32)
    h = h + b1.astype(f32)
    h = jnp.where(h > 0, h, NEG_SLOPE * h)

    r = jax.lax.conv_general_dilated(h.astype(bf16), w2f, (1, 1), ((1, 1), (1, 1)),
                                     dimension_numbers=dn, preferred_element_type=f32)
    r = r + b2.astype(f32)

    if proj is not None:
        wsc, ssc, bsc = proj
        wscf = (wsc.astype(f32) * ssc.astype(f32)).astype(bf16)
        sc = jax.lax.conv_general_dilated(x.astype(bf16), wscf, (stride, stride),
                                          ((0, 0), (0, 0)), dimension_numbers=dn,
                                          preferred_element_type=f32)
        sc = sc + bsc.astype(f32)
    else:
        sc = x.astype(f32)
    return jnp.maximum(r + sc, 0.0).astype(x.dtype)


if __name__ == "__main__":
    key = jax.random.PRNGKey(0)
    configs = [
        # Module-spec shapes (x = (2, 4, 16, 16) NCHW, stored NHWC): projection shortcut
        # (Cin != Cout), stride 1, two output-row tiles to exercise the spatial grid axis.
        dict(N=2, Cin=4, Cout=8, H=16, W=16, stride=1, row_tile=8),
        # Identity shortcut (Cin == Cout), single row tile.
        dict(N=2, Cin=8, Cout=8, H=16, W=16, stride=1, row_tile=None),
    ]
    for i, cfg in enumerate(configs):
        kx, kp = jax.random.split(jax.random.fold_in(key, i))
        x = jax.random.normal(kx, (cfg["N"], cfg["H"], cfg["W"], cfg["Cin"]), jnp.float32)
        params = init_params(kp, cfg["Cin"], cfg["Cout"], cfg["stride"])

        out = basic_block_forward(x, params, stride=cfg["stride"], row_tile=cfg["row_tile"])
        out = jax.block_until_ready(out)
        assert out.shape == (cfg["N"], cfg["H"] // cfg["stride"],
                             cfg["W"] // cfg["stride"], cfg["Cout"]), out.shape

        ref = ref_forward(x, params, cfg["stride"])
        max_err = float(jnp.max(jnp.abs(out - ref)))
        # Tolerance covers f32 accumulation-order differences (tap pairing vs XLA conv) and the
        # resulting 1-ulp bf16 re-rounding of the intermediate activation before conv2.
        assert jnp.allclose(out, ref, atol=3e-3, rtol=3e-3), (i, max_err)
    print("KERNEL_OK")
</pallas_src>

<mosaic_0001>
module attributes {stable_mosaic.version = 11 : i64} {
  func.func @kernel(%arg0: i32, %arg1: i32, %arg2: memref<1x16x16x128xf32, #tpu.memory_space<vmem>>, %arg3: memref<1152x128xbf16, #tpu.memory_space<vmem>>, %arg4: memref<1x128xf32, #tpu.memory_space<vmem>>, %arg5: memref<1152x128xbf16, #tpu.memory_space<vmem>>, %arg6: memref<1x128xf32, #tpu.memory_space<vmem>>, %arg7: memref<128x128xbf16, #tpu.memory_space<vmem>>, %arg8: memref<1x128xf32, #tpu.memory_space<vmem>>, %arg9: memref<1x8x16x128xf32, #tpu.memory_space<vmem>>, %arg10: memref<12x18x128xbf16, #tpu.memory_space<vmem>>, %arg11: memref<10x18x128xbf16, #tpu.memory_space<vmem>>) attributes {dimension_semantics = [#tpu.dimension_semantics<parallel>, #tpu.dimension_semantics<parallel>], iteration_bounds = array<i64: 2, 2>, scalar_prefetch = 0 : i64, scratch_operands = 2 : i64, tpu.core_type = #tpu.core_type<tc>, window_params = [{transform_indices = @transform_0, window_bounds = array<i64: 1, 16, 16, 128>}, {pipeline_mode = #tpu.pipeline_mode<synchronous>, transform_indices = @transform_1, window_bounds = array<i64: 1152, 128>}, {pipeline_mode = #tpu.pipeline_mode<synchronous>, transform_indices = @transform_2, window_bounds = array<i64: 1, 128>}, {pipeline_mode = #tpu.pipeline_mode<synchronous>, transform_indices = @transform_3, window_bounds = array<i64: 1152, 128>}, {pipeline_mode = #tpu.pipeline_mode<synchronous>, transform_indices = @transform_4, window_bounds = array<i64: 1, 128>}, {pipeline_mode = #tpu.pipeline_mode<synchronous>, transform_indices = @transform_5, window_bounds = array<i64: 128, 128>}, {pipeline_mode = #tpu.pipeline_mode<synchronous>, transform_indices = @transform_6, window_bounds = array<i64: 1, 128>}, {transform_indices = @transform_7, window_bounds = array<i64: 1, 8, 16, 128>}]} {
    %c8_i32 = arith.constant 8 : i32
    %0 = arith.muli %arg1, %c8_i32 : i32
    %c1_i32 = arith.constant 1 : i32
    %1 = arith.subi %0, %c1_i32 : i32
    %c1_i32_0 = arith.constant 1 : i32
    %2 = arith.muli %c1_i32_0, %1 : i32
    %cst = arith.constant 0.000000e+00 : bf16
    %3 = vector.broadcast %cst : bf16 to vector<12x1x128xbf16>
    %c0 = arith.constant 0 : index
    %c0_1 = arith.constant 0 : index
    %c0_2 = arith.constant 0 : index
    %4 = vector.load %arg10[%c0, %c0_1, %c0_2] : memref<12x18x128xbf16, #tpu.memory_space<vmem>>, vector<12x1x128xbf16>
    tpu.vector_store %arg10[%c0, %c0_1, %c0_2], %3 {strides = array<i32>} : memref<12x18x128xbf16, #tpu.memory_space<vmem>>, vector<12x1x128xbf16>,
    %cst_3 = arith.constant 0.000000e+00 : bf16
    %5 = vector.broadcast %cst_3 : bf16 to vector<12x1x128xbf16>
    %c0_4 = arith.constant 0 : index
    %c17 = arith.constant 17 : index
    %c0_5 = arith.constant 0 : index
    %6 = vector.load %arg10[%c0_4, %c17, %c0_5] : memref<12x18x128xbf16, #tpu.memory_space<vmem>>, vector<12x1x128xbf16>
    tpu.vector_store %arg10[%c0_4, %c17, %c0_5], %5 {strides = array<i32>} : memref<12x18x128xbf16, #tpu.memory_space<vmem>>, vector<12x1x128xbf16>,
    %c1_i32_6 = arith.constant 1 : i32
    %7 = arith.muli %c1_i32_6, %0 : i32
    %c0_7 = arith.constant 0 : index
    %8 = arith.index_cast %7 : i32 to index
    %c0_8 = arith.constant 0 : index
    %c0_9 = arith.constant 0 : index
    %9 = vector.load %arg2[%c0_7, %8, %c0_8, %c0_9] : memref<1x16x16x128xf32, #tpu.memory_space<vmem>>, vector<1x8x16x128xf32>
    %10 = vector.shape_cast %9 : vector<1x8x16x128xf32> to vector<8x16x128xf32>
    %11 = arith.truncf %10 : vector<8x16x128xf32> to vector<8x16x128xbf16>
    %c2 = arith.constant 2 : index
    %c1 = arith.constant 1 : index
    %c0_10 = arith.constant 0 : index
    %12 = vector.load %arg10[%c2, %c1, %c0_10] : memref<12x18x128xbf16, #tpu.memory_space<vmem>>, vector<8x16x128xbf16>
    tpu.vector_store %arg10[%c2, %c1, %c0_10], %11 {strides = array<i32>} : memref<12x18x128xbf16, #tpu.memory_space<vmem>>, vector<8x16x128xbf16>,
    %c0_i32 = arith.constant 0 : i32
    %13 = arith.addi %2, %c0_i32 : i32
    %c1_i32_11 = arith.constant 1 : i32
    %14 = arith.subi %13, %c1_i32_11 : i32
    %c0_i32_12 = arith.constant 0 : i32
    %c15_i32 = arith.constant 15 : i32
    %15 = arith.maxsi %c0_i32_12, %14 : i32
    %16 = arith.minsi %c15_i32, %15 : i32
    %c1_i32_13 = arith.constant 1 : i32
    %17 = arith.cmpi sge, %13, %c1_i32_13 : i32
    %c16_i32 = arith.constant 16 : i32
    %18 = arith.cmpi sle, %13, %c16_i32 : i32
    %19 = arith.andi %17, %18 : i1
    %20 = arith.extui %19 : i1 to i32
    %21 = arith.sitofp %20 : i32 to f32
    %22 = arith.truncf %21 : f32 to bf16
    %c0_14 = arith.constant 0 : index
    %23 = arith.index_cast %16 : i32 to index
    %c0_15 = arith.constant 0 : index
    %c0_16 = arith.constant 0 : index
    %24 = vector.load %arg2[%c0_14, %23, %c0_15, %c0_16] : memref<1x16x16x128xf32, #tpu.memory_space<vmem>>, vector<1x1x16x128xf32>
    %25 = vector.shape_cast %24 : vector<1x1x16x128xf32> to vector<1x16x128xf32>
    %26 = arith.truncf %25 : vector<1x16x128xf32> to vector<1x16x128xbf16>
    %27 = vector.broadcast %22 : bf16 to vector<1x16x128xbf16>
    %28 = arith.mulf %26, %27 : vector<1x16x128xbf16>
    %c0_17 = arith.constant 0 : index
    %c1_18 = arith.constant 1 : index
    %c0_19 = arith.constant 0 : index
    %29 = vector.load %arg10[%c0_17, %c1_18, %c0_19] : memref<12x18x128xbf16, #tpu.memory_space<vmem>>, vector<1x16x128xbf16>
    tpu.vector_store %arg10[%c0_17, %c1_18, %c0_19], %28 {strides = array<i32>} : memref<12x18x128xbf16, #tpu.memory_space<vmem>>, vector<1x16x128xbf16>,
    %c1_i32_20 = arith.constant 1 : i32
    %30 = arith.addi %2, %c1_i32_20 : i32
    %c1_i32_21 = arith.constant 1 : i32
    %31 = arith.subi %30, %c1_i32_21 : i32
    %c0_i32_22 = arith.constant 0 : i32
    %c15_i32_23 = arith.constant 15 : i32
    %32 = arith.maxsi %c0_i32_22, %31 : i32
    %33 = arith.minsi %c15_i32_23, %32 : i32
    %c1_i32_24 = arith.constant 1 : i32
    %34 = arith.cmpi sge, %30, %c1_i32_24 : i32
    %c16_i32_25 = arith.constant 16 : i32
    %35 = arith.cmpi sle, %30, %c16_i32_25 : i32
    %36 = arith.andi %34, %35 : i1
    %37 = arith.extui %36 : i1 to i32
    %38 = arith.sitofp %37 : i32 to f32
    %39 = arith.truncf %38 : f32 to bf16
    %c0_26 = arith.constant 0 : index
    %40 = arith.index_cast %33 : i32 to index
    %c0_27 = arith.constant 0 : index
    %c0_28 = arith.constant 0 : index
    %41 = vector.load %arg2[%c0_26, %40, %c0_27, %c0_28] : memref<1x16x16x128xf32, #tpu.memory_space<vmem>>, vector<1x1x16x128xf32>
    %42 = vector.shape_cast %41 : vector<1x1x16x128xf32> to vector<1x16x128xf32>
    %43 = arith.truncf %42 : vector<1x16x128xf32> to vector<1x16x128xbf16>
    %44 = vector.broadcast %39 : bf16 to vector<1x16x128xbf16>
    %45 = arith.mulf %43, %44 : vector<1x16x128xbf16>
    %c1_29 = arith.constant 1 : index
    %c1_30 = arith.constant 1 : index
    %c0_31 = arith.constant 0 : index
    %46 = vector.load %arg10[%c1_29, %c1_30, %c0_31] : memref<12x18x128xbf16, #tpu.memory_space<vmem>>, vector<1x16x128xbf16>
    tpu.vector_store %arg10[%c1_29, %c1_30, %c0_31], %45 {strides = array<i32>} : memref<12x18x128xbf16, #tpu.memory_space<vmem>>, vector<1x16x128xbf16>,
    %c10_i32 = arith.constant 10 : i32
    %47 = arith.addi %2, %c10_i32 : i32
    %c1_i32_32 = arith.constant 1 : i32
    %48 = arith.subi %47, %c1_i32_32 : i32
    %c0_i32_33 = arith.constant 0 : i32
    %c15_i32_34 = arith.constant 15 : i32
    %49 = arith.maxsi %c0_i32_33, %48 : i32
    %50 = arith.minsi %c15_i32_34, %49 : i32
    %c1_i32_35 = arith.constant 1 : i32
    %51 = arith.cmpi sge, %47, %c1_i32_35 : i32
    %c16_i32_36 = arith.constant 16 : i32
    %52 = arith.cmpi sle, %47, %c16_i32_36 : i32
    %53 = arith.andi %51, %52 : i1
    %54 = arith.extui %53 : i1 to i32
    %55 = arith.sitofp %54 : i32 to f32
    %56 = arith.truncf %55 : f32 to bf16
    %c0_37 = arith.constant 0 : index
    %57 = arith.index_cast %50 : i32 to index
    %c0_38 = arith.constant 0 : index
    %c0_39 = arith.constant 0 : index
    %58 = vector.load %arg2[%c0_37, %57, %c0_38, %c0_39] : memref<1x16x16x128xf32, #tpu.memory_space<vmem>>, vector<1x1x16x128xf32>
    %59 = vector.shape_cast %58 : vector<1x1x16x128xf32> to vector<1x16x128xf32>
    %60 = arith.truncf %59 : vector<1x16x128xf32> to vector<1x16x128xbf16>
    %61 = vector.broadcast %56 : bf16 to vector<1x16x128xbf16>
    %62 = arith.mulf %60, %61 : vector<1x16x128xbf16>
    %c10 = arith.constant 10 : index
    %c1_40 = arith.constant 1 : index
    %c0_41 = arith.constant 0 : index
    %63 = vector.load %arg10[%c10, %c1_40, %c0_41] : memref<12x18x128xbf16, #tpu.memory_space<vmem>>, vector<1x16x128xbf16>
    tpu.vector_store %arg10[%c10, %c1_40, %c0_41], %62 {strides = array<i32>} : memref<12x18x128xbf16, #tpu.memory_space<vmem>>, vector<1x16x128xbf16>,
    %c11_i32 = arith.constant 11 : i32
    %64 = arith.addi %2, %c11_i32 : i32
    %c1_i32_42 = arith.constant 1 : i32
    %65 = arith.subi %64, %c1_i32_42 : i32
    %c0_i32_43 = arith.constant 0 : i32
    %c15_i32_44 = arith.constant 15 : i32
    %66 = arith.maxsi %c0_i32_43, %65 : i32
    %67 = arith.minsi %c15_i32_44, %66 : i32
    %c1_i32_45 = arith.constant 1 : i32
    %68 = arith.cmpi sge, %64, %c1_i32_45 : i32
    %c16_i32_46 = arith.constant 16 : i32
    %69 = arith.cmpi sle, %64, %c16_i32_46 : i32
    %70 = arith.andi %68, %69 : i1
    %71 = arith.extui %70 : i1 to i32
    %72 = arith.sitofp %71 : i32 to f32
    %73 = arith.truncf %72 : f32 to bf16
    %c0_47 = arith.constant 0 : index
    %74 = arith.index_cast %67 : i32 to index
    %c0_48 = arith.constant 0 : index
    %c0_49 = arith.constant 0 : index
    %75 = vector.load %arg2[%c0_47, %74, %c0_48, %c0_49] : memref<1x16x16x128xf32, #tpu.memory_space<vmem>>, vector<1x1x16x128xf32>
    %76 = vector.shape_cast %75 : vector<1x1x16x128xf32> to vector<1x16x128xf32>
    %77 = arith.truncf %76 : vector<1x16x128xf32> to vector<1x16x128xbf16>
    %78 = vector.broadcast %73 : bf16 to vector<1x16x128xbf16>
    %79 = arith.mulf %77, %78 : vector<1x16x128xbf16>
    %c11 = arith.constant 11 : index
    %c1_50 = arith.constant 1 : index
    %c0_51 = arith.constant 0 : index
    %80 = vector.load %arg10[%c11, %c1_50, %c0_51] : memref<12x18x128xbf16, #tpu.memory_space<vmem>>, vector<1x16x128xbf16>
    tpu.vector_store %arg10[%c11, %c1_50, %c0_51], %79 {strides = array<i32>} : memref<12x18x128xbf16, #tpu.memory_space<vmem>>, vector<1x16x128xbf16>,
    %c0_52 = arith.constant 0 : index
    %c0_53 = arith.constant 0 : index
    %c0_54 = arith.constant 0 : index
    %81 = vector.load %arg10[%c0_52, %c0_53, %c0_54] : memref<12x18x128xbf16, #tpu.memory_space<vmem>>, vector<10x16x128xbf16>
    %82 = vector.shape_cast %81 : vector<10x16x128xbf16> to vector<160x128xbf16>
    %c0_55 = arith.constant 0 : index
    %c1_56 = arith.constant 1 : index
    %c0_57 = arith.constant 0 : index
    %83 = vector.load %arg10[%c0_55, %c1_56, %c0_57] : memref<12x18x128xbf16, #tpu.memory_space<vmem>>, vector<10x16x128xbf16>
    %84 = vector.shape_cast %83 : vector<10x16x128xbf16> to vector<160x128xbf16>
    %85 = tpu.concatenate %82, %84 in 1 : vector<160x128xbf16>, vector<160x128xbf16> -> vector<160x256xbf16>
    %c0_58 = arith.constant 0 : index
    %c0_59 = arith.constant 0 : index
    %86 = vector.load %arg3[%c0_58, %c0_59] : memref<1152x128xbf16, #tpu.memory_space<vmem>>, vector<256x128xbf16>
    %cst_60 = arith.constant dense<0.000000e+00> : vector<160x128xf32>
    %87 = tpu.matmul %85, %86, %cst_60 {dimension_numbers = #tpu.dot_dimension_numbers<[1], [0], [0], [1], [0, 0, 1, 1], [], []>} : vector<160x256xbf16>, vector<256x128xbf16>, vector<160x128xf32> -> vector<160x128xf32>
    %c0_61 = arith.constant 0 : index
    %c2_62 = arith.constant 2 : index
    %c0_63 = arith.constant 0 : index
    %88 = vector.load %arg10[%c0_61, %c2_62, %c0_63] : memref<12x18x128xbf16, #tpu.memory_space<vmem>>, vector<10x16x128xbf16>
    %89 = vector.shape_cast %88 : vector<10x16x128xbf16> to vector<160x128xbf16>
    %c1_64 = arith.constant 1 : index
    %c0_65 = arith.constant 0 : index
    %c0_66 = arith.constant 0 : index
    %90 = vector.load %arg10[%c1_64, %c0_65, %c0_66] : memref<12x18x128xbf16, #tpu.memory_space<vmem>>, vector<10x16x128xbf16>
    %91 = vector.shape_cast %90 : vector<10x16x128xbf16> to vector<160x128xbf16>
    %92 = tpu.concatenate %89, %91 in 1 : vector<160x128xbf16>, vector<160x128xbf16> -> vector<160x256xbf16>
    %c256 = arith.constant 256 : index
    %c0_67 = arith.constant 0 : index
    %93 = vector.load %arg3[%c256, %c0_67] : memref<1152x128xbf16, #tpu.memory_space<vmem>>, vector<256x128xbf16>
    %cst_68 = arith.constant dense<0.000000e+00> : vector<160x128xf32>
    %94 = tpu.matmul %92, %93, %cst_68 {dimension_numbers = #tpu.dot_dimension_numbers<[1], [0], [0], [1], [0, 0, 1, 1], [], []>} : vector<160x256xbf16>, vector<256x128xbf16>, vector<160x128xf32> -> vector<160x128xf32>
    %95 = arith.addf %87, %94 : vector<160x128xf32>
    %c1_69 = arith.constant 1 : index
    %c1_70 = arith.constant 1 : index
    %c0_71 = arith.constant 0 : index
    %96 = vector.load %arg10[%c1_69, %c1_70, %c0_71] : memref<12x18x128xbf16, #tpu.memory_space<vmem>>, vector<10x16x128xbf16>
    %97 = vector.shape_cast %96 : vector<10x16x128xbf16> to vector<160x128xbf16>
    %c1_72 = arith.constant 1 : index
    %c2_73 = arith.constant 2 : index
    %c0_74 = arith.constant 0 : index
    %98 = vector.load %arg10[%c1_72, %c2_73, %c0_74] : memref<12x18x128xbf16, #tpu.memory_space<vmem>>, vector<10x16x128xbf16>
    %99 = vector.shape_cast %98 : vector<10x16x128xbf16> to vector<160x128xbf16>
    %100 = tpu.concatenate %97, %99 in 1 : vector<160x128xbf16>, vector<160x128xbf16> -> vector<160x256xbf16>
    %c512 = arith.constant 512 : index
    %c0_75 = arith.constant 0 : index
    %101 = vector.load %arg3[%c512, %c0_75] : memref<1152x128xbf16, #tpu.memory_space<vmem>>, vector<256x128xbf16>
    %cst_76 = arith.constant dense<0.000000e+00> : vector<160x128xf32>
    %102 = tpu.matmul %100, %101, %cst_76 {dimension_numbers = #tpu.dot_dimension_numbers<[1], [0], [0], [1], [0, 0, 1, 1], [], []>} : vector<160x256xbf16>, vector<256x128xbf16>, vector<160x128xf32> -> vector<160x128xf32>
    %103 = arith.addf %95, %102 : vector<160x128xf32>
    %c2_77 = arith.constant 2 : index
    %c0_78 = arith.constant 0 : index
    %c0_79 = arith.constant 0 : index
    %104 = vector.load %arg10[%c2_77, %c0_78, %c0_79] : memref<12x18x128xbf16, #tpu.memory_space<vmem>>, vector<10x16x128xbf16>
    %105 = vector.shape_cast %104 : vector<10x16x128xbf16> to vector<160x128xbf16>
    %c2_80 = arith.constant 2 : index
    %c1_81 = arith.constant 1 : index
    %c0_82 = arith.constant 0 : index
    %106 = vector.load %arg10[%c2_80, %c1_81, %c0_82] : memref<12x18x128xbf16, #tpu.memory_space<vmem>>, vector<10x16x128xbf16>
    %107 = vector.shape_cast %106 : vector<10x16x128xbf16> to vector<160x128xbf16>
    %108 = tpu.concatenate %105, %107 in 1 : vector<160x128xbf16>, vector<160x128xbf16> -> vector<160x256xbf16>
    %c768 = arith.constant 768 : index
    %c0_83 = arith.constant 0 : index
    %109 = vector.load %arg3[%c768, %c0_83] : memref<1152x128xbf16, #tpu.memory_space<vmem>>, vector<256x128xbf16>
    %cst_84 = arith.constant dense<0.000000e+00> : vector<160x128xf32>
    %110 = tpu.matmul %108, %109, %cst_84 {dimension_numbers = #tpu.dot_dimension_numbers<[1], [0], [0], [1], [0, 0, 1, 1], [], []>} : vector<160x256xbf16>, vector<256x128xbf16>, vector<160x128xf32> -> vector<160x128xf32>
    %111 = arith.addf %103, %110 : vector<160x128xf32>
    %c2_85 = arith.constant 2 : index
    %c2_86 = arith.constant 2 : index
    %c0_87 = arith.constant 0 : index
    %112 = vector.load %arg10[%c2_85, %c2_86, %c0_87] : memref<12x18x128xbf16, #tpu.memory_space<vmem>>, vector<10x16x128xbf16>
    %113 = vector.shape_cast %112 : vector<10x16x128xbf16> to vector<160x128xbf16>
    %c1024 = arith.constant 1024 : index
    %c0_88 = arith.constant 0 : index
    %114 = vector.load %arg3[%c1024, %c0_88] : memref<1152x128xbf16, #tpu.memory_space<vmem>>, vector<128x128xbf16>
    %cst_89 = arith.constant dense<0.000000e+00> : vector<160x128xf32>
    %115 = tpu.matmul %113, %114, %cst_89 {dimension_numbers = #tpu.dot_dimension_numbers<[1], [0], [0], [1], [0, 0, 1, 1], [], []>} : vector<160x128xbf16>, vector<128x128xbf16>, vector<160x128xf32> -> vector<160x128xf32>
    %116 = arith.addf %111, %115 : vector<160x128xf32>
    %c0_90 = arith.constant 0 : index
    %c0_91 = arith.constant 0 : index
    %117 = vector.load %arg4[%c0_90, %c0_91] : memref<1x128xf32, #tpu.memory_space<vmem>>, vector<1x128xf32>
    %118 = vector.broadcast %117 : vector<1x128xf32> to vector<160x128xf32>
    %119 = arith.addf %116, %118 : vector<160x128xf32>
    %cst_92 = arith.constant 0.000000e+00 : f32
    %120 = vector.broadcast %cst_92 : f32 to vector<160x128xf32>
    %121 = arith.cmpf ogt, %119, %120 : vector<160x128xf32>
    %cst_93 = arith.constant 0.00999999977 : f32
    %122 = vector.broadcast %cst_93 : f32 to vector<160x128xf32>
    %123 = arith.mulf %122, %119 : vector<160x128xf32>
    %124 = arith.select %121, %119, %123 : vector<160x128xi1>, vector<160x128xf32>
    %125 = vector.shape_cast %124 : vector<160x128xf32> to vector<10x16x128xf32>
    %126 = arith.truncf %125 : vector<10x16x128xf32> to vector<10x16x128xbf16>
    %c0_94 = arith.constant 0 : index
    %c1_95 = arith.constant 1 : index
    %c0_96 = arith.constant 0 : index
    %127 = vector.load %arg11[%c0_94, %c1_95, %c0_96] : memref<10x18x128xbf16, #tpu.memory_space<vmem>>, vector<10x16x128xbf16>
    tpu.vector_store %arg11[%c0_94, %c1_95, %c0_96], %126 {strides = array<i32>} : memref<10x18x128xbf16, #tpu.memory_space<vmem>>, vector<10x16x128xbf16>,
    %cst_97 = arith.constant 0.000000e+00 : bf16
    %128 = vector.broadcast %cst_97 : bf16 to vector<10x1x128xbf16>
    %c0_98 = arith.constant 0 : index
    %c0_99 = arith.constant 0 : index
    %c0_100 = arith.constant 0 : index
    %129 = vector.load %arg11[%c0_98, %c0_99, %c0_100] : memref<10x18x128xbf16, #tpu.memory_space<vmem>>, vector<10x1x128xbf16>
    tpu.vector_store %arg11[%c0_98, %c0_99, %c0_100], %128 {strides = array<i32>} : memref<10x18x128xbf16, #tpu.memory_space<vmem>>, vector<10x1x128xbf16>,
    %cst_101 = arith.constant 0.000000e+00 : bf16
    %130 = vector.broadcast %cst_101 : bf16 to vector<10x1x128xbf16>
    %c0_102 = arith.constant 0 : index
    %c17_103 = arith.constant 17 : index
    %c0_104 = arith.constant 0 : index
    %131 = vector.load %arg11[%c0_102, %c17_103, %c0_104] : memref<10x18x128xbf16, #tpu.memory_space<vmem>>, vector<10x1x128xbf16>
    tpu.vector_store %arg11[%c0_102, %c17_103, %c0_104], %130 {strides = array<i32>} : memref<10x18x128xbf16, #tpu.memory_space<vmem>>, vector<10x1x128xbf16>,
    %c0_i32_105 = arith.constant 0 : i32
    %132 = arith.cmpi eq, %0, %c0_i32_105 : i32
    %133 = arith.extui %132 : i1 to i32
    %c0_i32_106 = arith.constant 0 : i32
    %134 = arith.cmpi ne, %133, %c0_i32_106 : i32
    scf.if %134 {
      %cst_167 = arith.constant 0.000000e+00 : bf16
      %195 = vector.broadcast %cst_167 : bf16 to vector<1x18x128xbf16>
      %c0_168 = arith.constant 0 : index
      %c0_169 = arith.constant 0 : index
      %c0_170 = arith.constant 0 : index
      %196 = vector.load %arg11[%c0_168, %c0_169, %c0_170] : memref<10x18x128xbf16, #tpu.memory_space<vmem>>, vector<1x18x128xbf16>
      tpu.vector_store %arg11[%c0_168, %c0_169, %c0_170], %195 {strides = array<i32>} : memref<10x18x128xbf16, #tpu.memory_space<vmem>>, vector<1x18x128xbf16>,
    } else {
    }
    %c8_i32_107 = arith.constant 8 : i32
    %135 = arith.addi %0, %c8_i32_107 : i32
    %c16_i32_108 = arith.constant 16 : i32
    %136 = arith.cmpi eq, %135, %c16_i32_108 : i32
    %137 = arith.extui %136 : i1 to i32
    %c0_i32_109 = arith.constant 0 : i32
    %138 = arith.cmpi ne, %137, %c0_i32_109 : i32
    scf.if %138 {
      %cst_167 = arith.constant 0.000000e+00 : bf16
      %195 = vector.broadcast %cst_167 : bf16 to vector<1x18x128xbf16>
      %c9 = arith.constant 9 : index
      %c0_168 = arith.constant 0 : index
      %c0_169 = arith.constant 0 : index
      %196 = vector.load %arg11[%c9, %c0_168, %c0_169] : memref<10x18x128xbf16, #tpu.memory_space<vmem>>, vector<1x18x128xbf16>
      tpu.vector_store %arg11[%c9, %c0_168, %c0_169], %195 {strides = array<i32>} : memref<10x18x128xbf16, #tpu.memory_space<vmem>>, vector<1x18x128xbf16>,
    } else {
    }
    %c0_110 = arith.constant 0 : index
    %c0_111 = arith.constant 0 : index
    %c0_112 = arith.constant 0 : index
    %139 = vector.load %arg11[%c0_110, %c0_111, %c0_112] : memref<10x18x128xbf16, #tpu.memory_space<vmem>>, vector<8x16x128xbf16>
    %140 = vector.shape_cast %139 : vector<8x16x128xbf16> to vector<128x128xbf16>
    %c0_113 = arith.constant 0 : index
    %c1_114 = arith.constant 1 : index
    %c0_115 = arith.constant 0 : index
    %141 = vector.load %arg11[%c0_113, %c1_114, %c0_115] : memref<10x18x128xbf16, #tpu.memory_space<vmem>>, vector<8x16x128xbf16>
    %142 = vector.shape_cast %141 : vector<8x16x128xbf16> to vector<128x128xbf16>
    %143 = tpu.concatenate %140, %142 in 1 : vector<128x128xbf16>, vector<128x128xbf16> -> vector<128x256xbf16>
    %c0_116 = arith.constant 0 : index
    %c0_117 = arith.constant 0 : index
    %144 = vector.load %arg5[%c0_116, %c0_117] : memref<1152x128xbf16, #tpu.memory_space<vmem>>, vector<256x128xbf16>
    %cst_118 = arith.constant dense<0.000000e+00> : vector<128x128xf32>
    %145 = tpu.matmul %143, %144, %cst_118 {dimension_numbers = #tpu.dot_dimension_numbers<[1], [0], [0], [1], [0, 0, 1, 1], [], []>} : vector<128x256xbf16>, vector<256x128xbf16>, vector<128x128xf32> -> vector<128x128xf32>
    %c0_119 = arith.constant 0 : index
    %c2_120 = arith.constant 2 : index
    %c0_121 = arith.constant 0 : index
    %146 = vector.load %arg11[%c0_119, %c2_120, %c0_121] : memref<10x18x128xbf16, #tpu.memory_space<vmem>>, vector<8x16x128xbf16>
    %147 = vector.shape_cast %146 : vector<8x16x128xbf16> to vector<128x128xbf16>
    %c1_122 = arith.constant 1 : index
    %c0_123 = arith.constant 0 : index
    %c0_124 = arith.constant 0 : index
    %148 = vector.load %arg11[%c1_122, %c0_123, %c0_124] : memref<10x18x128xbf16, #tpu.memory_space<vmem>>, vector<8x16x128xbf16>
    %149 = vector.shape_cast %148 : vector<8x16x128xbf16> to vector<128x128xbf16>
    %150 = tpu.concatenate %147, %149 in 1 : vector<128x128xbf16>, vector<128x128xbf16> -> vector<128x256xbf16>
    %c256_125 = arith.constant 256 : index
    %c0_126 = arith.constant 0 : index
    %151 = vector.load %arg5[%c256_125, %c0_126] : memref<1152x128xbf16, #tpu.memory_space<vmem>>, vector<256x128xbf16>
    %cst_127 = arith.constant dense<0.000000e+00> : vector<128x128xf32>
    %152 = tpu.matmul %150, %151, %cst_127 {dimension_numbers = #tpu.dot_dimension_numbers<[1], [0], [0], [1], [0, 0, 1, 1], [], []>} : vector<128x256xbf16>, vector<256x128xbf16>, vector<128x128xf32> -> vector<128x128xf32>
    %153 = arith.addf %145, %152 : vector<128x128xf32>
    %c1_128 = arith.constant 1 : index
    %c1_129 = arith.constant 1 : index
    %c0_130 = arith.constant 0 : index
    %154 = vector.load %arg11[%c1_128, %c1_129, %c0_130] : memref<10x18x128xbf16, #tpu.memory_space<vmem>>, vector<8x16x128xbf16>
    %155 = vector.shape_cast %154 : vector<8x16x128xbf16> to vector<128x128xbf16>
    %c1_131 = arith.constant 1 : index
    %c2_132 = arith.constant 2 : index
    %c0_133 = arith.constant 0 : index
    %156 = vector.load %arg11[%c1_131, %c2_132, %c0_133] : memref<10x18x128xbf16, #tpu.memory_space<vmem>>, vector<8x16x128xbf16>
    %157 = vector.shape_cast %156 : vector<8x16x128xbf16> to vector<128x128xbf16>
    %158 = tpu.concatenate %155, %157 in 1 : vector<128x128xbf16>, vector<128x128xbf16> -> vector<128x256xbf16>
    %c512_134 = arith.constant 512 : index
    %c0_135 = arith.constant 0 : index
    %159 = vector.load %arg5[%c512_134, %c0_135] : memref<1152x128xbf16, #tpu.memory_space<vmem>>, vector<256x128xbf16>
    %cst_136 = arith.constant dense<0.000000e+00> : vector<128x128xf32>
    %160 = tpu.matmul %158, %159, %cst_136 {dimension_numbers = #tpu.dot_dimension_numbers<[1], [0], [0], [1], [0, 0, 1, 1], [], []>} : vector<128x256xbf16>, vector<256x128xbf16>, vector<128x128xf32> -> vector<128x128xf32>
    %161 = arith.addf %153, %160 : vector<128x128xf32>
    %c2_137 = arith.constant 2 : index
    %c0_138 = arith.constant 0 : index
    %c0_139 = arith.constant 0 : index
    %162 = vector.load %arg11[%c2_137, %c0_138, %c0_139] : memref<10x18x128xbf16, #tpu.memory_space<vmem>>, vector<8x16x128xbf16>
    %163 = vector.shape_cast %162 : vector<8x16x128xbf16> to vector<128x128xbf16>
    %c2_140 = arith.constant 2 : index
    %c1_141 = arith.constant 1 : index
    %c0_142 = arith.constant 0 : index
    %164 = vector.load %arg11[%c2_140, %c1_141, %c0_142] : memref<10x18x128xbf16, #tpu.memory_space<vmem>>, vector<8x16x128xbf16>
    %165 = vector.shape_cast %164 : vector<8x16x128xbf16> to vector<128x128xbf16>
    %166 = tpu.concatenate %163, %165 in 1 : vector<128x128xbf16>, vector<128x128xbf16> -> vector<128x256xbf16>
    %c768_143 = arith.constant 768 : index
    %c0_144 = arith.constant 0 : index
    %167 = vector.load %arg5[%c768_143, %c0_144] : memref<1152x128xbf16, #tpu.memory_space<vmem>>, vector<256x128xbf16>
    %cst_145 = arith.constant dense<0.000000e+00> : vector<128x128xf32>
    %168 = tpu.matmul %166, %167, %cst_145 {dimension_numbers = #tpu.dot_dimension_numbers<[1], [0], [0], [1], [0, 0, 1, 1], [], []>} : vector<128x256xbf16>, vector<256x128xbf16>, vector<128x128xf32> -> vector<128x128xf32>
    %169 = arith.addf %161, %168 : vector<128x128xf32>
    %c2_146 = arith.constant 2 : index
    %c2_147 = arith.constant 2 : index
    %c0_148 = arith.constant 0 : index
    %170 = vector.load %arg11[%c2_146, %c2_147, %c0_148] : memref<10x18x128xbf16, #tpu.memory_space<vmem>>, vector<8x16x128xbf16>
    %171 = vector.shape_cast %170 : vector<8x16x128xbf16> to vector<128x128xbf16>
    %c1024_149 = arith.constant 1024 : index
    %c0_150 = arith.constant 0 : index
    %172 = vector.load %arg5[%c1024_149, %c0_150] : memref<1152x128xbf16, #tpu.memory_space<vmem>>, vector<128x128xbf16>
    %cst_151 = arith.constant dense<0.000000e+00> : vector<128x128xf32>
    %173 = tpu.matmul %171, %172, %cst_151 {dimension_numbers = #tpu.dot_dimension_numbers<[1], [0], [0], [1], [0, 0, 1, 1], [], []>} : vector<128x128xbf16>, vector<128x128xbf16>, vector<128x128xf32> -> vector<128x128xf32>
    %174 = arith.addf %169, %173 : vector<128x128xf32>
    %c0_152 = arith.constant 0 : index
    %c0_153 = arith.constant 0 : index
    %175 = vector.load %arg6[%c0_152, %c0_153] : memref<1x128xf32, #tpu.memory_space<vmem>>, vector<1x128xf32>
    %176 = vector.broadcast %175 : vector<1x128xf32> to vector<128x128xf32>
    %177 = arith.addf %174, %176 : vector<128x128xf32>
    %c0_154 = arith.constant 0 : index
    %178 = arith.index_cast %0 : i32 to index
    %c0_155 = arith.constant 0 : index
    %c0_156 = arith.constant 0 : index
    %179 = vector.load %arg2[%c0_154, %178, %c0_155, %c0_156] : memref<1x16x16x128xf32, #tpu.memory_space<vmem>>, vector<1x8x16x128xf32>
    %180 = vector.shape_cast %179 : vector<1x8x16x128xf32> to vector<8x16x128xf32>
    %181 = arith.truncf %180 : vector<8x16x128xf32> to vector<8x16x128xbf16>
    %182 = vector.shape_cast %181 : vector<8x16x128xbf16> to vector<128x128xbf16>
    %c0_157 = arith.constant 0 : index
    %c0_158 = arith.constant 0 : index
    %183 = vector.load %arg7[%c0_157, %c0_158] : memref<128x128xbf16, #tpu.memory_space<vmem>>, vector<128x128xbf16>
    %cst_159 = arith.constant dense<0.000000e+00> : vector<128x128xf32>
    %184 = tpu.matmul %182, %183, %cst_159 {dimension_numbers = #tpu.dot_dimension_numbers<[1], [0], [0], [1], [0, 0, 1, 1], [], []>} : vector<128x128xbf16>, vector<128x128xbf16>, vector<128x128xf32> -> vector<128x128xf32>
    %c0_160 = arith.constant 0 : index
    %c0_161 = arith.constant 0 : index
    %185 = vector.load %arg8[%c0_160, %c0_161] : memref<1x128xf32, #tpu.memory_space<vmem>>, vector<1x128xf32>
    %186 = vector.broadcast %185 : vector<1x128xf32> to vector<128x128xf32>
    %187 = arith.addf %184, %186 : vector<128x128xf32>
    %188 = arith.addf %177, %187 : vector<128x128xf32>
    %cst_162 = arith.constant 0.000000e+00 : f32
    %189 = vector.broadcast %cst_162 : f32 to vector<128x128xf32>
    %190 = arith.maximumf %188, %189 : vector<128x128xf32>
    %191 = vector.shape_cast %190 : vector<128x128xf32> to vector<8x16x128xf32>
    %c0_163 = arith.constant 0 : index
    %c0_164 = arith.constant 0 : index
    %c0_165 = arith.constant 0 : index
    %c0_166 = arith.constant 0 : index
    %192 = vector.load %arg9[%c0_163, %c0_164, %c0_165, %c0_166] : memref<1x8x16x128xf32, #tpu.memory_space<vmem>>, vector<1x8x16x128xf32>
    %193 = vector.shape_cast %192 : vector<1x8x16x128xf32> to vector<8x16x128xf32>
    %194 = vector.shape_cast %191 : vector<8x16x128xf32> to vector<1x8x16x128xf32>
    tpu.vector_store %arg9[%c0_163, %c0_164, %c0_165, %c0_166], %194 {strides = array<i32>} : memref<1x8x16x128xf32, #tpu.memory_space<vmem>>, vector<1x8x16x128xf32>,
    return
  }
  func.func @transform_0(%arg0: i32, %arg1: i32) -> (i32, i32, i32, i32) {
    %c0_i32 = arith.constant 0 : i32
    %c0_i32_0 = arith.constant 0 : i32
    %c0_i32_1 = arith.constant 0 : i32
    %c0_i32_2 = arith.constant 0 : i32
    return %arg0, %c0_i32, %c0_i32_0, %c0_i32_1 : i32, i32, i32, i32
  }
  func.func @transform_1(%arg0: i32, %arg1: i32) -> (i32, i32) {
    %c0_i32 = arith.constant 0 : i32
    %c0_i32_0 = arith.constant 0 : i32
    %c0_i32_1 = arith.constant 0 : i32
    return %c0_i32, %c0_i32_0 : i32, i32
  }
  func.func @transform_2(%arg0: i32, %arg1: i32) -> (i32, i32) {
    %c0_i32 = arith.constant 0 : i32
    %c0_i32_0 = arith.constant 0 : i32
    %c0_i32_1 = arith.constant 0 : i32
    return %c0_i32, %c0_i32_0 : i32, i32
  }
  func.func @transform_3(%arg0: i32, %arg1: i32) -> (i32, i32) {
    %c0_i32 = arith.constant 0 : i32
    %c0_i32_0 = arith.constant 0 : i32
    %c0_i32_1 = arith.constant 0 : i32
    return %c0_i32, %c0_i32_0 : i32, i32
  }
  func.func @transform_4(%arg0: i32, %arg1: i32) -> (i32, i32) {
    %c0_i32 = arith.constant 0 : i32
    %c0_i32_0 = arith.constant 0 : i32
    %c0_i32_1 = arith.constant 0 : i32
    return %c0_i32, %c0_i32_0 : i32, i32
  }
  func.func @transform_5(%arg0: i32, %arg1: i32) -> (i32, i32) {
    %c0_i32 = arith.constant 0 : i32
    %c0_i32_0 = arith.constant 0 : i32
    %c0_i32_1 = arith.constant 0 : i32
    return %c0_i32, %c0_i32_0 : i32, i32
  }
  func.func @transform_6(%arg0: i32, %arg1: i32) -> (i32, i32) {
    %c0_i32 = arith.constant 0 : i32
    %c0_i32_0 = arith.constant 0 : i32
    %c0_i32_1 = arith.constant 0 : i32
    return %c0_i32, %c0_i32_0 : i32, i32
  }
  func.func @transform_7(%arg0: i32, %arg1: i32) -> (i32, i32, i32, i32) {
    %c0_i32 = arith.constant 0 : i32
    %c0_i32_0 = arith.constant 0 : i32
    %c0_i32_1 = arith.constant 0 : i32
    return %arg0, %arg1, %c0_i32, %c0_i32_0 : i32, i32, i32, i32
  }
}

</mosaic_0001>

<bundles_post_ra>
// kernel: tpu_custom_call.1
= control target key start
LH: loop header
LB: loop body
LE: loop exit
PB: predicated region body
PF: predicated region fallthrough
CT: control target
= control target key end

     0   :  { %s11414_s0 = inlined_call_operand.hbm [shape: f32[2,16,16,128], index: 0, kind: input, shape index: {}]   ;;  %s11415_s1 = inlined_call_operand.hbm [shape: bf16[1152,128], index: 1, kind: input, shape index: {}]   ;;  %s11416_s2 = inlined_call_operand.vmem [shape: f32[1,128], index: 2, kind: input, shape index: {}]   ;;  %s11417_s3 = inlined_call_operand.hbm [shape: bf16[1152,128], index: 3, kind: input, shape index: {}]   ;;  %s11418_s4 = inlined_call_operand.vmem [shape: f32[1,128], index: 4, kind: input, shape index: {}]   ;;  %s11419_s5 = inlined_call_operand.hbm [shape: bf16[128,128], index: 5, kind: input, shape index: {}]   ;;  %s11420_s6 = inlined_call_operand.vmem [shape: f32[1,128], index: 6, kind: input, shape index: {}]   ;;  %s11421_s7 = inlined_call_operand.hbm [shape: f32[2,16,16,128], index: 7, kind: output, shape index: {}]  }
   0x1   :  { %11446 = sst [smem:[#allocation38_spill]] %s11415_s1 }
   0x2   :  { %11447 = sst [smem:[#allocation39_spill]] %s11417_s3 }
   0x3   :  { %11448 = sst [smem:[#allocation40_spill]] %s11419_s5 }
   0x4   :  { %11449 = sst [smem:[#allocation41_spill]] %s11421_s7 }
   0x5   :  { %12 = vsyncpa [#allocation5], 0 }
   0x6   :  { %14 = vsyncpa [#allocation5 + $0x1], 0 }
   0x7   :  { %15 = vsyncpa [#allocation8], 0 }
   0x8   :  { %16 = vsyncpa [#allocation11], 0 }
   0x9   :  { %17 = vsyncpa [#allocation6], 0 }
   0xa   :  { %19 = vsyncpa [#allocation6 + $0x1], 0  ;;  %s8884_s24 = smov 0   ;;  %s8886_s25 = smov 0  }
   0xb   :  { %s8888_s26 = smov 0   ;;  %s8890_s27 = smov 0  }
   0xc   :  { %s8892_s28 = smov 0   ;;  %s8894_s29 = smov 0  }
   0xd   :  { %s8896_s30 = smov 0   ;;  %s8898_s8 = smov 0  }
   0xe   :  { %s8900_s9 = smov 0   ;;  %s8902_s10 = smov 0  }
   0xf   :  { %s8904_s11 = smov 0  }
  0x10 LB: > { %11450 = sst [smem:[#allocation17_spill]] %s8789_s24  ;;  %s7002_s12 = sadd.s32 4294967295, %s8829_s11   ;;  %s8829_s11 = sphi %s8904_s11, %s25_s11   ;;  %s8825_s10 = sphi %s8902_s10, %s11533_s10   ;;  %s8821_s9 = sphi %s8900_s9, %s11524_s9   ;;  %s8817_s8 = sphi %s8898_s8, %s11532_s8   ;;  %s8813_s30 = sphi %s8896_s30, %s11523_s30   ;;  %s8809_s29 = sphi %s8894_s29, %s11531_s29   ;;  %s8805_s28 = sphi %s8892_s28, %s11530_s28   ;;  %s8801_s27 = sphi %s8890_s27, %s11529_s27   ;;  %s8797_s26 = sphi %s8888_s26, %s11528_s26   ;;  %s8793_s25 = sphi %s8886_s25, %s11527_s25   ;;  %s8789_s24 = sphi %s8884_s24, %s11526_s24  }
  0x11   : > { %11451 = sst [smem:[#allocation18_spill]] %s8817_s8  ;;  %s7003_s13 = sadd.s32 4294967294, %s8829_s11  }
  0x12   : > { %11452 = sst [smem:[#allocation19_spill]] %s8821_s9  ;;  %p57_p0 = scmp.ne.s32.totalorder %s8805_s28, %s8801_s27 }
  0x13   : > { %p8940_p1 = scmp.eq.s32.totalorder %s7002_s12, 0  ;;  %p208_p2 = scmp.ne.s32.totalorder %s8797_s26, %s8793_s25 }
  0x14   : > { %p209_p4 = scmp.eq.s32.totalorder %s7002_s12, 3  ;;  %p214_p5 = scmp.ne.s32.totalorder %s8793_s25, %s8789_s24 }
  0x15   : > { %s11453_s14 = scalar_select %p8940_p1, 1, 0 }
  0x16   : > { %p8949_p3 = por %p8940_p1, %p57_p0  ;;  %p215_p6 = scmp.eq.s32.totalorder %s7003_s13, 3 }
  0x17   : > { %p8955_p7 = por %p209_p4, %p208_p2  ;;  %p7004_p8 = scmp.ge.s32.totalorder %s8829_s11, 1 }
  0x18   : > { %s11454_s16 = scalar_select %p8949_p3, 1, 0 }
  0x19   : > { %s11455_s17 = scalar_select %p8955_p7, 1, 0 }
  0x1a   : > { %p8960_p9 = por %p215_p6, %p214_p5  ;;  %p222_p10 = scmp.lt.s32.totalorder %s8829_s11, 5 }
  0x1b   : > { %11456 = sst [smem:[#allocation20_spill]] %s11455_s17  ;;  %s8831_s20 = smov [#allocation7]  }
  0x1c   : > { %s11457_s18 = scalar_select %p8960_p9, 1, 0 }
  0x1d   : > { %p8965_p11 = pnand %p7004_p8, %p222_p10  ;;  %s234_s21 = sshll.u32 %s8831_s20, 4  ;;  %s235_s21 = int_to_ptr.vmem [resolvable:$true] %s234_s21 }
  0x1e   : > { %11458 = sst [smem:[#allocation21_spill]] %s11457_s18  ;;  %s8832_s23 = smov [#allocation9]  }
  0x1f   : > { %p8262_p12 = pneg %p8965_p11  ;;  %s250_s27 = sshll.u32 %s8832_s23, 4  ;;  %s251_s27 = int_to_ptr.vmem [resolvable:$true] %s250_s27 }
  0x20   : > { %s8833_s12 = smov [#allocation10]   ;;  %s8606_s15 = scalar_lea.vmem %s235_s21, 9216 }
  0x21   : > { %p8973_p13 = pnand %p8262_p12, %p8940_p1  ;;  %s266_s13 = sshll.u32 %s8833_s12, 4  ;;  %s267_s13 = int_to_ptr.vmem [resolvable:$true] %s266_s13 }
  0x22   : > { %p8607_p2 = scmp.ne.s32.totalorder %s235_s21, %s8606_s15  ;;  %p8614_p6 = scmp.lt.s32.totalorder %s235_s21, %s235_s21 }
  0x23   : > { %p8597_p0 = pneg %p8973_p13  ;;  %p8615_p8 = scmp.lt.s32.totalorder %s8606_s15, %s8606_s15 }
  0x25   : > { %p8609_p4 = pnand %p8607_p2, %p8597_p0  ;;  %p8616_p10 = por %p8615_p8, %p8614_p6 }
  0x27   : > { %p8610_p5 = pneg %p8609_p4 }
  0x29   : > { %p8617_p12 = pnand %p8616_p10, %p8610_p5 }
  0x2b   : > { %8620 = shalt.err (!%p8617_p12)
}
  0x2c   : > { %s8834_s20 = smov 64   ;;  %s8835_s23 = smov 4  }
  0x2d   : > { %s11461_s1 = sld [smem:[#allocation38_spill]]  ;;  %s8632_s24 = scalar_lea.vmem %s251_s27, 9216 }
  0x2e   : > { %p8633_p9 = scmp.ne.s32.totalorder %s251_s27, %s8632_s24  ;;  %p8640_p7 = scmp.lt.s32.totalorder %s251_s27, %s251_s27 }
  0x2f   : > { %p8641_p1 = scmp.lt.s32.totalorder %s8632_s24, %s8632_s24 }
  0x30   : > { %p8635_p2 = pnand %p8633_p9, %p8597_p0 }
  0x31   : > { %p8642_p6 = por %p8641_p1, %p8640_p7 }
  0x32   : > { %p8636_p4 = pneg %p8635_p2 }
  0x33   : > { %8265 = dma.hbm_to_vmem [thread:$0]  (!%p8973_p13), %s11461_s1, 9216, %s235_s21, [#allocation8], %s8834_s20, %s8834_s20, %s8835_s23  }
  0x34   : > { %p8643_p5 = pnand %p8642_p6, %p8636_p4 }
  0x36   : > { %8646 = shalt.err (!%p8643_p5)
}
  0x37   : > { %s11462_s3 = sld [smem:[#allocation39_spill]]  ;;  %s8658_s18 = scalar_lea.vmem %s267_s13, 1024 }
  0x38   : > { %p8659_p8 = scmp.ne.s32.totalorder %s267_s13, %s8658_s18  ;;  %p8666_p12 = scmp.lt.s32.totalorder %s267_s13, %s267_s13 }
  0x39   : > { %p8667_p2 = scmp.lt.s32.totalorder %s8658_s18, %s8658_s18 }
  0x3a   : > { %p8661_p10 = pnand %p8659_p8, %p8597_p0 }
  0x3b   : > { %p8668_p3 = por %p8667_p2, %p8666_p12 }
  0x3c   : > { %p8662_p9 = pneg %p8661_p10 }
  0x3d   : > { %8268 = dma.hbm_to_vmem [thread:$0]  (!%p8973_p13), %s11462_s3, 9216, %s251_s27, [#allocation8], %s8834_s20, %s8834_s20, %s8835_s23  }
  0x3e   : > { %p8669_p1 = pnand %p8668_p3, %p8662_p9 }
  0x40   : > { %8672 = shalt.err (!%p8669_p1)
}
  0x41   : > { %s11463_s5 = sld [smem:[#allocation40_spill]]  ;;  %s34_s7 = sadd.s32 1, %s8821_s9 }
  0x42   : > { %p35_p3 = scmp.ge.s32.totalorder %s34_s7, 2  ;;  %s37_s27 = sadd.s32 1, %s8825_s10 }
  0x43   : > { %s44_s12 = sadd.s32 1, %s8809_s29  ;;  %p51_p7 = scmp.ne.s32.totalorder %s8809_s29, %s8805_s28 }
  0x44   : > { %s11535_s7 = smov (%p35_p3, %s34_s7), 0  ;;  %s11537_s27 = smov (!%p35_p3, %s37_s27), %s8825_s10 }
  0x45   : > { %11464 = sst [smem:[#allocation22_spill]] %s11535_s7  ;;  %p52_p0 = scmp.eq.s32.totalorder %s8829_s11, 0 }
  0x46   : > { %s194_s22 = ssub.s32 %s8821_s9, %s11535_s7  ;;  %p39_p4 = scmp.ge.s32.totalorder %s11537_s27, 2 }
  0x47   : > { %8271 = dma.hbm_to_vmem [thread:$0]  (!%p8973_p13), %s11463_s5, 1024, %s267_s13, [#allocation11], %s8834_s20, %s8834_s20, %s8835_s23  }
  0x48   : > { %p8283_p6 = scmp.lt.s32.totalorder %s8829_s11, 4  ;;  %p9015_p13 = por %p52_p0, %p51_p7 }
  0x49   : > { %s283_s20 = sand.u32 1, %s8809_s29   ;;  %s11539_s27 = smov (%p39_p4, %s11537_s27), 0 }
  0x4a   : > { %11466 = sst [smem:[#allocation23_spill]] %s11539_s27  ;;  %s7009_s23 = sshll.u32 %s283_s20, 8 }
  0x4b   : > { %s41_s15 = ssub.s32 %s8825_s10, %s11539_s27  ;;  %s7473_s24 = sshll.u32 %s8825_s10, 12 }
  0x4c   : > { %p42_p5 = scmp.eq.s32.totalorder %s41_s15, 0  ;;  %s195_s18 = sor.u32 %s194_s22, %s41_s15 }
  0x4d   : > { %p196_p8 = scmp.eq.s32.totalorder %s195_s18, 0  ;;  %s11467_s1 = sadd.s32 1, %s8797_s26 }
  0x4e   : > { %s9026_s21 = scalar_select %p42_p5, %s8809_s29, %s44_s12  }
  0x4f   : > { %s9031_s3 = scalar_select %p196_p8, %s8797_s26, %s11467_s1  }
  0x50   : > { %s293_s9 = scalar_lea.hbm %s11414_s0, %s7473_s24  ;;  %s287_s17 = scalar_lea.vmem [#allocation4], %s7009_s23 }
  0x51   : > { %s294_s8 = sshll.u32 %s287_s17, 4  ;;  %p9040_p10 = pnand %p8283_p6, %p9015_p13  ;;  %s295_s8 = int_to_ptr.vmem [resolvable:$true] %s294_s8 }
  0x52   : > { %s284_s22 = scalar_lea.sflag [#allocation5], %s283_s20  ;;  %s8686_s12 = scalar_lea.vmem %s295_s8, 4096 }
  0x53   : > { %p8675_p9 = pneg %p9040_p10  ;;  %p8687_p12 = scmp.ne.s32.totalorder %s295_s8, %s8686_s12 }
  0x54   : > { %s8836_s1 = smov [#allocation4]  }
  0x55   : > { %p8689_p2 = pnand %p8687_p12, %p8675_p9  ;;  %s8691_s5 = sshll.u32 %s8836_s1, 4  ;;  %s8692_s5 = int_to_ptr.vmem [resolvable:$false] %s8691_s5 }
  0x56   : > { %s8693_s7 = scalar_lea.vmem %s8692_s5, 8192  ;;  %p8694_p3 = scmp.lt.s32.totalorder %s295_s8, %s8692_s5 }
  0x57   : > { %p8690_p1 = pneg %p8689_p2  ;;  %p8695_p7 = scmp.lt.s32.totalorder %s8693_s7, %s8686_s12 }
  0x59   : > { %p8696_p0 = por %p8695_p7, %p8694_p3 }
  0x5b   : > { %p8697_p4 = pnand %p8696_p0, %p8690_p1 }
  0x5d   : > { %8700 = shalt.err (!%p8697_p4)
}
  0x5e   : > { %s8837_s17 = smov 128   ;;  %s8838_s13 = smov 8  }
  0x5f   : > { %8275 = dma.hbm_to_vmem [thread:$0]  (!%p9040_p10), %s293_s9, 4096, %s295_s8, %s284_s22, %s8837_s17, %s8837_s17, %s8838_s13  }
  0x60   : > { %306 = sbr.rel (%p8965_p11) target bundleno = 1099 (0x44b), region = 48 }
  0x65   : > { %s308_s20 = sand.u32 1, %s8805_s28   ;;  %p11469_p6 = scmp.ne.s32.totalorder %s11454_s16, 0 }
  0x66   : > { %s7013_s23 = sshll.u32 %s308_s20, 8  ;;  %s309_s15 = scalar_lea.sflag [#allocation5], %s308_s20 }
  0x67   : > { %s9051_s18 = scalar_lea.vmem [#allocation4], %s7013_s23 }
  0x68   : > { %8772 = dma.done.wait (%p11469_p6), %s309_s15, 4096  }
  0x69   : > { %8774 = vsyncadd (%p11469_p6), %s309_s15, 4294963200  ;;  %p11470_p13 = scmp.ne.s32.totalorder %s11453_s14, 0 }
  0x6b   : > { %8776 = dma.done.wait (%p11470_p13), [#allocation8], 18432  }
  0x6c   : > { %8778 = vsyncadd (%p11470_p13), [#allocation8], 4294948864 }
  0x6d   : > { %8780 = dma.done.wait (%p11470_p13), [#allocation11], 1024  }
  0x6e   : > { %8782 = vsyncadd (%p11470_p13), [#allocation11], 4294966272  ;;  %s352_s8 = sand.u32 1, %s8793_s25   ;;  %v8387_v0 = vld [vmem:[#allocation7 + $0xf8] sm:$0xff]   ;;  %v8389_v2 = vld [vmem:[#allocation7 + $0xf0] sm:$0xff]   ;;  %s9071_s14 = sshll.u32 %s8813_s30, 3 }
  0x6f   : > { %s9068_s9 = sshll.u32 %s352_s8, 7  ;;  %v8388_v1 = vld [vmem:[#allocation7 + $0xb8] sm:$0xff]   ;;  %7520 = vmatprep.subr.bf16.mxu0 %v8387_v0  ;;  %v8390_v3 = vld [vmem:[#allocation7 + $0xb0] sm:$0xff]   ;;  %v8393_v6 = vld [vmem:[#allocation7 + $0xe8] sm:$0xff]   ;;  %vm360_vm0 = vsmask.f32 256 }
  0x70   : > { %7521 = vmatpush3.bf16.msra.mxu0 %v8388_v1  ;;  %v8391_v4 = vld [vmem:[#allocation7 + $0x78] sm:$0xff]   ;;  %v8394_v7 = vld [vmem:[#allocation7 + $0xa8] sm:$0xff]   ;;  %v8395_v8 = vld [vmem:[#allocation7 + $0x70] sm:$0xff]   ;;  %s9074_s16 = sadd.s32 4294967295, %s9071_s14  ;;  %vm359_vm1 = vcmask 1040384   ;;  %s9080_s19 = sadd.s32 4294967294, %s9071_s14 }
  0x71   : > { %7522 = vmatprep.subr.bf16.mxu0 %v8389_v2  ;;  %v8392_v5 = vld [vmem:[#allocation7 + $0x38] sm:$0xff]   ;;  %7596 = vmatprep.subr.bf16.mxu1 %v8391_v4  ;;  %v8396_v9 = vld [vmem:[#allocation7 + $0x30] sm:$0xff]   ;;  %v8397_v10 = vld [vmem:[#allocation7 + $0xe0] sm:$0xff]   ;;  %p786_p11 = scmp.gt.s32.totalorder %s9074_s16, 0  ;;  %p728_p5 = scmp.ge.s32.totalorder %s9074_s16, 1  ;;  %v11471_v23 = vmov 0 }
  0x72   : > { %7597 = vmatpush3.bf16.msra.mxu1 %v8392_v5  ;;  %v8398_v11 = vld [vmem:[#allocation7 + $0xa0] sm:$0xff]   ;;  %v8399_v12 = vld [vmem:[#allocation7 + $0x68] sm:$0xff]   ;;  %v8401_v14 = vld [vmem:[#allocation7 + $0xd8] sm:$0xff]   ;;  %p7046_p8 = scmp.lt.s32.totalorder %s9074_s16, 15  ;;  %vm398_vm2 = vsmask.f32 7938 }
  0x73   : > { %7598 = vmatprep.subr.bf16.mxu1 %v8395_v8  ;;  %v8400_v13 = vld [vmem:[#allocation7 + $0x28] sm:$0xff]   ;;  %v8402_v15 = vld [vmem:[#allocation7 + $0x98] sm:$0xff]   ;;  %v8403_v16 = vld [vmem:[#allocation7 + $0x60] sm:$0xff]   ;;  %s787_s27 = scalar_select %p786_p11, %s9074_s16, 0  ;;  %v11476_v32 = vmov 0  ;;  %vm665_vm5 = vcmask 1043456  }
  0x74   : > { %7523 = vmatpush3.bf16.msra.mxu0 %v8390_v3  ;;  %v8404_v17 = vld [vmem:[#allocation7 + $0x20] sm:$0xff]   ;;  %v8405_v18 = vld [vmem:[#allocation7 + $0xd0] sm:$0xff]   ;;  %p790_p10 = scmp.ge.s32.totalorder %s9071_s14, 1  ;;  %v8407_v20 = vld [vmem:[#allocation7 + $0x58] sm:$0xff]   ;;  %p724_p9 = scmp.gt.s32.totalorder %s9080_s19, 0  ;;  %v11479_v3 = vmov 0 }
  0x75   : > { %7524 = vmatprep.subr.bf16.mxu0 %v8393_v6  ;;  %v8406_v19 = vld [vmem:[#allocation7 + $0x90] sm:$0xff]   ;;  %v8408_v21 = vld [vmem:[#allocation7 + $0x18] sm:$0xff]   ;;  %p791_p12 = scmp.le.s32.totalorder %s9071_s14, 16  ;;  %v8409_v22 = vld [vmem:[#allocation7 + $0xc8] sm:$0xff]   ;;  %s11541_s27 = smov (!%p7046_p8, %s787_s27), 15  ;;  %vm1413_vm9 = vcmask 1042432  }
  0x76   : > { %7599 = vmatpush3.bf16.msra.mxu1 %v8396_v9  ;;  %vm9088_vm3 = vmand %vm359_vm1, %vm360_vm0  ;;  %v8410_v24 = vld [vmem:[#allocation7 + $0x88] sm:$0xff]   ;;  %p7037_p2 = scmp.lt.s32.totalorder %s9080_s19, 15  ;;  %v8411_v25 = vld [vmem:[#allocation7 + $0x50] sm:$0xff]   ;;  %p729_p1 = scmp.le.s32.totalorder %s9074_s16, 16  ;;  %vm502_vm6 = vsmask.f32 4368 }
  0x77   : > { %7600 = vmatprep.subr.bf16.mxu1 %v8399_v12  ;;  %v11472_v23 = vsel %vm9088_vm3, 4294967295, %v11471_v23  ;;  %s725_s24 = scalar_select %p724_p9, %s9080_s19, 0  ;;  %v8412_v26 = vld [vmem:[#allocation7 + $0x10] sm:$0xff]   ;;  %v8413_v27 = vld [vmem:[#allocation7 + $0xc0] sm:$0xff]   ;;  %v8415_v29 = vld [vmem:[#allocation7 + $0x48] sm:$0xff]   ;;  %v11482_v9 = vmov 0 }
  0x78   : > { %7525 = vmatpush3.bf16.msra.mxu0 %v8394_v7  ;;  %11473 = vst [vmem:[#allocation24_spill] sm:$0xff] %v11472_v23  ;;  %p9103_p3 = pnand %p791_p12, %p790_p10  ;;  %s7052_s12 = sshll.u32 %s11541_s27, 4  ;;  %v8414_v28 = vld [vmem:[#allocation7 + $0x80] sm:$0xff]   ;;  %v8416_v30 = vld [vmem:[#allocation7 + $0x8] sm:$0xff]   ;;  %vm9123_vm4 = vmand %vm359_vm1, %vm398_vm2  ;;  %vm1414_vm10 = vcmask 1046532  }
  0x79   : > { %7526 = vmatprep.subr.bf16.mxu0 %v8397_v10  ;;  %s7474_s1 = sshll.u32 %s8813_s30, 7  ;;  %s11543_s24 = smov (!%p7037_p2, %s725_s24), 15  ;;  %v365_v31 = vld [vmem:[#allocation2 + $0xc] sm:$0x1]  ;;  %v11477_v32 = vsel %vm9123_vm4, 4294967295, %v11476_v32  ;;  %v8418_v36 = vld [vmem:[#allocation7 + $0x178] sm:$0xff]   ;;  %vm9175_vm7 = vmor %vm360_vm0, %vm502_vm6 }
  0x7a   : > { %7601 = vmatpush3.bf16.msra.mxu1 %v8400_v13  ;;  %p9117_p7 = pnand %p729_p1, %p728_p5  ;;  %11478 = vst [vmem:[#allocation25_spill] sm:$0xff] %v11477_v32  ;;  %v403_v33 = vld [vmem:[#allocation2 + $0x14] sm:$0x1]  ;;  %v366_v34 = vsel %vm9088_vm3, 0, %v365_v31  ;;  %s807_s17 = scalar_lea.vmem %s9051_s18, %s7052_s12 [#allocation4]  ;;  %v362_v37 = vld [vmem:[#allocation2] sm:$0x1]  ;;  %vm9183_vm8 = vmand %vm665_vm5, %vm398_vm2 }
  0x7b   : > { %7602 = vmatprep.subr.bf16.mxu1 %v8403_v16  ;;  %s7051_s7 = scalar_select %p9103_p3, 0, 1  ;;  %v404_v35 = vsel %vm9123_vm4, 0, %v403_v33  ;;  %367 = vst [vmem:[#allocation2 + $0xc] sm:$0x1] %v366_v34  ;;  %v363_v38 = vsel %vm9088_vm3, 0, %v362_v37  ;;  %vm9233_vm11 = vmor %vm1413_vm9, %vm1414_vm10 }
  0x7c   : > { %7527 = vmatpush3.bf16.msra.mxu0 %v8398_v11  ;;  %s9135_s13 = scalar_lea.vmem %s9051_s18, %s7474_s1 [#allocation4]  ;;  %405 = vst [vmem:[#allocation2 + $0x14] sm:$0x1] %v404_v35  ;;  %s7043_s23 = sshll.u32 %s11543_s24, 4  ;;  %v400_v39 = vld [vmem:[#allocation2 + $0x8] sm:$0x1]  ;;  %v808_v42 = vld [vmem:[%s807_s17] sm:$0xff] }
  0x7d   : > { %7528 = vmatprep.subr.bf16.mxu0 %v8401_v14  ;;  %s9137_s20 = scvt.s32.f32 %s7051_s7  ;;  %364 = vst [vmem:[#allocation2] sm:$0x1] %v363_v38  ;;  %v401_v40 = vsel %vm9123_vm4, 0, %v400_v39  ;;  %v8420_v41 = vld [vmem:[#allocation7 + $0x40] sm:$0xff]   ;;  %s745_s12 = scalar_lea.vmem %s9051_s18, %s7043_s23 [#allocation4]  ;;  %v368_v45 = vld [vmem:[#allocation2 + $0x18] sm:$0x1] }
  0x7e   : > { %7603 = vmatpush3.bf16.msra.mxu1 %v8404_v17  ;;  %s7042_s15 = scalar_select %p9117_p7, 0, 1  ;;  %402 = vst [vmem:[#allocation2 + $0x8] sm:$0x1] %v401_v40  ;;  %v809_v43 = vld [vmem:[%s807_s17 + $0x8] sm:$0xff]  ;;  %v438_v46 = vld [vmem:[%s9135_s13] sm:$0xff] }
  0x7f   : > { %7604 = vmatprep.subr.bf16.mxu1 %v8407_v20  ;;  %p797_p0 = scmp.ne.f32.partialorder %s9137_s20, %s9137_s20  ;;  %s798_s16 = sshrl.u32 %s9137_s20, 16  ;;  %v8421_v44 = vld [vmem:[#allocation7] sm:$0xff]   ;;  %v369_v47 = vsel %vm9088_vm3, 0, %v368_v45  ;;  %v7475_v49 = vpack.c.bf16 %v438_v46, %v438_v46  ;;  %v810_v53 = vpack.c.bf16 %v809_v43, %v808_v42  ;;  %v746_v56 = vld [vmem:[%s745_s12] sm:$0xff]  ;;  %v440_v1 = vld [vmem:[%s9135_s13 + $0x10] sm:$0xff]  ;;  %v11480_v3 = vsel %vm9175_vm7, 4294967295, %v11479_v3 }
  0x80   : > { %7529 = vmatpush3.bf16.msra.mxu0 %v8402_v15  ;;  %s799_s19 = sand.u32 1, %s798_s16  ;;  %s9149_s27 = scvt.s32.f32 %s7042_s15  ;;  %v439_v48 = vld [vmem:[%s9135_s13 + $0x8] sm:$0xff]  ;;  %370 = vst [vmem:[#allocation2 + $0x18] sm:$0x1] %v369_v47  ;;  %v371_v60 = vld [vmem:[#allocation2 + $0x24] sm:$0x1]  ;;  %v7477_v7 = vpack.c.bf16 %v440_v1, %v440_v1 }
  0x81   : > { %7530 = vmatprep.subr.bf16.mxu0 %v8405_v18  ;;  %s800_s24 = sadd.s32 32767, %s799_s19  ;;  %v7476_v50 = vpack.c.bf16 %v439_v48, %v439_v48  ;;  %v505_v51 = vshrl.u32 %v7475_v49, 16  ;;  %v508_v52 = vshll.u32 %v7475_v49, 16  ;;  %v747_v57 = vld [vmem:[%s745_s12 + $0x8] sm:$0xff]  ;;  %v372_v0 = vsel %vm9088_vm3, 0, %v371_v60  ;;  %v441_v2 = vld [vmem:[%s9135_s13 + $0x18] sm:$0xff] }
  0x82   : > { %7605 = vmatpush3.bf16.msra.mxu1 %v8408_v21  ;;  %s801_s22 = sadd.s32 %s800_s24, %s9137_s20  ;;  %s736_s5 = sshrl.u32 %s9149_s27, 16  ;;  %11481 = vst [vmem:[#allocation26_spill] sm:$0xff] %v11480_v3  ;;  %373 = vst [vmem:[#allocation2 + $0x24] sm:$0x1] %v372_v0  ;;  %v406_v8 = vld [vmem:[#allocation2 + $0x20] sm:$0x1]  ;;  %v748_v10 = vpack.c.bf16 %v747_v57, %v746_v56  ;;  %v7478_v12 = vpack.c.bf16 %v441_v2, %v441_v2 }
  0x83   : > { %7606 = vmatprep.subr.bf16.mxu1 %v8411_v25  ;;  %s802_s1 = sand.u32 4294901760, %s801_s22  ;;  %p735_p4 = scmp.ne.f32.partialorder %s9149_s27, %s9149_s27  ;;  %v513_v54 = vshrl.u32 %v7476_v50, 16  ;;  %v516_v55 = vshll.u32 %v7476_v50, 16  ;;  %v507_v58 = vrot.slane %v505_v51, 7  ;;  %v11483_v9 = vsel %vm9183_vm8, 4294967295, %v11482_v9 }
  0x84   : > { %7531 = vmatpush3.bf16.msra.mxu0 %v8406_v19  ;;  %s11545_s1 = smov (%p797_p0, %s802_s1), 2143289344  ;;  %s737_s7 = sand.u32 1, %s736_s5  ;;  %11484 = vst [vmem:[#allocation27_spill] sm:$0xff] %v11483_v9  ;;  %v407_v13 = vsel %vm9123_vm4, 0, %v406_v8  ;;  %v522_v18 = vshrl.u32 %v7477_v7, 16  ;;  %v525_v19 = vshll.u32 %v7477_v7, 16 }
  0x85   : > { %7532 = vmatprep.subr.bf16.mxu0 %v8409_v22  ;;  %s805_s17 = sshrl.u32 %s11545_s1, 16  ;;  %s738_s23 = sadd.s32 32767, %s737_s7  ;;  %v9164_v59 = vrot.slane %v513_v54, 7  ;;  %v510_v62 = vor.u32 %v508_v52, %v507_v58  ;;  %v511_v63 = vrot.slane %v507_v58, 4  ;;  %408 = vst [vmem:[#allocation2 + $0x20] sm:$0x1] %v407_v13 }
  0x86   : > { %7607 = vmatpush3.bf16.msra.mxu1 %v8412_v26  ;;  %s811_s20 = sshll.u32 %s805_s17, 16  ;;  %s739_s15 = sadd.s32 %s738_s23, %s9149_s27  ;;  %v530_v20 = vshrl.u32 %v7478_v12, 16  ;;  %v533_v21 = vshll.u32 %v7478_v12, 16  ;;  %v374_v22 = vld [vmem:[#allocation2 + $0x30] sm:$0x1]  ;;  %v524_v31 = vrot.slane %v522_v18, 7 }
  0x87   : > { %7608 = vmatprep.subr.bf16.mxu1 %v8415_v29  ;;  %s812_s16 = sor.u32 %s811_s20, %s805_s17  ;;  %s740_s19 = sand.u32 4294901760, %s739_s15  ;;  %v518_v5 = vor.u32 %v516_v55, %v9164_v59  ;;  %v520_v6 = vrot.slane %v9164_v59, 4  ;;  %v667_v11 = vld [vmem:[#allocation2 + $0x18] sm:$0xf]  ;;  %v846_v29 = vld [vmem:[#allocation2 + $0x14] sm:$0x1] }
  0x88   : > { %7533 = vmatpush3.bf16.msra.mxu0 %v8410_v24  ;;  %v813_v61 = vstv %s812_s16  ;;  %s11547_s19 = smov (%p735_p4, %s740_s19), 2143289344  ;;  %v668_v17 = vsel %vm9183_vm8, %v510_v62, %v667_v11  ;;  %v9193_v33 = vrot.slane %v530_v20, 7  ;;  %v375_v34 = vsel %vm9088_vm3, 0, %v374_v22  ;;  %s9211_s12 = sadd.s32 8, %s9071_s14  ;;  %v779_v60 = vld [vmem:[#allocation2] sm:$0xf] }
  0x89   : > { %7534 = vmatprep.subr.bf16.mxu0 %v8413_v27  ;;  %v815_v4 = vmul.bf16 %v813_v61, %v810_v53  ;;  %s743_s27 = sshrl.u32 %s11547_s19, 16  ;;  %v519_v16 = vsel %vm9175_vm7, %v511_v63, %v518_v5  ;;  %669 = vst [vmem:[#allocation2 + $0x18] sm:$0xf] %v668_v17  ;;  %376 = vst [vmem:[#allocation2 + $0x30] sm:$0x1] %v375_v34  ;;  %v527_v38 = vor.u32 %v525_v19, %v524_v31  ;;  %s9219_s1 = sadd.s32 9, %s9071_s14 }
  0x8a   : > { %7609 = vmatpush3.bf16.msra.mxu1 %v8416_v30  ;;  %s749_s24 = sshll.u32 %s743_s27, 16  ;;  %670 = vst [vmem:[#allocation2 + $0x1c] sm:$0xf] %v519_v16  ;;  %v528_v39 = vrot.slane %v524_v31, 4  ;;  %v535_v40 = vor.u32 %v533_v21, %v9193_v33  ;;  %v783_v61 = vld [vmem:[#allocation2 + $0x8] sm:$0x1] }
  0x8b   : > { %7610 = vmatprep.subr.bf16.mxu1 %v8420_v41  ;;  %v7053_v14 = vcombine.low %v815_v4, %v815_v4  ;;  %v7054_v15 = vcombine.high %v815_v4, %v815_v4  ;;  %s750_s22 = sor.u32 %s749_s24, %s743_s27  ;;  %v674_v41 = vld [vmem:[#allocation2 + $0x24] sm:$0xf]  ;;  %p851_p6 = scmp.gt.s32.totalorder %s9211_s12, 0  ;;  %v443_v12 = vld [vmem:[%s9135_s13 + $0x28] sm:$0xff]  ;;  %v444_v13 = vld [vmem:[%s9135_s13 + $0x30] sm:$0xff]  ;;  %v11485_v18 = vmov 0 }
  0x8c   : > { %7535 = vmatpush3.bf16.msra.mxu0 %v8414_v28  ;;  %v842_v28 = vld [vmem:[#allocation2 + $0xc] sm:$0xf]  ;;  %v751_v30 = vstv %s750_s22  ;;  %v536_v48 = vsel %vm9175_vm7, %v528_v39, %v535_v40  ;;  %v675_v49 = vsel %vm9183_vm8, %v527_v38, %v674_v41  ;;  %v671_v50 = vld [vmem:[#allocation2 + $0x20] sm:$0x1]  ;;  %v11486_v18 = vsel %vm9233_vm11, 4294967295, %v11485_v18  ;;  %p7055_p13 = scmp.lt.s32.totalorder %s9211_s12, 15 }
  0x8d   : > { %7672 = vmatprep.subr.bf16.mxu0 %v8418_v36  ;;  %v822_v24 = vshrl.u32 %v7053_v14, 16  ;;  %v825_v25 = vshll.u32 %v7053_v14, 16  ;;  %v830_v26 = vshrl.u32 %v7054_v15, 16  ;;  %v833_v27 = vshll.u32 %v7054_v15, 16  ;;  %676 = vst [vmem:[#allocation2 + $0x24] sm:$0xf] %v675_v49 }
  0x8e   : > { %7611 = vmatpush3.bf16.msra.mxu1 %v8421_v44  ;;  %v753_v37 = vmul.bf16 %v751_v30, %v748_v10  ;;  %677 = vst [vmem:[#allocation2 + $0x28] sm:$0xf] %v536_v48  ;;  %v672_v54 = vsel %vm9088_vm3, %v520_v6, %v671_v50  ;;  %v442_v6 = vld [vmem:[%s9135_s13 + $0x20] sm:$0xff]  ;;  %11487 = vst [vmem:[#allocation28_spill] sm:$0xff] %v11486_v18  ;;  %v9249_v34 = vpack.c.bf16 %v443_v12, %v443_v12  ;;  %vm1008_vm12 = vsmask.f32 3328 }
  0x8f   : > { %v824_v35 = vrot.slane %v822_v24, 7  ;;  %v832_v36 = vrot.slane %v830_v26, 7  ;;  %673 = vst [vmem:[#allocation2 + $0x20] sm:$0x1] %v672_v54  ;;  %v8436_v22 = vld [vmem:[#allocation7 + $0x1f8] sm:$0xff]   ;;  %v9247_v31 = vpack.c.bf16 %v442_v6, %v442_v6  ;;  %s852_s5 = scalar_select %p851_p6, %s9211_s12, 0 }
  0x90   : > { %v7044_v46 = vcombine.low %v753_v37, %v753_v37  ;;  %v7045_v47 = vcombine.high %v753_v37, %v753_v37  ;;  %v1385_v62 = vld [vmem:[#allocation2 + $0x18] sm:$0xe]  ;;  %7748 = vmatprep.subr.bf16.mxu1 %v8436_v22  ;;  %vm1009_vm13 = vsmask.f32 7440  ;;  %p855_p11 = scmp.ge.s32.totalorder %s9219_s1, 1  ;;  %p856_p5 = scmp.le.s32.totalorder %s9219_s1, 16 }
  0x91   : > { %v827_v42 = vor.u32 %v825_v25, %v824_v35  ;;  %v828_v43 = vrot.slane %v824_v35, 4  ;;  %v835_v44 = vor.u32 %v833_v27, %v832_v36  ;;  %v837_v45 = vrot.slane %v832_v36, 4  ;;  %v9213_v59 = vld [vmem:[#allocation2 + $0x1c] sm:$0xf]  ;;  %v9215_v63 = vld [vmem:[#allocation2 + $0x18] sm:$0xf]  ;;  %vm9321_vm14 = vmor %vm1008_vm12, %vm1009_vm13 }
  0x92   : > { %v760_v55 = vshrl.u32 %v7044_v46, 16  ;;  %v763_v56 = vshll.u32 %v7044_v46, 16  ;;  %v768_v57 = vshrl.u32 %v7045_v47, 16  ;;  %v771_v58 = vshll.u32 %v7045_v47, 16  ;;  %s11549_s5 = smov (!%p7055_p13, %s852_s5), 15  ;;  %p9376_p8 = pnand %p856_p5, %p855_p11 }
  0x93   : > { %v836_v51 = vsel %vm9175_vm7, %v828_v43, %v835_v44  ;;  %v843_v52 = vsel %vm9183_vm8, %v827_v42, %v842_v28  ;;  %v847_v53 = vsel %vm9088_vm3, %v837_v45, %v846_v29  ;;  %v1069_v0 = vshll.u32 %v9213_v59, 16  ;;  %v445_v28 = vld [vmem:[%s9135_s13 + $0x38] sm:$0xff]  ;;  %s7061_s24 = sshll.u32 %s11549_s5, 4  ;;  %p915_p1 = scmp.gt.s32.totalorder %s9219_s1, 0 }
  0x94   : > { %844 = vst [vmem:[#allocation2 + $0xc] sm:$0xf] %v843_v52  ;;  %845 = vst [vmem:[#allocation2 + $0x10] sm:$0xf] %v836_v51  ;;  %v762_v1 = vrot.slane %v760_v55, 7  ;;  %v770_v2 = vrot.slane %v768_v57, 7  ;;  %v9251_v35 = vpack.c.bf16 %v444_v13, %v444_v13  ;;  %v7075_v42 = vcombine.low %v9215_v63, %v9213_v59  ;;  %s872_s7 = scalar_lea.vmem %s9051_s18, %s7061_s24 [#allocation4] }
  0x95   : > { %848 = vst [vmem:[#allocation2 + $0x14] sm:$0x1] %v847_v53  ;;  %v1432_v4 = vrot.slane %v9213_v59, 5  ;;  %v1060_v5 = vshrl.u32 %v9215_v63, 16  ;;  %v7095_v7 = vrot.slane %v1385_v62, 9  ;;  %v1063_v8 = vshll.u32 %v9215_v63, 16 }
  0x96   : > { %v9226_v10 = vrot.slane %v1069_v0, 5  ;;  %v1073_v11 = vshrl.u32 %v9213_v59, 16  ;;  %v765_v14 = vor.u32 %v763_v56, %v762_v1  ;;  %v766_v15 = vrot.slane %v762_v1, 4  ;;  %v9269_v52 = vld [vmem:[#allocation2 + $0x20] sm:$0x1]  ;;  %p7064_p3 = scmp.lt.s32.totalorder %s9219_s1, 15 }
  0x97   : > { %v773_v16 = vor.u32 %v771_v58, %v770_v2  ;;  %v775_v17 = vrot.slane %v770_v2, 4  ;;  %v1062_v19 = vrot.slane %v1060_v5, 4  ;;  %v1065_v20 = vrot.slane %v1063_v8, 5  ;;  %s7060_s17 = scalar_select %p9376_p8, 0, 1 }
  0x98   : > { %v1075_v21 = vrot.slane %v1073_v11, 4  ;;  %v780_v25 = vsel %vm9183_vm8, %v765_v14, %v779_v60  ;;  %v537_v27 = vrot.slane %v9193_v33, 4  ;;  %v9245_v30 = vrot.slane %v1432_v4, 4  ;;  %p7286_p0 = scmp.ne.s32.totalorder %s9071_s14, 0 }
  0x99   : > { %v774_v24 = vsel %vm9175_vm7, %v766_v15, %v773_v16  ;;  %v784_v26 = vsel %vm9088_vm3, %v775_v17, %v783_v61  ;;  %781 = vst [vmem:[#allocation2] sm:$0xf] %v780_v25  ;;  %v9257_v39 = vsel %vm9233_vm11, %v7095_v7, %v1432_v4  ;;  %v1066_v40 = vor.u32 %v1065_v20, %v1062_v19  ;;  %s9482_s23 = scvt.s32.f32 %s7060_s17 }
  0x9a   : > { %782 = vst [vmem:[#allocation2 + $0x4] sm:$0xf] %v774_v24  ;;  %785 = vst [vmem:[#allocation2 + $0x8] sm:$0x1] %v784_v26  ;;  %v1076_v41 = vor.u32 %v1075_v21, %v9226_v10  ;;  %v539_v55 = vshrl.u32 %v9247_v31, 16  ;;  %v9274_v56 = vpack.c.bf16 %v445_v28, %v445_v28  ;;  %v1435_v0 = vrot.slane %v9269_v52, 5 }
  0x9b   : > { %v8417_v29 = vld [vmem:[#allocation2 + $0xc] sm:$0xff]   ;;  %v9286_v1 = vrot.slane %v1066_v40, 4  ;;  %v8419_v26 = vld [vmem:[#allocation7 + $0x138] sm:$0xff]   ;;  %s863_s20 = sshrl.u32 %s9482_s23, 16  ;;  %p862_p10 = scmp.ne.f32.partialorder %s9482_s23, %s9482_s23 }
  0x9c   : > { %v9253_v36 = vld [vmem:[#allocation2 + $0x10] sm:$0xf]  ;;  %v999_v37 = vld [vmem:[#allocation2 + $0x14] sm:$0x1]  ;;  %v1384_v38 = vld [vmem:[#allocation2 + $0xc] sm:$0xe]  ;;  %1766 = vmatprep.mubr.bf16.mxu0 %v8417_v29 }
  0x9d   : > { %v7094_v43 = vrot.slane %v1384_v38, 9  ;;  %v1425_v44 = vrot.slane %v9253_v36, 5  ;;  %v1428_v45 = vrot.slane %v999_v37, 5  ;;  %v9263_v46 = vld [vmem:[#allocation2 + $0xc] sm:$0xf]  ;;  %v1045_v47 = vshll.u32 %v9253_v36, 16 }
  0x9e   : > { %v1036_v48 = vshrl.u32 %v9263_v46, 16  ;;  %v1039_v49 = vshll.u32 %v9263_v46, 16  ;;  %v1049_v50 = vshrl.u32 %v9253_v36, 16  ;;  %v1055_v51 = vshll.u32 %v999_v37, 16  ;;  %s864_s15 = sand.u32 1, %s863_s20 }
  0x9f   : > { %v1427_v53 = vrot.slane %v1425_v44, 4  ;;  %v9271_v54 = vrot.slane %v1045_v47, 5  ;;  %v9281_v57 = vsel %vm9233_vm11, %v7094_v43, %v1425_v44  ;;  %v9288_v2 = vrot.slane %v1076_v41, 4  ;;  %v8424_v43 = vld [vmem:[#allocation7 + $0x170] sm:$0xff]   ;;  %s865_s16 = sadd.s32 32767, %s864_s15 }
  0xa0   : > { %v1038_v58 = vrot.slane %v1036_v48, 4  ;;  %v1041_v60 = vrot.slane %v1039_v49, 5  ;;  %v1051_v61 = vrot.slane %v1049_v50, 4  ;;  %v1057_v62 = vrot.slane %v1055_v51, 5  ;;  %v1383_v6 = vld [vmem:[#allocation2] sm:$0xe]  ;;  %s9571_s19 = sadd.s32 %s865_s16, %s9482_s23 }
  0xa1   : > { %v9290_v4 = vld [vmem:[#allocation2 + $0x4] sm:$0xf]  ;;  %v998_v5 = vld [vmem:[#allocation2 + $0x8] sm:$0x1]  ;;  %v9294_v7 = vsel %vm9233_vm11, %v1427_v53, %v1428_v45  ;;  %v7074_v12 = vcombine.low %v9263_v46, %v9253_v36  ;;  %v7093_v13 = vrot.slane %v1383_v6, 9  ;;  %v11488_v45 = vmov 0 }
  0xa2   : > { %v1042_v8 = vor.u32 %v1041_v60, %v1038_v58  ;;  %v1052_v11 = vor.u32 %v1051_v61, %v9271_v54  ;;  %v1418_v14 = vrot.slane %v9290_v4, 5  ;;  %v1421_v15 = vrot.slane %v998_v5, 5  ;;  %v9300_v16 = vld [vmem:[#allocation2] sm:$0xf]  ;;  %v8423_v48 = vld [vmem:[#allocation2 + $0x18] sm:$0xff]   ;;  %s867_s27 = sand.u32 4294901760, %s9571_s19 }
  0xa3   : > { %v1021_v17 = vshll.u32 %v9290_v4, 16  ;;  %v1012_v19 = vshrl.u32 %v9300_v16, 16  ;;  %v1015_v20 = vshll.u32 %v9300_v16, 16  ;;  %v1025_v21 = vshrl.u32 %v9290_v4, 16  ;;  %v409_v51 = vld [vmem:[#allocation2 + $0x2c] sm:$0x1] }
  0xa4   : > { %v1031_v22 = vshll.u32 %v998_v5, 16  ;;  %v1419_v24 = vsel %vm9233_vm11, %v7093_v13, %v1418_v14  ;;  %v1420_v25 = vrot.slane %v1418_v14, 4  ;;  %v7104_v29 = vcombine.low %v9281_v57, %v9294_v7  ;;  %v8425_v5 = vld [vmem:[#allocation7 + $0x130] sm:$0xff]   ;;  %v9340_v14 = vld [vmem:[#allocation2 + $0x28] sm:$0xf]  ;;  %s11551_s27 = smov (%p862_p10, %s867_s27), 2143289344 }
  0xa5   : > { %v1023_v28 = vrot.slane %v1021_v17, 5  ;;  %v1014_v37 = vrot.slane %v1012_v19, 4  ;;  %v1017_v38 = vrot.slane %v1015_v20, 5  ;;  %v1027_v40 = vrot.slane %v1025_v21, 4  ;;  %v8428_v17 = vld [vmem:[#allocation7 + $0x168] sm:$0xff]   ;;  %s870_s22 = sshrl.u32 %s11551_s27, 16 }
  0xa6   : > { %v7073_v41 = vcombine.low %v9300_v16, %v9290_v4  ;;  %v1422_v44 = vsel %vm9233_vm11, %v1420_v25, %v1421_v15  ;;  %v11489_v45 = vsel %vm9321_vm14, 4294967295, %v11488_v45  ;;  %v1033_v47 = vrot.slane %v1031_v22, 5  ;;  %v9353_v25 = vld [vmem:[#allocation2 + $0x24] sm:$0xe]  ;;  %v8434_v16 = vld [vmem:[#allocation7 + $0x120] sm:$0xff]   ;;  %s9670_s5 = sshll.u32 %s870_s22, 16 }
  0xa7   : > { %11490 = vst [vmem:[#allocation29_spill] sm:$0xff] %v11489_v45  ;;  %v1043_v49 = vrot.slane %v1042_v8, 4  ;;  %v1053_v50 = vrot.slane %v1052_v11, 4  ;;  %v7103_v53 = vcombine.low %v1419_v24, %v1422_v44  ;;  %v1018_v58 = vor.u32 %v1017_v38, %v1014_v37  ;;  %v8429_v37 = vld [vmem:[#allocation7 + $0x128] sm:$0xff]   ;;  %s9729_s17 = sor.u32 %s9670_s5, %s870_s22  ;;  %s914_s23 = sadd.s32 10, %s9071_s14 }
  0xa8   : > { %v1028_v60 = vor.u32 %v1027_v40, %v1023_v28  ;;  %v9328_v61 = vsel %vm9233_vm11, %v9245_v30, %v1435_v0  ;;  %v1072_v8 = vsel %vm9321_vm14, %v9286_v1, %v9226_v10  ;;  %v1079_v11 = vshll.u32 %v9269_v52, 16  ;;  %v9345_v10 = vld [vmem:[#allocation2 + $0x24] sm:$0xf]  ;;  %p9974_p9 = scmp.ge.s32.totalorder %s914_s23, 1  ;;  %p9978_p12 = scmp.le.s32.totalorder %s914_s23, 16 }
  0xa9   : > { %v1048_v6 = vsel %vm9321_vm14, %v1043_v49, %v9271_v54  ;;  %v1058_v13 = vsel %vm9321_vm14, %v1053_v50, %v1057_v62  ;;  %1767 = vmatmul.mubr.bf16.vlgmr.msra.gmra.mxu0 %v7103_v53  ;;  %v1019_v30 = vrot.slane %v1018_v58, 4  ;;  %v541_v19 = vrot.slane %v539_v55, 7  ;;  %v681_v55 = vld [vmem:[#allocation2 + $0x30] sm:$0xf]  ;;  %v8437_v40 = vld [vmem:[#allocation7 + $0x1b8] sm:$0xff]   ;;  %v8433_v49 = vld [vmem:[#allocation7 + $0x160] sm:$0xff]  }
  0xaa   : > { %v1029_v0 = vrot.slane %v1028_v60, 4  ;;  %v7084_v15 = vcombine.low %v1048_v6, %v1058_v13  ;;  %7673 = vmatpush3.bf16.msra.mxu0 %v8419_v26  ;;  %1774 = vmatprep.mubr.bf16.mxu0 %v8423_v48  ;;  %v1081_v54 = vrot.slane %v1079_v11, 5  ;;  %v542_v62 = vshll.u32 %v9247_v31, 16  ;;  %v377_v31 = vld [vmem:[#allocation2 + $0x3c] sm:$0x1]  ;;  %p921_p2 = pnand %p9978_p12, %p9974_p9 }
  0xab   : > { %v547_v20 = vshrl.u32 %v9249_v34, 16  ;;  %v550_v21 = vshll.u32 %v9249_v34, 16  ;;  %v1024_v52 = vsel %vm9321_vm14, %v1019_v30, %v1023_v28  ;;  %7674 = vmatprep.subr.bf16.mxu0 %v8424_v43  ;;  %v545_v22 = vrot.slane %v541_v19, 4  ;;  %v8443_v50 = vld [vmem:[#allocation7 + $0x1f0] sm:$0xff]   ;;  %v380_v13 = vld [vmem:[#allocation2 + $0x48] sm:$0x1] }
  0xac   : > { %v1034_v1 = vsel %vm9321_vm14, %v1029_v0, %v1033_v47  ;;  %v410_v24 = vsel %vm9123_vm4, 0, %v409_v51  ;;  %v1082_v34 = vsel %vm9321_vm14, %v9288_v2, %v1081_v54  ;;  %v544_v38 = vor.u32 %v542_v62, %v541_v19  ;;  %v412_v2 = vld [vmem:[#allocation2 + $0x38] sm:$0x1]  ;;  %v8427_v51 = vld [vmem:[#allocation2 + $0x24] sm:$0xff]   ;;  %s7069_s16 = scalar_select %p921_p2, 0, 1 }
  0xad   : > { %v7083_v26 = vcombine.low %v1024_v52, %v1034_v1  ;;  %v9358_v28 = vrot.slane %v547_v20, 7  ;;  %411 = vst [vmem:[#allocation2 + $0x2c] sm:$0x1] %v410_v24  ;;  %v7105_v43 = vcombine.low %v9257_v39, %v9328_v61  ;;  %v9362_v44 = vcombine.low %v1072_v8, %v1082_v34  ;;  %v446_v8 = vld [vmem:[%s9135_s13 + $0x40] sm:$0xff]  ;;  %v447_v19 = vld [vmem:[%s9135_s13 + $0x48] sm:$0xff]  ;;  %v8444_v54 = vld [vmem:[#allocation7 + $0x1b0] sm:$0xff]  }
  0xae   : > { %v1439_v47 = vrot.slane %v9340_v14, 5  ;;  %v1084_v48 = vshrl.u32 %v9345_v10, 16  ;;  %7675 = vmatpush3.bf16.msra.mxu0 %v8425_v5  ;;  %v682_v58 = vsel %vm9183_vm8, %v544_v38, %v681_v55  ;;  %v7096_v60 = vrot.slane %v9353_v25, 9  ;;  %s10028_s19 = scvt.s32.f32 %s7069_s16 }
  0xaf   : > { %1975 = vmatprep.mubr.bf16.mxu1 %v7083_v26  ;;  %v552_v53 = vor.u32 %v550_v21, %v9358_v28  ;;  %v1087_v6 = vshll.u32 %v9345_v10, 16  ;;  %7676 = vmatprep.subr.bf16.mxu0 %v8428_v17  ;;  %v554_v5 = vrot.slane %v9358_v28, 4  ;;  %683 = vst [vmem:[#allocation2 + $0x30] sm:$0xf] %v682_v58  ;;  %v1093_v0 = vshll.u32 %v9340_v14, 16  ;;  %v8450_v17 = vld [vmem:[#allocation7 + $0x1e8] sm:$0xff]  }
  0xb0   : > { %1976 = vmatmul.mubr.bf16.vlgmr.msra.gmra.mxu1 %v7073_v41  ;;  %v9386_v11 = vrot.slane %v1439_v47, 4  ;;  %v1086_v30 = vrot.slane %v1084_v48, 4  ;;  %v1097_v4 = vshrl.u32 %v9340_v14, 16  ;;  %v378_v41 = vsel %vm9088_vm3, 0, %v377_v31  ;;  %s927_s27 = sshrl.u32 %s10028_s19, 16  ;;  %p926_p7 = scmp.ne.f32.partialorder %s10028_s19, %s10028_s19 }
  0xb1   : > { %1983 = vmatprep.mubr.bf16.mxu1 %v7084_v15  ;;  %v553_v62 = vsel %vm9175_vm7, %v545_v22, %v552_v53  ;;  %v1089_v20 = vrot.slane %v1087_v6, 5  ;;  %7749 = vmatpush3.bf16.msra.mxu1 %v8437_v40  ;;  %v9398_v21 = vrot.slane %v1093_v0, 5  ;;  %379 = vst [vmem:[#allocation2 + $0x3c] sm:$0x1] %v378_v41  ;;  %v556_v15 = vshrl.u32 %v9251_v35, 16  ;;  %s10042_s24 = sand.u32 1, %s927_s27 }
  0xb2   : > { %1775 = vmatmul.mubr.bf16.gmra.mxu0 %v7104_v29  ;;  %684 = vst [vmem:[#allocation2 + $0x34] sm:$0xf] %v553_v62  ;;  %v559_v52 = vshll.u32 %v9251_v35, 16  ;;  %v564_v1 = vshrl.u32 %v9274_v56, 16  ;;  %7750 = vmatprep.subr.bf16.mxu1 %v8443_v50  ;;  %v1099_v55 = vrot.slane %v1097_v4, 4  ;;  %v567_v57 = vshll.u32 %v9274_v56, 16 }
  0xb3   : > { %1782 = vmatprep.mubr.bf16.mxu0 %v8427_v51  ;;  %7677 = vmatpush3.bf16.msra.mxu0 %v8429_v37  ;;  %v1090_v22 = vor.u32 %v1089_v20, %v1086_v30  ;;  %v413_v7 = vsel %vm9123_vm4, 0, %v412_v2  ;;  %v8440_v29 = vld [vmem:[#allocation7 + $0x158] sm:$0xff]   ;;  %v558_v35 = vrot.slane %v556_v15, 7  ;;  %v381_v26 = vsel %vm9088_vm3, 0, %v380_v13  ;;  %v448_v37 = vld [vmem:[%s9135_s13 + $0x50] sm:$0xff]  ;;  %v449_v56 = vld [vmem:[%s9135_s13 + $0x58] sm:$0xff] }
  0xb4   : > { %v678_v24 = vld [vmem:[#allocation2 + $0x2c] sm:$0x1]  ;;  %7678 = vmatprep.subr.bf16.mxu0 %v8433_v49  ;;  %v9408_v31 = vrot.slane %v564_v1, 7  ;;  %414 = vst [vmem:[#allocation2 + $0x38] sm:$0x1] %v413_v7  ;;  %v9412_v34 = vpack.c.bf16 %v446_v8, %v446_v8  ;;  %v1100_v48 = vor.u32 %v1099_v55, %v9398_v21  ;;  %v9423_v49 = vpack.c.bf16 %v447_v19, %v447_v19  ;;  %v8441_v2 = vld [vmem:[#allocation7 + $0x118] sm:$0xff]  }
  0xb5   : > { %v679_v38 = vsel %vm9088_vm3, %v537_v27, %v678_v24  ;;  %v9420_v40 = vrot.slane %v1090_v22, 4  ;;  %382 = vst [vmem:[#allocation2 + $0x48] sm:$0x1] %v381_v26  ;;  %7751 = vmatpush3.bf16.msra.mxu1 %v8444_v54  ;;  %v450_v50 = vld [vmem:[%s9135_s13 + $0x60] sm:$0xff]  ;;  %v8451_v51 = vld [vmem:[#allocation7 + $0x1a8] sm:$0xff]   ;;  %v561_v53 = vor.u32 %v559_v52, %v558_v35  ;;  %v562_v58 = vrot.slane %v558_v35, 4 }
  0xb6   : > { %680 = vst [vmem:[#allocation2 + $0x2c] sm:$0x1] %v679_v38  ;;  %v569_v6 = vor.u32 %v567_v57, %v9408_v31  ;;  %v571_v33 = vrot.slane %v9408_v31, 4  ;;  %v8446_v27 = vld [vmem:[#allocation7 + $0x150] sm:$0xff]   ;;  %7752 = vmatprep.subr.bf16.mxu1 %v8450_v17  ;;  %v9434_v13 = vsel %vm9233_vm11, %v7096_v60, %v1439_v47  ;;  %v9436_v8 = vrot.slane %v1100_v48, 4  ;;  %v451_v20 = vld [vmem:[%s9135_s13 + $0x68] sm:$0xff] }
  0xb7   : > { %v7076_v30 = vcombine.low %v9345_v10, %v9340_v14  ;;  %7679 = vmatpush3.bf16.msra.mxu0 %v8434_v16  ;;  %v9440_v0 = vld [vmem:[#allocation2 + $0x30] sm:$0xe]  ;;  %v573_v19 = vshrl.u32 %v9412_v34, 16  ;;  %v576_v54 = vshll.u32 %v9412_v34, 16  ;;  %v581_v62 = vshrl.u32 %v9423_v49, 16  ;;  %v8447_v17 = vld [vmem:[#allocation7 + $0x110] sm:$0xff]  }
  0xb8   : > { %1984 = vmatmul.mubr.bf16.gmra.mxu1 %v7074_v12  ;;  %v570_v25 = vsel %vm9175_vm7, %v562_v58, %v569_v6  ;;  %v7097_v47 = vrot.slane %v9440_v0, 9  ;;  %v9449_v60 = vld [vmem:[#allocation2 + $0x30] sm:$0xf]  ;;  %7680 = vmatprep.subr.bf16.mxu0 %v8440_v29  ;;  %v1096_v36 = vsel %vm9321_vm14, %v9420_v40, %v9398_v21  ;;  %v688_v46 = vld [vmem:[#allocation2 + $0x3c] sm:$0xf]  ;;  %v9460_v16 = vpack.c.bf16 %v448_v37, %v448_v37  ;;  %v8456_v57 = vld [vmem:[#allocation7 + $0x1e0] sm:$0xff]  }
  0xb9   : > { %1991 = vmatprep.mubr.bf16.mxu1 %v9362_v44  ;;  %v8431_v4 = vld [vmem:[#allocation2 + $0x30] sm:$0xff]   ;;  %691 = vst [vmem:[#allocation2 + $0x40] sm:$0xf] %v570_v25  ;;  %v1108_v12 = vshrl.u32 %v9449_v60, 16  ;;  %v9462_v41 = vpack.c.bf16 %v449_v56, %v449_v56  ;;  %7753 = vmatpush3.bf16.msra.mxu1 %v8451_v51  ;;  %v689_v44 = vsel %vm9183_vm8, %v561_v53, %v688_v46  ;;  %v1111_v52 = vshll.u32 %v9449_v60, 16  ;;  %v8457_v48 = vld [vmem:[#allocation7 + $0x1a0] sm:$0xff]  }
  0xba   : > { %1783 = vmatmul.mubr.bf16.gmra.mxu0 %v7105_v43  ;;  %v9469_v15 = vld [vmem:[#allocation2 + $0x34] sm:$0xf]  ;;  %v9472_v1 = vrot.slane %v573_v19, 7  ;;  %v9474_v22 = vpack.c.bf16 %v450_v50, %v450_v50  ;;  %690 = vst [vmem:[#allocation2 + $0x3c] sm:$0xf] %v689_v44  ;;  %v9489_v38 = vpack.c.bf16 %v451_v20, %v451_v20  ;;  %7754 = vmatprep.subr.bf16.mxu1 %v8456_v57  ;;  %v9495_v53 = vrot.slane %v581_v62, 7 }
  0xbb   : > { %v8452_v55 = vld [vmem:[#allocation7 + $0x148] sm:$0xff]   ;;  %1790 = vmatprep.mubr.bf16.mxu0 %v8431_v4  ;;  %v685_v7 = vld [vmem:[#allocation2 + $0x38] sm:$0x1]  ;;  %v1446_v39 = vrot.slane %v9469_v15, 5  ;;  %v1110_v61 = vrot.slane %v1108_v12, 4  ;;  %v1117_v43 = vshll.u32 %v9469_v15, 16  ;;  %7681 = vmatpush3.bf16.msra.mxu0 %v8441_v2 }
  0xbc   : > { %v1121_v29 = vshrl.u32 %v9469_v15, 16  ;;  %v415_v24 = vld [vmem:[#allocation2 + $0x44] sm:$0x1]  ;;  %v686_v35 = vsel %vm9088_vm3, %v554_v5, %v685_v7  ;;  %v1113_v26 = vrot.slane %v1111_v52, 5  ;;  %v578_v34 = vor.u32 %v576_v54, %v9472_v1  ;;  %v695_v37 = vld [vmem:[#allocation2 + $0x48] sm:$0xf]  ;;  %7682 = vmatprep.subr.bf16.mxu0 %v8446_v27 }
  0xbd   : > { %v383_v56 = vld [vmem:[#allocation2 + $0x54] sm:$0x1]  ;;  %v1001_v2 = vld [vmem:[#allocation2 + $0x2c] sm:$0x1]  ;;  %687 = vst [vmem:[#allocation2 + $0x38] sm:$0x1] %v686_v35  ;;  %7755 = vmatpush3.bf16.msra.mxu1 %v8457_v48  ;;  %v7077_v7 = vcombine.low %v9449_v60, %v9469_v15 }
  0xbe   : > { %v9491_v50 = vrot.slane %v1446_v39, 4  ;;  %v9493_v51 = vrot.slane %v1117_v43, 5  ;;  %v1123_v28 = vrot.slane %v1121_v29, 4  ;;  %v1442_v5 = vrot.slane %v1001_v2, 5  ;;  %v8460_v27 = vld [vmem:[#allocation7 + $0x1d8] sm:$0xff]   ;;  %v8453_v46 = vld [vmem:[#allocation7 + $0x108] sm:$0xff]  }
  0xbf   : > { %v1103_v58 = vshll.u32 %v1001_v2, 16  ;;  %v1114_v6 = vor.u32 %v1113_v26, %v1110_v61  ;;  %v579_v19 = vrot.slane %v9472_v1, 4  ;;  %v584_v54 = vshll.u32 %v9423_v49, 16  ;;  %7683 = vmatpush3.bf16.msra.mxu0 %v8447_v17  ;;  %v8459_v17 = vld [vmem:[#allocation7 + $0x140] sm:$0xff]   ;;  %7756 = vmatprep.subr.bf16.mxu1 %v8460_v27  ;;  %v8462_v2 = vld [vmem:[#allocation7 + $0x198] sm:$0xff]   ;;  %s929_s22 = sadd.s32 32767, %s10042_s24 }
  0xc0   : > { %v1124_v25 = vor.u32 %v1123_v28, %v9493_v51  ;;  %v588_v20 = vrot.slane %v9495_v53, 4  ;;  %v696_v4 = vsel %vm9183_vm8, %v578_v34, %v695_v37  ;;  %1992 = vmatmul.mubr.bf16.gmra.mxu1 %v7075_v42  ;;  %v1443_v62 = vsel %vm9233_vm11, %v9386_v11, %v1442_v5  ;;  %7684 = vmatprep.subr.bf16.mxu0 %v8452_v55  ;;  %v9518_v63 = vld [vmem:[#allocation2 + $0x40] sm:$0xf]  ;;  %v452_v11 = vld [vmem:[%s9135_s13 + $0x70] sm:$0xff]  ;;  %v8461_v29 = vld [vmem:[#allocation7 + $0x100] sm:$0xff]   ;;  %s10071_s5 = sadd.s32 %s929_s22, %s10028_s19  ;;  %s10603_s27 = scalar_lea.vmem [#allocation12], %s9068_s9 }
  0xc1   : > { %v1105_v12 = vrot.slane %v1103_v58, 5  ;;  %v9510_v44 = vrot.slane %v1114_v6, 4  ;;  %697 = vst [vmem:[#allocation2 + $0x48] sm:$0xf] %v696_v4  ;;  %v416_v49 = vsel %vm9123_vm4, 0, %v415_v24  ;;  %v7106_v52 = vcombine.low %v9434_v13, %v1443_v62  ;;  %v8435_v55 = vld [vmem:[#allocation2 + $0x3c] sm:$0xff]   ;;  %7757 = vmatpush3.bf16.msra.mxu1 %v8462_v2 }
  0xc2   : > { %v9515_v1 = vrot.slane %v1124_v25, 4  ;;  %v586_v59 = vor.u32 %v584_v54, %v9495_v53  ;;  %417 = vst [vmem:[#allocation2 + $0x44] sm:$0x1] %v416_v49  ;;  %v384_v42 = vsel %vm9088_vm3, 0, %v383_v56  ;;  %v1447_v13 = vsel %vm9233_vm11, %v7097_v47, %v1446_v39  ;;  %v1388_v61 = vld [vmem:[#allocation2 + $0x3c] sm:$0xe] }
  0xc3   : > { %v1106_v57 = vsel %vm9321_vm14, %v9436_v8, %v1105_v12  ;;  %v1453_v43 = vrot.slane %v9518_v63, 5  ;;  %385 = vst [vmem:[#allocation2 + $0x54] sm:$0x1] %v384_v42  ;;  %1791 = vmatmul.mubr.bf16.gmra.mxu0 %v7106_v52  ;;  %v7098_v24 = vrot.slane %v1388_v61, 9  ;;  %v9540_v47 = vld [vmem:[#allocation2 + $0x3c] sm:$0xf] }
  0xc4   : > { %v7086_v8 = vcombine.low %v1096_v36, %v1106_v57  ;;  %v587_v0 = vsel %vm9175_vm7, %v579_v19, %v586_v59  ;;  %v1141_v39 = vshll.u32 %v9518_v63, 16  ;;  %1798 = vmatprep.mubr.bf16.mxu0 %v8435_v55  ;;  %v1002_v35 = vld [vmem:[#allocation2 + $0x38] sm:$0x1]  ;;  %v1132_v34 = vshrl.u32 %v9540_v47, 16  ;;  %7685 = vmatpush3.bf16.msra.mxu0 %v8453_v46  ;;  %v418_v6 = vld [vmem:[#allocation2 + $0x50] sm:$0x1] }
  0xc5   : > { %698 = vst [vmem:[#allocation2 + $0x4c] sm:$0xf] %v587_v0  ;;  %v9543_v26 = vrot.slane %v1453_v43, 4  ;;  %v1135_v37 = vshll.u32 %v9540_v47, 16  ;;  %v1145_v21 = vshrl.u32 %v9518_v63, 16  ;;  %v1449_v40 = vrot.slane %v1002_v35, 5  ;;  %7686 = vmatprep.subr.bf16.mxu0 %v8459_v17 }
  0xc6   : > { %1999 = vmatprep.mubr.bf16.mxu1 %v7086_v8  ;;  %v1120_v36 = vsel %vm9321_vm14, %v9510_v44, %v9493_v51  ;;  %v1127_v56 = vshll.u32 %v1002_v35, 16  ;;  %v9552_v48 = vrot.slane %v1141_v39, 5  ;;  %v1134_v28 = vrot.slane %v1132_v34, 4  ;;  %v386_v55 = vld [vmem:[#allocation2 + $0x60] sm:$0x1] }
  0xc7   : > { %v1137_v5 = vrot.slane %v1135_v37, 5  ;;  %v1147_v58 = vrot.slane %v1145_v21, 4  ;;  %v9554_v19 = vpack.c.bf16 %v452_v11, %v452_v11  ;;  %v1450_v27 = vsel %vm9233_vm11, %v9491_v50, %v1449_v40  ;;  %v421_v0 = vld [vmem:[#allocation2 + $0x5c] sm:$0x1] }
  0xc8   : > { %v1129_v25 = vrot.slane %v1127_v56, 5  ;;  %v590_v51 = vshrl.u32 %v9460_v16, 16  ;;  %v593_v54 = vshll.u32 %v9460_v16, 16  ;;  %2000 = vmatmul.mubr.bf16.gmra.mxu1 %v7076_v30  ;;  %v7107_v4 = vcombine.low %v1447_v13, %v1450_v27  ;;  %v9568_v50 = vld [vmem:[#allocation2 + $0x48] sm:$0xe]  ;;  %7687 = vmatpush3.bf16.msra.mxu0 %v8461_v29 }
  0xc9   : > { %v692_v46 = vld [vmem:[#allocation2 + $0x44] sm:$0x1]  ;;  %v1138_v62 = vor.u32 %v1137_v5, %v1134_v28  ;;  %v1148_v12 = vor.u32 %v1147_v58, %v9552_v48  ;;  %v598_v44 = vshrl.u32 %v9462_v41, 16  ;;  %v601_v16 = vshll.u32 %v9462_v41, 16  ;;  %v9581_v17 = vld [vmem:[#allocation2 + $0x48] sm:$0xf] }
  0xca   : > { %v1130_v14 = vsel %vm9321_vm14, %v9515_v1, %v1129_v25  ;;  %v693_v10 = vsel %vm9088_vm3, %v571_v33, %v692_v46  ;;  %v592_v30 = vrot.slane %v590_v51, 7  ;;  %v702_v49 = vld [vmem:[#allocation2 + $0x54] sm:$0xf]  ;;  %v9587_v59 = vsel %vm9233_vm11, %v7098_v24, %v1453_v43  ;;  %v389_v56 = vld [vmem:[#allocation2 + $0x6c] sm:$0x1] }
  0xcb   : > { %v7087_v52 = vcombine.low %v1120_v36, %v1130_v14  ;;  %694 = vst [vmem:[#allocation2 + $0x44] sm:$0x1] %v693_v10  ;;  %v9589_v1 = vrot.slane %v1138_v62, 4  ;;  %v9591_v31 = vrot.slane %v598_v44, 7  ;;  %1799 = vmatmul.mubr.bf16.gmra.mxu0 %v7107_v4  ;;  %v9595_v41 = vrot.slane %v1148_v12, 4 }
  0xcc   : > { %v8439_v33 = vld [vmem:[#allocation2 + $0x48] sm:$0xff]   ;;  %v595_v42 = vor.u32 %v593_v54, %v592_v30  ;;  %v596_v11 = vrot.slane %v592_v30, 4  ;;  %v419_v57 = vsel %vm9123_vm4, 0, %v418_v6  ;;  %v7078_v13 = vcombine.low %v9540_v47, %v9518_v63  ;;  %v8464_v30 = vld [vmem:[#allocation7 + $0x1d0] sm:$0xff]  }
  0xcd   : > { %2007 = vmatprep.mubr.bf16.mxu1 %v7087_v52  ;;  %v603_v61 = vor.u32 %v601_v16, %v9591_v31  ;;  %420 = vst [vmem:[#allocation2 + $0x50] sm:$0x1] %v419_v57  ;;  %v9602_v43 = vld [vmem:[#allocation2 + $0x4c] sm:$0xf]  ;;  %v7099_v29 = vrot.slane %v9568_v50, 9  ;;  %v1156_v8 = vshrl.u32 %v9581_v17, 16  ;;  %1806 = vmatprep.mubr.bf16.mxu0 %v8439_v33  ;;  %v1144_v37 = vsel %vm9321_vm14, %v9589_v1, %v9552_v48 }
  0xce   : > { %v605_v24 = vrot.slane %v9591_v31, 4  ;;  %v703_v39 = vsel %vm9183_vm8, %v595_v42, %v702_v49  ;;  %v1159_v35 = vshll.u32 %v9581_v17, 16  ;;  %v1165_v34 = vshll.u32 %v9602_v43, 16  ;;  %v9664_v33 = vld [vmem:[%s872_s7] sm:$0xff]  ;;  %v9666_v42 = vld [vmem:[%s872_s7 + $0x8] sm:$0xff]  ;;  %7758 = vmatprep.subr.bf16.mxu1 %v8464_v30  ;;  %s10065_s7 = scalar_select %p915_p1, %s9219_s1, 0 }
  0xcf   : > { %v604_v21 = vsel %vm9175_vm7, %v596_v11, %v603_v61  ;;  %704 = vst [vmem:[#allocation2 + $0x54] sm:$0xf] %v703_v39  ;;  %v1158_v40 = vrot.slane %v1156_v8, 4  ;;  %v1169_v36 = vshrl.u32 %v9602_v43, 16  ;;  %v1460_v2 = vrot.slane %v9602_v43, 5 }
  0xd0   : > { %705 = vst [vmem:[#allocation2 + $0x58] sm:$0xf] %v604_v21  ;;  %v1161_v28 = vrot.slane %v1159_v35, 5  ;;  %v9624_v5 = vrot.slane %v1165_v34, 5  ;;  %v7079_v48 = vcombine.low %v9581_v17, %v9602_v43  ;;  %2008 = vmatmul.mubr.bf16.gmra.mxu1 %v7077_v7  ;;  %v387_v6 = vsel %vm9088_vm3, 0, %v386_v55  ;;  %s11553_s7 = smov (!%p7064_p3, %s10065_s7), 15 }
  0xd1   : > { %v1171_v58 = vrot.slane %v1169_v36, 4  ;;  %v607_v27 = vshrl.u32 %v9474_v22, 16  ;;  %v610_v25 = vshll.u32 %v9474_v22, 16  ;;  %388 = vst [vmem:[#allocation2 + $0x60] sm:$0x1] %v387_v6  ;;  %v615_v4 = vshrl.u32 %v9489_v38, 16 }
  0xd2   : > { %v1003_v51 = vld [vmem:[#allocation2 + $0x44] sm:$0x1]  ;;  %v1162_v54 = vor.u32 %v1161_v28, %v1158_v40  ;;  %v618_v46 = vshll.u32 %v9489_v38, 16  ;;  %v422_v60 = vsel %vm9123_vm4, 0, %v421_v0  ;;  %v453_v22 = vld [vmem:[%s9135_s13 + $0x78] sm:$0xff]  ;;  %v9647_v50 = vsel %vm9233_vm11, %v7099_v29, %v1460_v2  ;;  %s7070_s23 = sshll.u32 %s11553_s7, 4 }
  0xd3   : > { %v1456_v15 = vrot.slane %v1003_v51, 5  ;;  %v1151_v7 = vshll.u32 %v1003_v51, 16  ;;  %v1172_v62 = vor.u32 %v1171_v58, %v9624_v5  ;;  %v609_v12 = vrot.slane %v607_v27, 7  ;;  %423 = vst [vmem:[#allocation2 + $0x5c] sm:$0x1] %v422_v60  ;;  %v8468_v27 = vld [vmem:[#allocation7 + $0x188] sm:$0xff]   ;;  %s936_s20 = scalar_lea.vmem %s9051_s18, %s7070_s23 [#allocation4] }
  0xd4   : > { %v699_v44 = vld [vmem:[#allocation2 + $0x50] sm:$0x1]  ;;  %v9649_v38 = vrot.slane %v1162_v54, 4  ;;  %v9651_v14 = vrot.slane %v615_v4, 7  ;;  %v390_v10 = vsel %vm9088_vm3, 0, %v389_v56  ;;  %v9662_v1 = vrot.slane %v1460_v2, 4 }
  0xd5   : > { %v1457_v16 = vsel %vm9233_vm11, %v9543_v26, %v1456_v15  ;;  %v1153_v49 = vrot.slane %v1151_v7, 5  ;;  %v700_v52 = vsel %vm9088_vm3, %v588_v20, %v699_v44  ;;  %391 = vst [vmem:[#allocation2 + $0x6c] sm:$0x1] %v390_v10  ;;  %v612_v26 = vor.u32 %v610_v25, %v609_v12  ;;  %v8465_v20 = vld [vmem:[#allocation7 + $0x190] sm:$0xff]   ;;  %v424_v36 = vld [vmem:[#allocation2 + $0x68] sm:$0x1] }
  0xd6   : > { %v7108_v11 = vcombine.low %v9587_v59, %v1457_v16  ;;  %701 = vst [vmem:[#allocation2 + $0x50] sm:$0x1] %v700_v52  ;;  %v613_v57 = vrot.slane %v609_v12, 4  ;;  %v1390_v55 = vld [vmem:[#allocation2 + $0x54] sm:$0xe]  ;;  %v9673_v53 = vpack.c.bf16 %v453_v22, %v453_v22  ;;  %v1168_v8 = vsel %vm9321_vm14, %v9649_v38, %v9624_v5  ;;  %7759 = vmatpush3.bf16.msra.mxu1 %v8465_v20  ;;  %v9710_v12 = vld [vmem:[#allocation7 + $0x238] sm:$0xff]  }
  0xd7   : > { %v1154_v61 = vsel %vm9321_vm14, %v9595_v41, %v1153_v49  ;;  %v8445_v29 = vld [vmem:[#allocation2 + $0x54] sm:$0xff]   ;;  %v9682_v0 = vrot.slane %v1172_v62, 4  ;;  %v620_v59 = vor.u32 %v618_v46, %v9651_v14  ;;  %v622_v34 = vrot.slane %v9651_v14, 4  ;;  %8130 = vmatprep.subr.bf16.mxu0 %v9710_v12 }
  0xd8   : > { %v9685_v39 = vld [vmem:[#allocation2 + $0x58] sm:$0xf]  ;;  %1807 = vmatmul.mubr.bf16.gmra.mxu0 %v7108_v11  ;;  %v7088_v35 = vcombine.low %v1144_v37, %v1154_v61  ;;  %v7100_v21 = vrot.slane %v1390_v55, 9  ;;  %v9688_v40 = vld [vmem:[#allocation2 + $0x54] sm:$0xf]  ;;  %v875_v46 = vpack.c.bf16 %v9666_v42, %v9664_v33  ;;  %v624_v44 = vshrl.u32 %v9554_v19, 16 }
  0xd9   : > { %v1189_v41 = vshll.u32 %v9685_v39, 16  ;;  %v8467_v56 = vld [vmem:[#allocation7 + $0x1c8] sm:$0xff]   ;;  %1814 = vmatprep.mubr.bf16.mxu0 %v8445_v29  ;;  %v621_v2 = vsel %vm9175_vm7, %v613_v57, %v620_v59  ;;  %v709_v28 = vld [vmem:[#allocation2 + $0x60] sm:$0xf]  ;;  %v1180_v58 = vshrl.u32 %v9688_v40, 16  ;;  %v1183_v6 = vshll.u32 %v9688_v40, 16 }
  0xda   : > { %v1193_v37 = vshrl.u32 %v9685_v39, 16  ;;  %2015 = vmatprep.mubr.bf16.mxu1 %v7088_v35  ;;  %v710_v25 = vsel %vm9183_vm8, %v612_v26, %v709_v28  ;;  %712 = vst [vmem:[#allocation2 + $0x64] sm:$0xf] %v621_v2  ;;  %v706_v51 = vld [vmem:[#allocation2 + $0x5c] sm:$0x1]  ;;  %v1467_v54 = vrot.slane %v9685_v39, 5  ;;  %7760 = vmatprep.subr.bf16.mxu1 %v8467_v56 }
  0xdb   : > { %v9699_v4 = vrot.slane %v1189_v41, 5  ;;  %2016 = vmatmul.mubr.bf16.gmra.mxu1 %v7078_v13  ;;  %711 = vst [vmem:[#allocation2 + $0x60] sm:$0xf] %v710_v25  ;;  %v707_v60 = vsel %vm9088_vm3, %v605_v24, %v706_v51  ;;  %v1182_v15 = vrot.slane %v1180_v58, 4  ;;  %v1185_v7 = vrot.slane %v1183_v6, 5  ;;  %v8470_v13 = vld [vmem:[#allocation7 + $0x1c0] sm:$0xff]  }
  0xdc   : > { %v1195_v62 = vrot.slane %v1193_v37, 4  ;;  %708 = vst [vmem:[#allocation2 + $0x5c] sm:$0x1] %v707_v60  ;;  %v9714_v22 = vsel %vm9233_vm11, %v7100_v21, %v1467_v54  ;;  %v627_v63 = vshll.u32 %v9554_v19, 16  ;;  %v632_v47 = vshrl.u32 %v9673_v53, 16  ;;  %7761 = vmatpush3.bf16.msra.mxu1 %v8468_v27  ;;  %v8471_v29 = vld [vmem:[#allocation7 + $0x180] sm:$0xff]  }
  0xdd   : > { %v392_v31 = vld [vmem:[#allocation2 + $0x78] sm:$0x1]  ;;  %v1004_v24 = vld [vmem:[#allocation2 + $0x50] sm:$0x1]  ;;  %v1186_v10 = vor.u32 %v1185_v7, %v1182_v15  ;;  %v635_v16 = vshll.u32 %v9673_v53, 16  ;;  %v425_v52 = vsel %vm9123_vm4, 0, %v424_v36  ;;  %7762 = vmatprep.subr.bf16.mxu1 %v8470_v13  ;;  %v7080_v53 = vcombine.low %v9688_v40, %v9685_v39 }
  0xde   : > { %v1196_v30 = vor.u32 %v1195_v62, %v9699_v4  ;;  %v716_v49 = vld [vmem:[#allocation2 + $0x6c] sm:$0xf]  ;;  %v1463_v19 = vrot.slane %v1004_v24, 5  ;;  %v1175_v11 = vshll.u32 %v1004_v24, 16  ;;  %v626_v26 = vrot.slane %v624_v44, 7 }
  0xdf   : > { %v9724_v57 = vrot.slane %v632_v47, 7  ;;  %426 = vst [vmem:[#allocation2 + $0x68] sm:$0x1] %v425_v52  ;;  %v1469_v55 = vrot.slane %v1467_v54, 4  ;;  %v1187_v20 = vrot.slane %v1186_v10, 4  ;;  %v393_v61 = vsel %vm9088_vm3, 0, %v392_v31 }
  0xe0   : > { %v1464_v59 = vsel %vm9233_vm11, %v9662_v1, %v1463_v19  ;;  %v1177_v35 = vrot.slane %v1175_v11, 5  ;;  %v629_v21 = vor.u32 %v627_v63, %v626_v26  ;;  %v630_v41 = vrot.slane %v626_v26, 4  ;;  %394 = vst [vmem:[#allocation2 + $0x78] sm:$0x1] %v393_v61  ;;  %7763 = vmatpush3.bf16.msra.mxu1 %v8471_v29  ;;  %v427_v7 = vld [vmem:[#allocation2 + $0x74] sm:$0x1] }
  0xe1   : > { %v7109_v36 = vcombine.low %v9647_v50, %v1464_v59  ;;  %v1197_v56 = vrot.slane %v1196_v30, 4  ;;  %v637_v2 = vor.u32 %v635_v16, %v9724_v57  ;;  %v9740_v28 = vld [vmem:[#allocation2 + $0x64] sm:$0xf]  ;;  %v878_v58 = vstv %s9729_s17  ;;  %s931_s17 = sand.u32 4294901760, %s10071_s5 }
  0xe2   : > { %v1178_v6 = vsel %vm9321_vm14, %v9682_v0, %v1177_v35  ;;  %v8449_v37 = vld [vmem:[#allocation2 + $0x60] sm:$0xff]   ;;  %v1192_v1 = vsel %vm9321_vm14, %v1187_v20, %v9699_v4  ;;  %v639_v27 = vrot.slane %v9724_v57, 4  ;;  %v717_v50 = vsel %vm9183_vm8, %v629_v21, %v716_v49  ;;  %v2056_v57 = vld [vmem:[#allocation2 + $0xc] sm:$0xf]  ;;  %s11555_s17 = smov (%p926_p7, %s931_s17), 2143289344 }
  0xe3   : > { %v1391_v25 = vld [vmem:[#allocation2 + $0x60] sm:$0xe]  ;;  %1815 = vmatmul.mubr.bf16.gmra.mxu0 %v7109_v36  ;;  %v7089_v51 = vcombine.low %v1168_v8, %v1178_v6  ;;  %v1005_v54 = vld [vmem:[#allocation2 + $0x5c] sm:$0x1]  ;;  %v638_v0 = vsel %vm9175_vm7, %v630_v41, %v637_v2  ;;  %718 = vst [vmem:[#allocation2 + $0x6c] sm:$0xf] %v717_v50  ;;  %v880_v5 = vmul.bf16 %v878_v58, %v875_v46 }
  0xe4   : > { %v1474_v4 = vrot.slane %v9740_v28, 5  ;;  %v9760_v60 = vld [vmem:[#allocation2 + $0x60] sm:$0xf]  ;;  %v1213_v15 = vshll.u32 %v9740_v28, 16  ;;  %1822 = vmatprep.mubr.bf16.mxu0 %v8449_v37  ;;  %v1470_v62 = vrot.slane %v1005_v54, 5  ;;  %v1199_v44 = vshll.u32 %v1005_v54, 16 }
  0xe5   : > { %719 = vst [vmem:[#allocation2 + $0x70] sm:$0xf] %v638_v0  ;;  %v1204_v63 = vshrl.u32 %v9760_v60, 16  ;;  %2023 = vmatprep.mubr.bf16.mxu1 %v7089_v51  ;;  %v7101_v8 = vrot.slane %v1391_v25, 9  ;;  %v1207_v47 = vshll.u32 %v9760_v60, 16  ;;  %v1217_v13 = vshrl.u32 %v9740_v28, 16 }
  0xe6   : > { %v713_v38 = vld [vmem:[#allocation2 + $0x68] sm:$0x1]  ;;  %v9768_v31 = vrot.slane %v1213_v15, 5  ;;  %2024 = vmatmul.mubr.bf16.gmra.mxu1 %v7079_v48  ;;  %v1471_v24 = vsel %vm9233_vm11, %v1469_v55, %v1470_v62  ;;  %v1201_v10 = vrot.slane %v1199_v44, 5  ;;  %v9780_v46 = vld [vmem:[#allocation2 + $0x10] sm:$0xf]  ;;  %v7062_v43 = vcombine.low %v880_v5, %v880_v5 }
  0xe7   : > { %v714_v33 = vsel %vm9088_vm3, %v622_v34, %v713_v38  ;;  %v1206_v42 = vrot.slane %v1204_v63, 4  ;;  %v7110_v30 = vcombine.low %v9714_v22, %v1471_v24  ;;  %v1476_v16 = vrot.slane %v1474_v4, 4  ;;  %v907_v35 = vld [vmem:[#allocation2 + $0x78] sm:$0xf]  ;;  %v2058_v44 = vld [vmem:[#allocation2 + $0x14] sm:$0x1] }
  0xe8   : > { %715 = vst [vmem:[#allocation2 + $0x68] sm:$0x1] %v714_v33  ;;  %v1209_v49 = vrot.slane %v1207_v47, 5  ;;  %v1219_v52 = vrot.slane %v1217_v13, 4  ;;  %v1202_v17 = vsel %vm9321_vm14, %v1197_v56, %v1201_v10  ;;  %v7063_v48 = vcombine.high %v880_v5, %v880_v5  ;;  %v2326_v13 = vld [vmem:[#allocation2 + $0xc] sm:$0xe] }
  0xe9   : > { %v428_v14 = vsel %vm9123_vm4, 0, %v427_v7  ;;  %v7090_v19 = vcombine.low %v1192_v1, %v1202_v17  ;;  %v2096_v26 = vshll.u32 %v9780_v46, 16  ;;  %v887_v22 = vshrl.u32 %v7062_v43, 16  ;;  %s934_s1 = sshrl.u32 %s11555_s17, 16 }
  0xea   : > { %v1210_v11 = vor.u32 %v1209_v49, %v1206_v42  ;;  %v1220_v34 = vor.u32 %v1219_v52, %v9768_v31  ;;  %429 = vst [vmem:[#allocation2 + $0x74] sm:$0x1] %v428_v14  ;;  %v890_v55 = vshll.u32 %v7062_v43, 16  ;;  %v895_v20 = vshrl.u32 %v7063_v48, 16  ;;  %v1392_v58 = vld [vmem:[#allocation2 + $0x6c] sm:$0xe] }
  0xeb   : > { %v898_v61 = vshll.u32 %v7063_v48, 16  ;;  %1823 = vmatmul.mubr.bf16.gmra.mxu0 %v7110_v30  ;;  %2031 = vmatprep.mubr.bf16.mxu1 %v7090_v19  ;;  %v1475_v21 = vsel %vm9233_vm11, %v7101_v8, %v1474_v4  ;;  %v7081_v41 = vcombine.low %v9760_v60, %v9740_v28  ;;  %v889_v36 = vrot.slane %v887_v22, 7  ;;  %v9798_v50 = vld [vmem:[#allocation2 + $0x6c] sm:$0xf]  ;;  %v9832_v14 = vld [vmem:[#allocation2 + $0x18] sm:$0xf] }
  0xec   : > { %v8455_v29 = vld [vmem:[#allocation2 + $0x6c] sm:$0xff]   ;;  %v1211_v59 = vrot.slane %v1210_v11, 4  ;;  %v9793_v56 = vrot.slane %v895_v20, 7  ;;  %v1221_v6 = vrot.slane %v1220_v34, 4  ;;  %v7102_v37 = vrot.slane %v1392_v58, 9  ;;  %s940_s15 = sshll.u32 %s934_s1, 16 }
  0xed   : > { %v9795_v2 = vld [vmem:[#allocation2 + $0x70] sm:$0xf]  ;;  %1830 = vmatprep.mubr.bf16.mxu0 %v8455_v29  ;;  %v892_v51 = vor.u32 %v890_v55, %v889_v36  ;;  %v893_v54 = vrot.slane %v889_v36, 4  ;;  %v9805_v4 = vrot.slane %v2096_v26, 5  ;;  %v1228_v63 = vshrl.u32 %v9798_v50, 16  ;;  %s941_s18 = sor.u32 %s940_s15, %s934_s1 }
  0xee   : > { %v1481_v1 = vrot.slane %v9795_v2, 5  ;;  %v1237_v25 = vshll.u32 %v9795_v2, 16  ;;  %2032 = vmatmul.mubr.bf16.gmra.mxu1 %v7080_v53  ;;  %v900_v0 = vor.u32 %v898_v61, %v9793_v56  ;;  %v1216_v15 = vsel %vm9321_vm14, %v1211_v59, %v9768_v31  ;;  %v2797_v36 = vld [vmem:[#allocation2 + $0x20] sm:$0x1] }
  0xef   : > { %v1006_v28 = vld [vmem:[#allocation2 + $0x68] sm:$0x1]  ;;  %v908_v40 = vsel %vm9183_vm8, %v892_v51, %v907_v35  ;;  %v1231_v5 = vshll.u32 %v9798_v50, 16  ;;  %v1230_v10 = vrot.slane %v1228_v63, 4  ;;  %v1241_v42 = vshrl.u32 %v9795_v2, 16 }
  0xf0   : > { %v1477_v60 = vrot.slane %v1006_v28, 5  ;;  %v1223_v7 = vshll.u32 %v1006_v28, 16  ;;  %v9812_v62 = vsel %vm9233_vm11, %v7102_v37, %v1481_v1  ;;  %v901_v39 = vsel %vm9175_vm7, %v893_v54, %v900_v0  ;;  %909 = vst [vmem:[#allocation2 + $0x78] sm:$0xf] %v908_v40 }
  0xf1   : > { %v720_v53 = vld [vmem:[#allocation2 + $0x74] sm:$0x1]  ;;  %910 = vst [vmem:[#allocation2 + $0x7c] sm:$0xf] %v901_v39  ;;  %v9826_v31 = vrot.slane %v1237_v25, 5  ;;  %v1233_v33 = vrot.slane %v1231_v5, 5 }
  0xf2   : > { %v1478_v38 = vsel %vm9233_vm11, %v1476_v16, %v1477_v60  ;;  %v1225_v8 = vrot.slane %v1223_v7, 5  ;;  %v721_v47 = vsel %vm9088_vm3, %v639_v27, %v720_v53  ;;  %v1483_v16 = vrot.slane %v1481_v1, 4  ;;  %v2327_v53 = vld [vmem:[#allocation2 + $0x18] sm:$0xe] }
  0xf3   : > { %v7111_v24 = vcombine.low %v1475_v21, %v1478_v38  ;;  %722 = vst [vmem:[#allocation2 + $0x74] sm:$0x1] %v721_v47  ;;  %v2100_v49 = vshrl.u32 %v9780_v46, 16  ;;  %v2106_v52 = vshll.u32 %v2058_v44, 16  ;;  %v1234_v27 = vor.u32 %v1233_v33, %v1230_v10  ;;  %v9839_v21 = vld [vmem:[#allocation2 + $0x1c] sm:$0xf] }
  0xf4   : > { %v1226_v30 = vsel %vm9321_vm14, %v1221_v6, %v1225_v8  ;;  %v1243_v43 = vrot.slane %v1241_v42, 4  ;;  %v7155_v48 = vrot.slane %v2326_v13, 9  ;;  %v2368_v34 = vrot.slane %v9780_v46, 5  ;;  %v2060_v47 = vld [vmem:[#allocation2 + $0x1c] sm:$0xf] }
  0xf5   : > { %1831 = vmatmul.mubr.bf16.gmra.mxu0 %v7111_v24  ;;  %v7091_v17 = vcombine.low %v1216_v15, %v1226_v30  ;;  %v2102_v19 = vrot.slane %v2100_v49, 4  ;;  %v2108_v11 = vrot.slane %v2106_v52, 5  ;;  %v2371_v26 = vrot.slane %v2058_v44, 5  ;;  %v2059_v42 = vld [vmem:[#allocation2 + $0x18] sm:$0xf] }
  0xf6   : > { %v1235_v22 = vrot.slane %v1234_v27, 4  ;;  %v1244_v55 = vor.u32 %v1243_v43, %v9826_v31  ;;  %v2087_v20 = vshrl.u32 %v2056_v57, 16  ;;  %v2090_v61 = vshll.u32 %v2056_v57, 16 }
  0xf7   : > { %2039 = vmatprep.mubr.bf16.mxu1 %v7091_v17  ;;  %v2103_v29 = vor.u32 %v2102_v19, %v9805_v4  ;;  %v2369_v59 = vsel %vm9233_vm11, %v7155_v48, %v2368_v34  ;;  %v2370_v35 = vrot.slane %v2368_v34, 4  ;;  %v2808_v58 = vshrl.u32 %v9832_v14, 16 }
  0xf8   : > { %2040 = vmatmul.mubr.bf16.gmra.mxu1 %v7081_v41  ;;  %v8463_v46 = vld [vmem:[#allocation2 + $0x78] sm:$0xff]   ;;  %v1240_v6 = vsel %vm9321_vm14, %v1235_v22, %v9826_v31  ;;  %v1245_v37 = vrot.slane %v1244_v55, 4  ;;  %v7082_v41 = vcombine.low %v9798_v50, %v9795_v2  ;;  %v7201_v1 = vcombine.low %v9832_v14, %v9839_v21  ;;  %v2061_v31 = vld [vmem:[#allocation2 + $0x20] sm:$0x1] }
  0xf9   : > { %v2104_v28 = vrot.slane %v2103_v29, 4  ;;  %v2372_v51 = vsel %vm9233_vm11, %v2370_v35, %v2371_v26  ;;  %v2089_v54 = vrot.slane %v2087_v20, 4  ;;  %v2092_v0 = vrot.slane %v2090_v61, 5  ;;  %1838 = vmatprep.mubr.bf16.mxu0 %v8463_v46 }
  0xfa   : > { %v1007_v25 = vld [vmem:[#allocation2 + $0x74] sm:$0x1]  ;;  %v7175_v7 = vcombine.low %v2369_v59, %v2372_v51  ;;  %v2810_v44 = vrot.slane %v2808_v58, 4  ;;  %v2811_v2 = vshll.u32 %v9832_v14, 16  ;;  %v2817_v50 = vshll.u32 %v9839_v21, 16  ;;  %v8473_v51 = vld [vmem:[#allocation7 + $0x230] sm:$0xff]  }
  0xfb   : > { %v1484_v60 = vrot.slane %v1007_v25, 5  ;;  %v1247_v15 = vshll.u32 %v1007_v25, 16  ;;  %v2093_v39 = vor.u32 %v2092_v0, %v2089_v54  ;;  %v2109_v40 = vsel %vm9321_vm14, %v2104_v28, %v2108_v11  ;;  %v9876_v54 = vld [vmem:[#allocation2 + $0x2c] sm:$0x1] }
  0xfc   : > { %v2821_v38 = vshrl.u32 %v9839_v21, 16  ;;  %v2827_v8 = vshll.u32 %v2797_v36, 16  ;;  %v2813_v10 = vrot.slane %v2811_v2, 5  ;;  %v2819_v33 = vrot.slane %v2817_v50, 5 }
  0xfd   : > { %v1485_v63 = vsel %vm9233_vm11, %v1483_v16, %v1484_v60  ;;  %v1249_v5 = vrot.slane %v1247_v15, 5  ;;  %v2094_v24 = vrot.slane %v2093_v39, 4  ;;  %v7156_v57 = vrot.slane %v2327_v53, 9  ;;  %v2063_v53 = vld [vmem:[#allocation2 + $0x28] sm:$0xf] }
  0xfe   : > { %v7112_v13 = vcombine.low %v9812_v62, %v1485_v63  ;;  %v2823_v49 = vrot.slane %v2821_v38, 4  ;;  %v2829_v52 = vrot.slane %v2827_v8, 5  ;;  %v2814_v27 = vor.u32 %v2813_v10, %v2810_v44  ;;  %v2328_v44 = vld [vmem:[#allocation2 + $0x24] sm:$0xe] }
  0xff   : > { %v1250_v30 = vsel %vm9321_vm14, %v1245_v37, %v1249_v5  ;;  %v2099_v17 = vsel %vm9321_vm14, %v2094_v24, %v9805_v4  ;;  %v2375_v43 = vrot.slane %v2060_v47, 5  ;;  %v2378_v19 = vrot.slane %v2061_v31, 5  ;;  %v9866_v4 = vld [vmem:[#allocation2 + $0x24] sm:$0xf] }
 0x100   : > { %1839 = vmatmul.mubr.bf16.gmra.mxu0 %v7112_v13  ;;  %v7092_v16 = vcombine.low %v1240_v6, %v1250_v30  ;;  %v7165_v62 = vcombine.low %v2099_v17, %v2109_v40  ;;  %v2824_v48 = vor.u32 %v2823_v49, %v2819_v33  ;;  %v2111_v11 = vshrl.u32 %v2059_v42, 16  ;;  %v9872_v6 = vld [vmem:[#allocation2 + $0x28] sm:$0xf] }
 0x101   : > { %2676 = vmatprep.mubr.bf16.mxu0 %v7175_v7  ;;  %v2815_v34 = vrot.slane %v2814_v27, 4  ;;  %v2376_v26 = vsel %vm9233_vm11, %v7156_v57, %v2375_v43  ;;  %v2377_v22 = vrot.slane %v2375_v43, 4  ;;  %v2114_v55 = vshll.u32 %v2059_v42, 16  ;;  %v8475_v57 = vld [vmem:[#allocation7 + $0x228] sm:$0xff]  }
 0x102   : > { %2047 = vmatprep.mubr.bf16.mxu1 %v7092_v16  ;;  %v2825_v20 = vrot.slane %v2824_v48, 4  ;;  %v2113_v61 = vrot.slane %v2111_v11, 4  ;;  %v2120_v29 = vshll.u32 %v2060_v47, 16  ;;  %v2124_v59 = vshrl.u32 %v2060_v47, 16  ;;  %v2064_v47 = vld [vmem:[#allocation2 + $0x2c] sm:$0x1] }
 0x103   : > { %2048 = vmatmul.mubr.bf16.gmra.mxu1 %v7082_v41  ;;  %v2820_v35 = vsel %vm9321_vm14, %v2815_v34, %v2819_v33  ;;  %v2379_v36 = vsel %vm9233_vm11, %v2377_v22, %v2378_v19  ;;  %v2116_v58 = vrot.slane %v2114_v55, 5  ;;  %v2130_v46 = vshll.u32 %v2061_v31, 16  ;;  %v2062_v33 = vld [vmem:[#allocation2 + $0x24] sm:$0xf]  ;;  %v9895_v55 = vld [vmem:[#allocation2 + $0x30] sm:$0xf] }
 0x104   : > { %v2830_v37 = vsel %vm9321_vm14, %v2825_v20, %v2829_v52  ;;  %v7176_v41 = vcombine.low %v2376_v26, %v2379_v36  ;;  %v2122_v25 = vrot.slane %v2120_v29, 5  ;;  %v2126_v28 = vrot.slane %v2124_v59, 4  ;;  %v8478_v29 = vld [vmem:[#allocation7 + $0x220] sm:$0xff]  }
 0x105   : > { %v7211_v0 = vcombine.low %v2820_v35, %v2830_v37  ;;  %v2117_v60 = vor.u32 %v2116_v58, %v2113_v61  ;;  %v2132_v15 = vrot.slane %v2130_v46, 5  ;;  %v2832_v7 = vshrl.u32 %v9866_v4, 16  ;;  %v9899_v61 = vld [vmem:[#allocation2 + $0x34] sm:$0xf]  ;;  %v9905_v58 = vld [vmem:[#allocation2 + $0x38] sm:$0x1] }
 0x106   : > { %v2127_v39 = vor.u32 %v2126_v28, %v2122_v25  ;;  %v2835_v40 = vshll.u32 %v9866_v4, 16  ;;  %v2841_v2 = vshll.u32 %v9872_v6, 16  ;;  %v2845_v50 = vshrl.u32 %v9872_v6, 16 }
 0x107   : > { %3307 = vmatprep.mubr.bf16.mxu1 %v7211_v0  ;;  %v2118_v63 = vrot.slane %v2117_v60, 4  ;;  %v2834_v5 = vrot.slane %v2832_v7, 4  ;;  %v2851_v38 = vshll.u32 %v9876_v54, 16  ;;  %v7202_v8 = vcombine.low %v9866_v4, %v9872_v6 }
 0x108   : > { %2677 = vmatmul.mubr.bf16.vlgmr.msra.gmra.mxu0 %v7165_v62  ;;  %v2128_v31 = vrot.slane %v2127_v39, 4  ;;  %v2837_v13 = vrot.slane %v2835_v40, 5  ;;  %v2843_v24 = vrot.slane %v2841_v2, 5  ;;  %v2847_v10 = vrot.slane %v2845_v50, 4  ;;  %v2067_v2 = vld [vmem:[#allocation2 + $0x38] sm:$0x1] }
 0x109   : > { %8131 = vmatpush3.bf16.msra.mxu0 %v9710_v12  ;;  %2684 = vmatprep.mubr.bf16.mxu0 %v7176_v41  ;;  %v2123_v42 = vsel %vm9321_vm14, %v2118_v63, %v2122_v25  ;;  %v2853_v30 = vrot.slane %v2851_v38, 5  ;;  %v7157_v49 = vrot.slane %v2328_v44, 9  ;;  %v2382_v52 = vrot.slane %v2063_v53, 5  ;;  %v8480_v50 = vld [vmem:[#allocation7 + $0x218] sm:$0xff]  }
 0x10a   : > { %8132 = vmatprep.subr.bf16.mxu0 %v8473_v51  ;;  %v2133_v12 = vsel %vm9321_vm14, %v2128_v31, %v2132_v15  ;;  %v2838_v16 = vor.u32 %v2837_v13, %v2834_v5  ;;  %v2848_v17 = vor.u32 %v2847_v10, %v2843_v24  ;;  %v2385_v27 = vrot.slane %v2064_v47, 5  ;;  %v2329_v15 = vld [vmem:[#allocation2 + $0x30] sm:$0xe]  ;;  %v2066_v10 = vld [vmem:[#allocation2 + $0x34] sm:$0xf] }
 0x10b   : > { %3308 = vmatmul.mubr.bf16.vlgmr.msra.gmra.mxu1 %v7201_v1  ;;  %v7166_v43 = vcombine.low %v2123_v42, %v2133_v12  ;;  %v2383_v62 = vsel %vm9233_vm11, %v7157_v49, %v2382_v52  ;;  %v2384_v48 = vrot.slane %v2382_v52, 4  ;;  %v2135_v19 = vshrl.u32 %v2062_v33, 16 }
 0x10c   : > { %v2839_v11 = vrot.slane %v2838_v16, 4  ;;  %v2849_v34 = vrot.slane %v2848_v17, 4  ;;  %v2138_v26 = vshll.u32 %v2062_v33, 16  ;;  %v2144_v22 = vshll.u32 %v2063_v53, 16 }
 0x10d   : > { %8133 = vmatpush3.bf16.msra.mxu0 %v8473_v51  ;;  %v2386_v14 = vsel %vm9233_vm11, %v2384_v48, %v2385_v27  ;;  %v2137_v21 = vrot.slane %v2135_v19, 4  ;;  %v2148_v1 = vshrl.u32 %v2063_v53, 16  ;;  %v2154_v20 = vshll.u32 %v2064_v47, 16  ;;  %v2065_v47 = vld [vmem:[#allocation2 + $0x30] sm:$0xf]  ;;  %v8482_v48 = vld [vmem:[#allocation7 + $0x210] sm:$0xff]  }
 0x10e   : > { %8134 = vmatprep.subr.bf16.mxu0 %v8475_v57  ;;  %v2844_v59 = vsel %vm9321_vm14, %v2839_v11, %v2843_v24  ;;  %v2854_v4 = vsel %vm9321_vm14, %v2849_v34, %v2853_v30  ;;  %v7177_v35 = vcombine.low %v2383_v62, %v2386_v14  ;;  %v2140_v36 = vrot.slane %v2138_v26, 5 }
 0x10f   : > { %v7212_v46 = vcombine.low %v2844_v59, %v2854_v4  ;;  %v2146_v37 = vrot.slane %v2144_v22, 5  ;;  %v2150_v41 = vrot.slane %v2148_v1, 4  ;;  %v2156_v25 = vrot.slane %v2154_v20, 5  ;;  %v9920_v22 = vld [vmem:[#allocation2 + $0x3c] sm:$0xf] }
 0x110   : > { %2685 = vmatmul.mubr.bf16.gmra.mxu0 %v7166_v43  ;;  %v2141_v28 = vor.u32 %v2140_v36, %v2137_v21  ;;  %v2856_v51 = vshrl.u32 %v9895_v55, 16  ;;  %v2859_v0 = vshll.u32 %v9895_v55, 16  ;;  %v2865_v60 = vshll.u32 %v9899_v61, 16 }
 0x111   : > { %2692 = vmatprep.mubr.bf16.mxu0 %v7177_v35  ;;  %8135 = vmatpush3.bf16.msra.mxu0 %v8475_v57  ;;  %v2151_v7 = vor.u32 %v2150_v41, %v2146_v37  ;;  %v2869_v44 = vshrl.u32 %v9899_v61, 16  ;;  %v2875_v39 = vshll.u32 %v9905_v58, 16  ;;  %v7203_v40 = vcombine.low %v9895_v55, %v9899_v61 }
 0x112   : > { %3315 = vmatprep.mubr.bf16.mxu1 %v7212_v46  ;;  %8136 = vmatprep.subr.bf16.mxu0 %v8478_v29  ;;  %v2142_v53 = vrot.slane %v2141_v28, 4  ;;  %v2858_v63 = vrot.slane %v2856_v51, 4  ;;  %v2861_v5 = vrot.slane %v2859_v0, 5  ;;  %v2867_v38 = vrot.slane %v2865_v60, 5  ;;  %v9930_v46 = vld [vmem:[#allocation2 + $0x44] sm:$0x1] }
 0x113   : > { %3316 = vmatmul.mubr.bf16.gmra.mxu1 %v7202_v8  ;;  %v2152_v31 = vrot.slane %v2151_v7, 4  ;;  %v2871_v13 = vrot.slane %v2869_v44, 4  ;;  %v2877_v24 = vrot.slane %v2875_v39, 5  ;;  %v7158_v33 = vrot.slane %v2329_v15, 9  ;;  %v2070_v51 = vld [vmem:[#allocation2 + $0x44] sm:$0x1] }
 0x114   : > { %v2147_v42 = vsel %vm9321_vm14, %v2142_v53, %v2146_v37  ;;  %v2862_v30 = vor.u32 %v2861_v5, %v2858_v63  ;;  %v2389_v49 = vrot.slane %v2066_v10, 5  ;;  %v2392_v52 = vrot.slane %v2067_v2, 5  ;;  %v2330_v0 = vld [vmem:[#allocation2 + $0x3c] sm:$0xe]  ;;  %v8484_v60 = vld [vmem:[#allocation7 + $0x208] sm:$0xff]  }
 0x115   : > { %8137 = vmatpush3.bf16.msra.mxu0 %v8478_v29  ;;  %v2157_v8 = vsel %vm9321_vm14, %v2152_v31, %v2156_v25  ;;  %v2872_v57 = vor.u32 %v2871_v13, %v2867_v38  ;;  %v2159_v12 = vshrl.u32 %v2065_v47, 16  ;;  %v2162_v16 = vshll.u32 %v2065_v47, 16  ;;  %v9926_v29 = vld [vmem:[#allocation2 + $0x40] sm:$0xf]  ;;  %v2068_v5 = vld [vmem:[#allocation2 + $0x3c] sm:$0xf] }
 0x116   : > { %8138 = vmatprep.subr.bf16.mxu0 %v8480_v50  ;;  %v7167_v17 = vcombine.low %v2147_v42, %v2157_v8  ;;  %v2863_v27 = vrot.slane %v2862_v30, 4  ;;  %v2390_v43 = vsel %vm9233_vm11, %v7158_v33, %v2389_v49  ;;  %v2391_v62 = vrot.slane %v2389_v49, 4  ;;  %v8487_v49 = vld [vmem:[#allocation7 + $0x200] sm:$0xff]  }
 0x117   : > { %v2873_v19 = vrot.slane %v2872_v57, 4  ;;  %v2161_v11 = vrot.slane %v2159_v12, 4  ;;  %v2164_v34 = vrot.slane %v2162_v16, 5  ;;  %v2168_v26 = vshll.u32 %v2066_v10, 16 }
 0x118   : > { %2693 = vmatmul.mubr.bf16.gmra.mxu0 %v7167_v17  ;;  %v2868_v14 = vsel %vm9321_vm14, %v2863_v27, %v2867_v38  ;;  %v2393_v21 = vsel %vm9233_vm11, %v2391_v62, %v2392_v52  ;;  %v2172_v1 = vshrl.u32 %v2066_v10, 16  ;;  %v2178_v20 = vshll.u32 %v2067_v2, 16 }
 0x119   : > { %v2878_v59 = vsel %vm9321_vm14, %v2873_v19, %v2877_v24  ;;  %v7178_v4 = vcombine.low %v2390_v43, %v2393_v21  ;;  %v2165_v35 = vor.u32 %v2164_v34, %v2161_v11  ;;  %v2170_v36 = vrot.slane %v2168_v26, 5  ;;  %8139 = vmatpush3.bf16.msra.mxu0 %v8480_v50  ;;  %v2069_v24 = vld [vmem:[#allocation2 + $0x40] sm:$0xf]  ;;  %v9948_v19 = vld [vmem:[#allocation2 + $0x48] sm:$0xf] }
 0x11a   : > { %v7213_v37 = vcombine.low %v2868_v14, %v2878_v59  ;;  %v2174_v41 = vrot.slane %v2172_v1, 4  ;;  %v2180_v25 = vrot.slane %v2178_v20, 5  ;;  %v2880_v28 = vshrl.u32 %v9920_v22, 16  ;;  %8140 = vmatprep.subr.bf16.mxu0 %v8482_v48  ;;  %v9952_v14 = vld [vmem:[#allocation2 + $0x4c] sm:$0xf] }
 0x11b   : > { %2700 = vmatprep.mubr.bf16.mxu0 %v7178_v4  ;;  %v2166_v15 = vrot.slane %v2165_v35, 4  ;;  %v2883_v7 = vshll.u32 %v9920_v22, 16  ;;  %v2889_v44 = vshll.u32 %v9926_v29, 16  ;;  %v2893_v39 = vshrl.u32 %v9926_v29, 16  ;;  %v9958_v4 = vld [vmem:[#allocation2 + $0x50] sm:$0x1] }
 0x11c   : > { %3323 = vmatprep.mubr.bf16.mxu1 %v7213_v37  ;;  %v2175_v2 = vor.u32 %v2174_v41, %v2170_v36  ;;  %v2882_v50 = vrot.slane %v2880_v28, 4  ;;  %v2899_v53 = vshll.u32 %v9930_v46, 16  ;;  %v7204_v63 = vcombine.low %v9920_v22, %v9926_v29 }
 0x11d   : > { %3324 = vmatmul.mubr.bf16.gmra.mxu1 %v7203_v40  ;;  %v2171_v38 = vsel %vm9321_vm14, %v2166_v15, %v2170_v36  ;;  %v2885_v47 = vrot.slane %v2883_v7, 5  ;;  %v2891_v31 = vrot.slane %v2889_v44, 5  ;;  %v2895_v13 = vrot.slane %v2893_v39, 4  ;;  %8141 = vmatpush3.bf16.msra.mxu0 %v8482_v48  ;;  %v2073_v15 = vld [vmem:[#allocation2 + $0x50] sm:$0x1] }
 0x11e   : > { %v2176_v10 = vrot.slane %v2175_v2, 4  ;;  %v2901_v33 = vrot.slane %v2899_v53, 5  ;;  %v7159_v42 = vrot.slane %v2330_v0, 9  ;;  %v2396_v30 = vrot.slane %v2069_v24, 5  ;;  %8142 = vmatprep.subr.bf16.mxu0 %v8484_v60  ;;  %v2331_v2 = vld [vmem:[#allocation2 + $0x48] sm:$0xe] }
 0x11f   : > { %v2886_v52 = vor.u32 %v2885_v47, %v2882_v50  ;;  %v2896_v8 = vor.u32 %v2895_v13, %v2891_v31  ;;  %v2399_v57 = vrot.slane %v2070_v51, 5  ;;  %v2183_v12 = vshrl.u32 %v2068_v5, 16  ;;  %v2071_v47 = vld [vmem:[#allocation2 + $0x48] sm:$0xf] }
 0x120   : > { %v2181_v55 = vsel %vm9321_vm14, %v2176_v10, %v2180_v25  ;;  %v2397_v40 = vsel %vm9233_vm11, %v7159_v42, %v2396_v30  ;;  %v2398_v16 = vrot.slane %v2396_v30, 4  ;;  %v2186_v17 = vshll.u32 %v2068_v5, 16 }
 0x121   : > { %v7168_v27 = vcombine.low %v2171_v38, %v2181_v55  ;;  %v2887_v43 = vrot.slane %v2886_v52, 4  ;;  %v2897_v62 = vrot.slane %v2896_v8, 4  ;;  %v2185_v48 = vrot.slane %v2183_v12, 4  ;;  %8143 = vmatpush3.bf16.msra.mxu0 %v8484_v60 }
 0x122   : > { %v2400_v11 = vsel %vm9233_vm11, %v2398_v16, %v2399_v57  ;;  %v2188_v34 = vrot.slane %v2186_v17, 5  ;;  %v2192_v26 = vshll.u32 %v2069_v24, 16  ;;  %v2196_v22 = vshrl.u32 %v2069_v24, 16  ;;  %8144 = vmatprep.subr.bf16.mxu0 %v8487_v49 }
 0x123   : > { %2701 = vmatmul.mubr.bf16.gmra.mxu0 %v7168_v27  ;;  %v2892_v21 = vsel %vm9321_vm14, %v2887_v43, %v2891_v31  ;;  %v2902_v1 = vsel %vm9321_vm14, %v2897_v62, %v2901_v33  ;;  %v7179_v20 = vcombine.low %v2397_v40, %v2400_v11  ;;  %v2202_v59 = vshll.u32 %v2070_v51, 16  ;;  %v2072_v33 = vld [vmem:[#allocation2 + $0x4c] sm:$0xf] }
 0x124   : > { %v7214_v35 = vcombine.low %v2892_v21, %v2902_v1  ;;  %v2189_v36 = vor.u32 %v2188_v34, %v2185_v48  ;;  %v2194_v37 = vrot.slane %v2192_v26, 5  ;;  %v2198_v41 = vrot.slane %v2196_v22, 4  ;;  %v9988_v21 = vld [vmem:[#allocation2 + $0x58] sm:$0xf] }
 0x125   : > { %2708 = vmatprep.mubr.bf16.mxu0 %v7179_v20  ;;  %v2204_v25 = vrot.slane %v2202_v59, 5  ;;  %v2904_v28 = vshrl.u32 %v9948_v19, 16  ;;  %v2907_v0 = vshll.u32 %v9948_v19, 16  ;;  %v2913_v60 = vshll.u32 %v9952_v14, 16  ;;  %8145 = vmatpush3.bf16.msra.mxu0 %v8487_v49 }
 0x126   : > { %3331 = vmatprep.mubr.bf16.mxu1 %v7214_v35  ;;  %v2190_v7 = vrot.slane %v2189_v36, 4  ;;  %v2199_v51 = vor.u32 %v2198_v41, %v2194_v37  ;;  %v2917_v44 = vshrl.u32 %v9952_v14, 16  ;;  %v2923_v39 = vshll.u32 %v9958_v4, 16  ;;  %v9992_v36 = vld [vmem:[#allocation2 + $0x5c] sm:$0x1] }
 0x127   : > { %3332 = vmatmul.mubr.bf16.gmra.mxu1 %v7204_v63  ;;  %v2906_v50 = vrot.slane %v2904_v28, 4  ;;  %v2909_v53 = vrot.slane %v2907_v0, 5  ;;  %v2915_v5 = vrot.slane %v2913_v60, 5  ;;  %v7205_v38 = vcombine.low %v9948_v19, %v9952_v14  ;;  %v9982_v19 = vld [vmem:[#allocation2 + $0x54] sm:$0xf] }
 0x128   : > { %v2195_v31 = vsel %vm9321_vm14, %v2190_v7, %v2194_v37  ;;  %v2200_v13 = vrot.slane %v2199_v51, 4  ;;  %v2919_v24 = vrot.slane %v2917_v44, 4  ;;  %v2925_v10 = vrot.slane %v2923_v39, 5  ;;  %v2332_v51 = vld [vmem:[#allocation2 + $0x54] sm:$0xe] }
 0x129   : > { %v2910_v42 = vor.u32 %v2909_v53, %v2906_v50  ;;  %v7160_v30 = vrot.slane %v2331_v2, 9  ;;  %v2403_v49 = vrot.slane %v2072_v33, 5  ;;  %v2406_v52 = vrot.slane %v2073_v15, 5  ;;  %v2076_v53 = vld [vmem:[#allocation2 + $0x5c] sm:$0x1] }
 0x12a   : > { %v2205_v63 = vsel %vm9321_vm14, %v2200_v13, %v2204_v25  ;;  %v2920_v8 = vor.u32 %v2919_v24, %v2915_v5  ;;  %v2207_v57 = vshrl.u32 %v2071_v47, 16  ;;  %v2210_v12 = vshll.u32 %v2071_v47, 16 }
 0x12b   : > { %v7169_v55 = vcombine.low %v2195_v31, %v2205_v63  ;;  %v2911_v40 = vrot.slane %v2910_v42, 4  ;;  %v2404_v16 = vsel %vm9233_vm11, %v7160_v30, %v2403_v49  ;;  %v2405_v17 = vrot.slane %v2403_v49, 4 }
 0x12c   : > { %v2921_v27 = vrot.slane %v2920_v8, 4  ;;  %v2209_v43 = vrot.slane %v2207_v57, 4  ;;  %v2212_v62 = vrot.slane %v2210_v12, 5  ;;  %v2216_v48 = vshll.u32 %v2072_v33, 16 }
 0x12d   : > { %2709 = vmatmul.mubr.bf16.gmra.mxu0 %v7169_v55  ;;  %v2916_v11 = vsel %vm9321_vm14, %v2911_v40, %v2915_v5  ;;  %v2407_v34 = vsel %vm9233_vm11, %v2405_v17, %v2406_v52  ;;  %v2220_v26 = vshrl.u32 %v2072_v33, 16  ;;  %v2226_v22 = vshll.u32 %v2073_v15, 16  ;;  %v2074_v5 = vld [vmem:[#allocation2 + $0x54] sm:$0xf] }
 0x12e   : > { %v2926_v1 = vsel %vm9321_vm14, %v2921_v27, %v2925_v10  ;;  %v7180_v20 = vcombine.low %v2404_v16, %v2407_v34  ;;  %v2213_v59 = vor.u32 %v2212_v62, %v2209_v43  ;;  %v2218_v35 = vrot.slane %v2216_v48, 5  ;;  %v2075_v10 = vld [vmem:[#allocation2 + $0x58] sm:$0xf]  ;;  %v10016_v62 = vld [vmem:[#allocation2 + $0x60] sm:$0xf] }
 0x12f   : > { %v7215_v37 = vcombine.low %v2916_v11, %v2926_v1  ;;  %v2222_v41 = vrot.slane %v2220_v26, 4  ;;  %v2228_v25 = vrot.slane %v2226_v22, 5  ;;  %v2928_v28 = vshrl.u32 %v9982_v19, 16  ;;  %v10020_v26 = vld [vmem:[#allocation2 + $0x64] sm:$0xf] }
 0x130   : > { %2716 = vmatprep.mubr.bf16.mxu0 %v7180_v20  ;;  %v2214_v0 = vrot.slane %v2213_v59, 4  ;;  %v2931_v60 = vshll.u32 %v9982_v19, 16  ;;  %v2937_v15 = vshll.u32 %v9988_v21, 16  ;;  %v2941_v7 = vshrl.u32 %v9988_v21, 16 }
 0x131   : > { %3339 = vmatprep.mubr.bf16.mxu1 %v7215_v37  ;;  %v2223_v44 = vor.u32 %v2222_v41, %v2218_v35  ;;  %v2930_v39 = vrot.slane %v2928_v28, 4  ;;  %v2947_v2 = vshll.u32 %v9992_v36, 16  ;;  %v7206_v50 = vcombine.low %v9982_v19, %v9988_v21 }
 0x132   : > { %3340 = vmatmul.mubr.bf16.gmra.mxu1 %v7205_v38  ;;  %v2219_v47 = vsel %vm9321_vm14, %v2214_v0, %v2218_v35  ;;  %v2933_v31 = vrot.slane %v2931_v60, 5  ;;  %v2939_v13 = vrot.slane %v2937_v15, 5  ;;  %v2943_v24 = vrot.slane %v2941_v7, 4  ;;  %v10026_v35 = vld [vmem:[#allocation2 + $0x68] sm:$0x1] }
 0x133   : > { %v2224_v33 = vrot.slane %v2223_v44, 4  ;;  %v2949_v42 = vrot.slane %v2947_v2, 5  ;;  %v7161_v30 = vrot.slane %v2332_v51, 9  ;;  %v2410_v49 = vrot.slane %v2075_v10, 5  ;;  %v2079_v51 = vld [vmem:[#allocation2 + $0x68] sm:$0x1] }
 0x134   : > { %v2934_v52 = vor.u32 %v2933_v31, %v2930_v39  ;;  %v2944_v63 = vor.u32 %v2943_v24, %v2939_v13  ;;  %v2413_v8 = vrot.slane %v2076_v53, 5  ;;  %v2231_v57 = vshrl.u32 %v2074_v5, 16 }
 0x135   : > { %v2229_v38 = vsel %vm9321_vm14, %v2224_v33, %v2228_v25  ;;  %v2411_v12 = vsel %vm9233_vm11, %v7161_v30, %v2410_v49  ;;  %v2412_v55 = vrot.slane %v2410_v49, 4  ;;  %v2234_v40 = vshll.u32 %v2074_v5, 16  ;;  %v2333_v5 = vld [vmem:[#allocation2 + $0x60] sm:$0xe] }
 0x136   : > { %v7170_v16 = vcombine.low %v2219_v47, %v2229_v38  ;;  %v2935_v17 = vrot.slane %v2934_v52, 4  ;;  %v2945_v27 = vrot.slane %v2944_v63, 4  ;;  %v2233_v43 = vrot.slane %v2231_v57, 4  ;;  %v2078_v52 = vld [vmem:[#allocation2 + $0x64] sm:$0xf] }
 0x137   : > { %v2414_v48 = vsel %vm9233_vm11, %v2412_v55, %v2413_v8  ;;  %v2236_v19 = vrot.slane %v2234_v40, 5  ;;  %v2240_v11 = vshll.u32 %v2075_v10, 16  ;;  %v2244_v34 = vshrl.u32 %v2075_v10, 16  ;;  %v2077_v10 = vld [vmem:[#allocation2 + $0x60] sm:$0xf] }
 0x138   : > { %2717 = vmatmul.mubr.bf16.gmra.mxu0 %v7170_v16  ;;  %v2940_v22 = vsel %vm9321_vm14, %v2935_v17, %v2939_v13  ;;  %v2950_v1 = vsel %vm9321_vm14, %v2945_v27, %v2949_v42  ;;  %v7181_v20 = vcombine.low %v2411_v12, %v2414_v48  ;;  %v2250_v59 = vshll.u32 %v2076_v53, 16 }
 0x139   : > { %v7216_v37 = vcombine.low %v2940_v22, %v2950_v1  ;;  %v2237_v41 = vor.u32 %v2236_v19, %v2233_v43  ;;  %v2242_v25 = vrot.slane %v2240_v11, 5  ;;  %v2246_v28 = vrot.slane %v2244_v34, 4  ;;  %v10047_v34 = vld [vmem:[#allocation2 + $0x6c] sm:$0xf] }
 0x13a   : > { %2724 = vmatprep.mubr.bf16.mxu0 %v7181_v20  ;;  %v2252_v0 = vrot.slane %v2250_v59, 5  ;;  %v2952_v60 = vshrl.u32 %v10016_v62, 16  ;;  %v2955_v15 = vshll.u32 %v10016_v62, 16  ;;  %v2961_v7 = vshll.u32 %v10020_v26, 16 }
 0x13b   : > { %3347 = vmatprep.mubr.bf16.mxu1 %v7216_v37  ;;  %v2238_v44 = vrot.slane %v2237_v41, 4  ;;  %v2247_v39 = vor.u32 %v2246_v28, %v2242_v25  ;;  %v2965_v2 = vshrl.u32 %v10020_v26, 16  ;;  %v2971_v53 = vshll.u32 %v10026_v35, 16  ;;  %v10053_v37 = vld [vmem:[#allocation2 + $0x70] sm:$0xf] }
 0x13c   : > { %3348 = vmatmul.mubr.bf16.gmra.mxu1 %v7206_v50  ;;  %v2954_v47 = vrot.slane %v2952_v60, 4  ;;  %v2957_v31 = vrot.slane %v2955_v15, 5  ;;  %v2963_v13 = vrot.slane %v2961_v7, 5  ;;  %v7207_v24 = vcombine.low %v10016_v62, %v10020_v26  ;;  %v10058_v60 = vld [vmem:[#allocation2 + $0x74] sm:$0x1] }
 0x13d   : > { %v2243_v33 = vsel %vm9321_vm14, %v2238_v44, %v2242_v25  ;;  %v2248_v42 = vrot.slane %v2247_v39, 4  ;;  %v2967_v30 = vrot.slane %v2965_v2, 4  ;;  %v2973_v49 = vrot.slane %v2971_v53, 5 }
 0x13e   : > { %v2958_v63 = vor.u32 %v2957_v31, %v2954_v47  ;;  %v7162_v8 = vrot.slane %v2333_v5, 9  ;;  %v2417_v57 = vrot.slane %v2078_v52, 5  ;;  %v2420_v50 = vrot.slane %v2079_v51, 5  ;;  %v2334_v47 = vld [vmem:[#allocation2 + $0x6c] sm:$0xe] }
 0x13f   : > { %v2253_v38 = vsel %vm9321_vm14, %v2248_v42, %v2252_v0  ;;  %v2968_v12 = vor.u32 %v2967_v30, %v2963_v13  ;;  %v2255_v55 = vshrl.u32 %v2077_v10, 16  ;;  %v2258_v40 = vshll.u32 %v2077_v10, 16  ;;  %v2082_v42 = vld [vmem:[#allocation2 + $0x74] sm:$0x1]  ;;  %v2080_v30 = vld [vmem:[#allocation2 + $0x6c] sm:$0xf] }
 0x140   : > { %v7171_v16 = vcombine.low %v2243_v33, %v2253_v38  ;;  %v2959_v17 = vrot.slane %v2958_v63, 4  ;;  %v2418_v27 = vsel %vm9233_vm11, %v7162_v8, %v2417_v57  ;;  %v2419_v43 = vrot.slane %v2417_v57, 4  ;;  %v2081_v57 = vld [vmem:[#allocation2 + $0x70] sm:$0xf] }
 0x141   : > { %v2969_v62 = vrot.slane %v2968_v12, 4  ;;  %v2257_v48 = vrot.slane %v2255_v55, 4  ;;  %v2260_v19 = vrot.slane %v2258_v40, 5  ;;  %v2264_v11 = vshll.u32 %v2078_v52, 16 }
 0x142   : > { %2725 = vmatmul.mubr.bf16.gmra.mxu0 %v7171_v16  ;;  %v2964_v22 = vsel %vm9321_vm14, %v2959_v17, %v2963_v13  ;;  %v2421_v1 = vsel %vm9233_vm11, %v2419_v43, %v2420_v50  ;;  %v2268_v20 = vshrl.u32 %v2078_v52, 16  ;;  %v2274_v59 = vshll.u32 %v2079_v51, 16 }
 0x143   : > { %v2974_v41 = vsel %vm9321_vm14, %v2969_v62, %v2973_v49  ;;  %v7182_v25 = vcombine.low %v2418_v27, %v2421_v1  ;;  %v2261_v28 = vor.u32 %v2260_v19, %v2257_v48  ;;  %v2266_v0 = vrot.slane %v2264_v11, 5  ;;  %v430_v1 = vld [vmem:[#allocation2 + $0x80] sm:$0x1] }
 0x144   : > { %v7217_v15 = vcombine.low %v2964_v22, %v2974_v41  ;;  %v2270_v7 = vrot.slane %v2268_v20, 4  ;;  %v2276_v44 = vrot.slane %v2274_v59, 5  ;;  %v2976_v39 = vshrl.u32 %v10047_v34, 16 }
 0x145   : > { %2732 = vmatprep.mubr.bf16.mxu0 %v7182_v25  ;;  %v2262_v51 = vrot.slane %v2261_v28, 4  ;;  %v2979_v2 = vshll.u32 %v10047_v34, 16  ;;  %v2985_v53 = vshll.u32 %v10053_v37, 16  ;;  %v2989_v5 = vshrl.u32 %v10053_v37, 16  ;;  %v10097_v28 = vld [vmem:[#allocation2 + $0x78] sm:$0xf] }
 0x146   : > { %3355 = vmatprep.mubr.bf16.mxu1 %v7217_v15  ;;  %v2271_v31 = vor.u32 %v2270_v7, %v2266_v0  ;;  %v2978_v13 = vrot.slane %v2976_v39, 4  ;;  %v2995_v10 = vshll.u32 %v10058_v60, 16  ;;  %v7208_v33 = vcombine.low %v10047_v34, %v10053_v37 }
 0x147   : > { %3356 = vmatmul.mubr.bf16.gmra.mxu1 %v7207_v24  ;;  %v2267_v49 = vsel %vm9321_vm14, %v2262_v51, %v2266_v0  ;;  %v2981_v52 = vrot.slane %v2979_v2, 5  ;;  %v2987_v63 = vrot.slane %v2985_v53, 5  ;;  %v2991_v8 = vrot.slane %v2989_v5, 4  ;;  %v10103_v5 = vld [vmem:[#allocation2 + $0x7c] sm:$0xf] }
 0x148   : > { %v2272_v50 = vrot.slane %v2271_v31, 4  ;;  %v2997_v38 = vrot.slane %v2995_v10, 5  ;;  %v7163_v12 = vrot.slane %v2334_v47, 9  ;;  %v2424_v55 = vrot.slane %v2081_v57, 5 }
 0x149   : > { %v2982_v40 = vor.u32 %v2981_v52, %v2978_v13  ;;  %v2992_v24 = vor.u32 %v2991_v8, %v2987_v63  ;;  %v2427_v16 = vrot.slane %v2082_v42, 5  ;;  %v2279_v17 = vshrl.u32 %v2080_v30, 16 }
 0x14a   : > { %v2277_v27 = vsel %vm9321_vm14, %v2272_v50, %v2276_v44  ;;  %v2425_v43 = vsel %vm9233_vm11, %v7163_v12, %v2424_v55  ;;  %v2426_v62 = vrot.slane %v2424_v55, 4  ;;  %v2282_v48 = vshll.u32 %v2080_v30, 16  ;;  %v2084_v50 = vld [vmem:[#allocation2 + $0x7c] sm:$0xf] }
 0x14b   : > { %v7172_v19 = vcombine.low %v2267_v49, %v2277_v27  ;;  %v2983_v11 = vrot.slane %v2982_v40, 4  ;;  %v2993_v34 = vrot.slane %v2992_v24, 4  ;;  %v2281_v22 = vrot.slane %v2279_v17, 4  ;;  %v2083_v49 = vld [vmem:[#allocation2 + $0x78] sm:$0xf] }
 0x14c   : > { %v2428_v20 = vsel %vm9233_vm11, %v2426_v62, %v2427_v16  ;;  %v2284_v59 = vrot.slane %v2282_v48, 5  ;;  %v2288_v41 = vshll.u32 %v2081_v57, 16  ;;  %v2292_v25 = vshrl.u32 %v2081_v57, 16  ;;  %v2335_v40 = vld [vmem:[#allocation2 + $0x78] sm:$0xe] }
 0x14d   : > { %2733 = vmatmul.mubr.bf16.gmra.mxu0 %v7172_v19  ;;  %v2988_v0 = vsel %vm9321_vm14, %v2983_v11, %v2987_v63  ;;  %v2998_v15 = vsel %vm9321_vm14, %v2993_v34, %v2997_v38  ;;  %v7183_v7 = vcombine.low %v2425_v43, %v2428_v20  ;;  %v2298_v44 = vshll.u32 %v2082_v42, 16  ;;  %v395_v43 = vld [vmem:[#allocation2 + $0x84] sm:$0x1]  ;;  %v433_v62 = vld [vmem:[#allocation2 + $0x8c] sm:$0x1] }
 0x14e   : > { %v7218_v39 = vcombine.low %v2988_v0, %v2998_v15  ;;  %v2285_v51 = vor.u32 %v2284_v59, %v2281_v22  ;;  %v2290_v2 = vrot.slane %v2288_v41, 5  ;;  %v2294_v53 = vrot.slane %v2292_v25, 4  ;;  %v937_v22 = vld [vmem:[%s936_s20] sm:$0xff] }
 0x14f   : > { %2740 = vmatprep.mubr.bf16.mxu0 %v7183_v7  ;;  %v431_v47 = vsel %vm9123_vm4, 0, %v430_v1  ;;  %v3000_v31 = vshrl.u32 %v10097_v28, 16  ;;  %v3003_v13 = vshll.u32 %v10097_v28, 16  ;;  %v2300_v30 = vrot.slane %v2298_v44, 5  ;;  %v938_v1 = vld [vmem:[%s936_s20 + $0x8] sm:$0xff] }
 0x150   : > { %3363 = vmatprep.mubr.bf16.mxu1 %v7218_v39  ;;  %v2286_v10 = vrot.slane %v2285_v51, 4  ;;  %v2295_v42 = vor.u32 %v2294_v53, %v2290_v2  ;;  %432 = vst [vmem:[#allocation2 + $0x80] sm:$0x1] %v431_v47  ;;  %v3009_v8 = vshll.u32 %v10103_v5, 16  ;;  %v3013_v57 = vshrl.u32 %v10103_v5, 16 }
 0x151   : > { %3364 = vmatmul.mubr.bf16.gmra.mxu1 %v7208_v33  ;;  %v3002_v52 = vrot.slane %v3000_v31, 4  ;;  %v3005_v63 = vrot.slane %v3003_v13, 5  ;;  %v902_v55 = vrot.slane %v9793_v56, 4  ;;  %v2303_v24 = vshrl.u32 %v2083_v49, 16  ;;  %v3408_v47 = vld [vmem:[#allocation2 + $0x18] sm:$0xe] }
 0x152   : > { %v2291_v38 = vsel %vm9321_vm14, %v2286_v10, %v2290_v2  ;;  %v2296_v12 = vrot.slane %v2295_v42, 4  ;;  %v2306_v33 = vshll.u32 %v2083_v49, 16  ;;  %v2312_v17 = vshll.u32 %v2084_v50, 16  ;;  %v8489_v10 = vld [vmem:[#allocation2 + $0x1c] sm:$0xf] }
 0x153   : > { %v2316_v27 = vshrl.u32 %v2084_v50, 16  ;;  %v3006_v19 = vor.u32 %v3005_v63, %v3002_v52  ;;  %v10121_v11 = vrot.slane %v3009_v8, 5  ;;  %v3015_v34 = vrot.slane %v3013_v57, 4  ;;  %v10141_v8 = vld [vmem:[#allocation2 + $0x24] sm:$0xe] }
 0x154   : > { %v2301_v16 = vsel %vm9321_vm14, %v2296_v12, %v2300_v30  ;;  %v7164_v56 = vrot.slane %v2335_v40, 9  ;;  %v2431_v20 = vrot.slane %v2084_v50, 5  ;;  %v2305_v59 = vrot.slane %v2303_v24, 4 }
 0x155   : > { %v7173_v48 = vcombine.low %v2291_v38, %v2301_v16  ;;  %v2308_v41 = vrot.slane %v2306_v33, 5  ;;  %v10125_v0 = vrot.slane %v2312_v17, 5  ;;  %v2318_v15 = vrot.slane %v2316_v27, 4  ;;  %v8490_v38 = vld [vmem:[#allocation2 + $0x20] sm:$0x1] }
 0x156   : > { %v396_v7 = vsel %vm9088_vm3, 0, %v395_v43  ;;  %v434_v44 = vsel %vm9123_vm4, 0, %v433_v62  ;;  %v939_v2 = vpack.c.bf16 %v938_v1, %v937_v22  ;;  %v942_v53 = vstv %s941_s18  ;;  %v3410_v17 = vld [vmem:[#allocation2 + $0x30] sm:$0xe] }
 0x157   : > { %2741 = vmatmul.mubr.bf16.gmra.mxu0 %v7173_v48  ;;  %v911_v25 = vld [vmem:[#allocation2 + $0x80] sm:$0x1]  ;;  %v2309_v51 = vor.u32 %v2308_v41, %v2305_v59  ;;  %397 = vst [vmem:[#allocation2 + $0x84] sm:$0x1] %v396_v7  ;;  %435 = vst [vmem:[#allocation2 + $0x8c] sm:$0x1] %v434_v44  ;;  %v3016_v13 = vor.u32 %v3015_v34, %v10121_v11  ;;  %v7209_v49 = vcombine.low %v10097_v28, %v10103_v5 }
 0x158   : > { %v912_v39 = vsel %vm9088_vm3, %v902_v55, %v911_v25  ;;  %v10133_v31 = vrot.slane %v3006_v19, 4  ;;  %v3440_v42 = vrot.slane %v8489_v10, 5  ;;  %v3450_v30 = vrot.slane %v9876_v54, 5 }
 0x159   : > { %913 = vst [vmem:[#allocation2 + $0x80] sm:$0x1] %v912_v39  ;;  %v2432_v52 = vsel %vm9233_vm11, %v7164_v56, %v2431_v20  ;;  %v944_v63 = vmul.bf16 %v942_v53, %v939_v2  ;;  %v2319_v57 = vor.u32 %v2318_v15, %v10125_v0  ;;  %v7237_v50 = vrot.slane %v3408_v47, 9 }
 0x15a   : > { %v3443_v12 = vrot.slane %v8490_v38, 5  ;;  %v3447_v55 = vrot.slane %v9872_v6, 5  ;;  %v2310_v40 = vrot.slane %v2309_v51, 4  ;;  %v3442_v16 = vrot.slane %v3440_v42, 4 }
 0x15b   : > { %v7071_v24 = vcombine.low %v944_v63, %v944_v63  ;;  %v7072_v33 = vcombine.high %v944_v63, %v944_v63  ;;  %v3012_v27 = vsel %vm9321_vm14, %v10133_v31, %v10121_v11  ;;  %v3017_v43 = vrot.slane %v3016_v13, 4 }
 0x15c   : > { %v2433_v62 = vrot.slane %v2431_v20, 4  ;;  %v7238_v48 = vrot.slane %v10141_v8, 9  ;;  %v2320_v56 = vrot.slane %v2319_v57, 4  ;;  %v3441_v59 = vsel %vm9233_vm11, %v7237_v50, %v3440_v42 }
 0x15d   : > { %v951_v19 = vshrl.u32 %v7071_v24, 16  ;;  %v954_v34 = vshll.u32 %v7071_v24, 16  ;;  %v959_v22 = vshrl.u32 %v7072_v33, 16  ;;  %v962_v1 = vshll.u32 %v7072_v33, 16 }
 0x15e   : > { %v971_v6 = vld [vmem:[#allocation2 + $0x84] sm:$0xf]  ;;  %v3449_v41 = vrot.slane %v3447_v55, 4  ;;  %v7239_v25 = vrot.slane %v3410_v17, 9  ;;  %v2315_v11 = vsel %vm9321_vm14, %v2310_v40, %v10125_v0  ;;  %v3444_v39 = vsel %vm9233_vm11, %v3442_v16, %v3443_v12  ;;  %v975_v47 = vld [vmem:[#allocation2 + $0x8c] sm:$0x1] }
 0x15f   : > { %v953_v20 = vrot.slane %v951_v19, 7  ;;  %v961_v44 = vrot.slane %v959_v22, 7  ;;  %v3454_v31 = vrot.slane %v9899_v61, 5  ;;  %v3457_v50 = vrot.slane %v9905_v58, 5  ;;  %v3413_v16 = vld [vmem:[#allocation2 + $0x54] sm:$0xe] }
 0x160   : > { %v10152_v15 = vld [vmem:[#allocation2 + $0x80] sm:$0x1]  ;;  %v7247_v58 = vcombine.low %v3441_v59, %v3444_v39  ;;  %v3411_v19 = vld [vmem:[#allocation2 + $0x3c] sm:$0xe]  ;;  %v3412_v22 = vld [vmem:[#allocation2 + $0x48] sm:$0xe] }
 0x161   : > { %v2085_v7 = vld [vmem:[#allocation2 + $0x80] sm:$0x1]  ;;  %v3019_v51 = vshll.u32 %v10152_v15, 16  ;;  %v956_v13 = vor.u32 %v954_v34, %v953_v20  ;;  %v957_v10 = vrot.slane %v953_v20, 4  ;;  %v964_v42 = vor.u32 %v962_v1, %v961_v44 }
 0x162   : > { %v2434_v2 = vrot.slane %v2085_v7, 5  ;;  %v2322_v53 = vshll.u32 %v2085_v7, 16  ;;  %v966_v63 = vrot.slane %v961_v44, 4  ;;  %v3461_v34 = vrot.slane %v9926_v29, 5 }
 0x163   : > { %v3021_v8 = vrot.slane %v3019_v51, 5  ;;  %v965_v12 = vsel %vm9175_vm7, %v957_v10, %v964_v42  ;;  %v972_v40 = vsel %vm9183_vm8, %v956_v13, %v971_v6  ;;  %v7242_v1 = vrot.slane %v3413_v16, 9 }
 0x164   : > { %v2435_v0 = vsel %vm9233_vm11, %v2433_v62, %v2434_v2  ;;  %v2324_v57 = vrot.slane %v2322_v53, 5  ;;  %v976_v61 = vsel %vm9088_vm3, %v966_v63, %v975_v47  ;;  %973 = vst [vmem:[#allocation2 + $0x84] sm:$0xf] %v972_v40  ;;  %974 = vst [vmem:[#allocation2 + $0x88] sm:$0xf] %v965_v12  ;;  %v3478_v6 = vrot.slane %v9992_v36, 5 }
 0x165   : > { %v7184_v38 = vcombine.low %v2432_v52, %v2435_v0  ;;  %v3022_v24 = vsel %vm9321_vm14, %v3017_v43, %v3021_v8  ;;  %977 = vst [vmem:[#allocation2 + $0x8c] sm:$0x1] %v976_v61  ;;  %v3456_v52 = vrot.slane %v3454_v31, 4  ;;  %v3448_v43 = vsel %vm9233_vm11, %v7238_v48, %v3447_v55 }
 0x166   : > { %v2325_v33 = vsel %vm9321_vm14, %v2320_v56, %v2324_v57  ;;  %v7219_v17 = vcombine.low %v3012_v27, %v3022_v24  ;;  %v3475_v56 = vrot.slane %v9988_v21, 5  ;;  %v3451_v29 = vsel %vm9233_vm11, %v3449_v41, %v3450_v30 }
 0x167   : > { %2748 = vmatprep.mubr.bf16.mxu0 %v7184_v38  ;;  %v7174_v62 = vcombine.low %v2315_v11, %v2325_v33  ;;  %v3455_v27 = vsel %vm9233_vm11, %v7239_v25, %v3454_v31  ;;  %v3458_v55 = vsel %vm9233_vm11, %v3456_v52, %v3457_v50  ;;  %v7240_v48 = vrot.slane %v3411_v19, 9 }
 0x168   : > { %3371 = vmatprep.mubr.bf16.mxu1 %v7219_v17  ;;  %v3468_v21 = vrot.slane %v9952_v14, 5  ;;  %v3477_v36 = vrot.slane %v3475_v56, 4  ;;  %v3463_v59 = vrot.slane %v3461_v34, 4  ;;  %v3464_v28 = vrot.slane %v9930_v46, 5 }
 0x169   : > { %2749 = vmatmul.mubr.bf16.gmra.mxu0 %v7174_v62  ;;  %3372 = vmatmul.mubr.bf16.gmra.mxu1 %v7209_v49  ;;  %v7241_v49 = vrot.slane %v3412_v22, 9  ;;  %v10194_v54 = vsel %vm9233_vm11, %v7242_v1, %v3475_v56  ;;  %v7536_v7 = vpop.f32.mrf.mxu0  ;;  %v7248_v11 = vcombine.low %v3448_v43, %v3451_v29  ;;  %v7249_v20 = vcombine.low %v3455_v27, %v3458_v55 }
 0x16a   : > { %8146 = vmatprep.mubr.bf16.mxu0 %v7247_v58  ;;  %v10202_v14 = vsel %vm9233_vm11, %v3477_v36, %v3478_v6  ;;  %v3470_v47 = vrot.slane %v3468_v21, 4  ;;  %v3471_v31 = vrot.slane %v9958_v4, 5  ;;  %v3462_v57 = vsel %vm9233_vm11, %v7240_v48, %v3461_v34  ;;  %v3414_v4 = vld [vmem:[#allocation2 + $0x60] sm:$0xe] }
 0x16b   : > { %v2795_v30 = vld [vmem:[#allocation2 + $0x84] sm:$0xf]  ;;  %v10196_v41 = vld [vmem:[#allocation2 + $0x88] sm:$0xf]  ;;  %v7537_v2 = vpop.f32.mrf.mxu0  ;;  %v7252_v13 = vcombine.low %v10194_v54, %v10202_v14  ;;  %v3465_v40 = vsel %vm9233_vm11, %v3463_v59, %v3464_v28  ;;  %v3469_v33 = vsel %vm9233_vm11, %v7241_v49, %v3468_v21  ;;  %v3482_v52 = vrot.slane %v10020_v26, 5 }
 0x16c   : > { %v10198_v25 = vld [vmem:[#allocation2 + $0x8c] sm:$0x1]  ;;  %v3024_v44 = vshrl.u32 %v2795_v30, 16  ;;  %v3027_v39 = vshll.u32 %v2795_v30, 16  ;;  %v3033_v46 = vshll.u32 %v10196_v41, 16  ;;  %v3037_v51 = vshrl.u32 %v10196_v41, 16 }
 0x16d   : > { %v3043_v53 = vshll.u32 %v10198_v25, 16  ;;  %v7539_v0 = vpop.f32.mrf.mxu0  ;;  %v3472_v58 = vsel %vm9233_vm11, %v3470_v47, %v3471_v31  ;;  %v7250_v34 = vcombine.low %v3462_v57, %v3465_v40  ;;  %v7243_v43 = vrot.slane %v3414_v4, 9  ;;  %v3417_v54 = vld [vmem:[#allocation2 + $0x84] sm:$0xe] }
 0x16e   : > { %v3026_v10 = vrot.slane %v3024_v44, 4  ;;  %v3029_v42 = vrot.slane %v3027_v39, 5  ;;  %v3035_v63 = vrot.slane %v3033_v46, 5  ;;  %v3039_v8 = vrot.slane %v3037_v51, 4 }
 0x16f   : > { %v3045_v12 = vrot.slane %v3043_v53, 5  ;;  %v7540_v24 = vpop.f32.mrf.mxu0  ;;  %v7538_v22 = vadd.f32 %v7537_v2, %v7536_v7  ;;  %v7210_v6 = vcombine.low %v2795_v30, %v10196_v41  ;;  %v7251_v29 = vcombine.low %v3469_v33, %v3472_v58  ;;  %v3416_v2 = vld [vmem:[#allocation2 + $0x78] sm:$0xe] }
 0x170   : > { %v3030_v50 = vor.u32 %v3029_v42, %v3026_v10  ;;  %v3040_v38 = vor.u32 %v3039_v8, %v3035_v63  ;;  %v7612_v61 = vpop.f32.mrf.mxu1  ;;  %v3484_v26 = vrot.slane %v3482_v52, 4  ;;  %v3485_v21 = vrot.slane %v10026_v35, 5 }
 0x171   : > { %8147 = vmatmul.mubr.bf16.vlgmr.msra.gmra.mxu0 %v7248_v11  ;;  %v7541_v36 = vadd.f32 %v7540_v24, %v7539_v0  ;;  %v3483_v30 = vsel %vm9233_vm11, %v7243_v43, %v3482_v52  ;;  %v3489_v44 = vrot.slane %v10053_v37, 5  ;;  %v3496_v53 = vrot.slane %v10103_v5, 5 }
 0x172   : > { %8150 = vmatprep.mubr.bf16.mxu0 %v7249_v20  ;;  %v3031_v16 = vrot.slane %v3030_v50, 4  ;;  %v3041_v17 = vrot.slane %v3040_v38, 4  ;;  %v7613_v62 = vpop.f32.mrf.mxu1  ;;  %v7542_v19 = vpop.f32.mrf.mxu0  ;;  %v3415_v20 = vld [vmem:[#allocation2 + $0x6c] sm:$0xe]  ;;  %v3486_v51 = vsel %vm9233_vm11, %v3484_v26, %v3485_v21  ;;  %v3492_v37 = vrot.slane %v10058_v60, 5 }
 0x173   : > { %v7614_v59 = vadd.f32 %v7613_v62, %v7612_v61  ;;  %v7253_v0 = vcombine.low %v3483_v30, %v3486_v51  ;;  %v3491_v57 = vrot.slane %v3489_v44, 4  ;;  %v7245_v50 = vrot.slane %v3416_v2, 9 }
 0x174   : > { %v3036_v1 = vsel %vm9321_vm14, %v3031_v16, %v3035_v63  ;;  %v3046_v56 = vsel %vm9321_vm14, %v3041_v17, %v3045_v12  ;;  %v7615_v27 = vpop.f32.mrf.mxu1  ;;  %v7543_v55 = vpop.f32.mrf.mxu0  ;;  %v7244_v63 = vrot.slane %v3415_v20, 9  ;;  %v3498_v40 = vrot.slane %v3496_v53, 4 }
 0x175   : > { %v7220_v48 = vcombine.low %v3036_v1, %v3046_v56  ;;  %v7544_v28 = vadd.f32 %v7543_v55, %v7542_v19  ;;  %v10228_v39 = vadd.f32 %v7614_v59, %v7538_v22  ;;  %v3499_v4 = vrot.slane %v10152_v15, 5 }
 0x176   : > { %v7616_v49 = vpop.f32.mrf.mxu1  ;;  %v7545_v7 = vpop.f32.mrf.mxu0  ;;  %v3490_v60 = vsel %vm9233_vm11, %v7244_v63, %v3489_v44  ;;  %v3493_v52 = vsel %vm9233_vm11, %v3491_v57, %v3492_v37  ;;  %v3503_v16 = vrot.slane %v10196_v41, 5  ;;  %v3497_v62 = vsel %vm9233_vm11, %v7245_v50, %v3496_v53 }
 0x177   : > { %3379 = vmatprep.mubr.bf16.mxu1 %v7220_v48  ;;  %v7617_v11 = vadd.f32 %v7616_v49, %v7615_v27  ;;  %v3500_v19 = vsel %vm9233_vm11, %v3498_v40, %v3499_v4  ;;  %v7254_v43 = vcombine.low %v3490_v60, %v3493_v52  ;;  %v3506_v41 = vrot.slane %v10198_v25, 5 }
 0x178   : > { %3380 = vmatmul.mubr.bf16.gmra.mxu1 %v7210_v6  ;;  %v7618_v46 = vpop.f32.mrf.mxu1  ;;  %v7546_v35 = vpop.f32.mrf.mxu0  ;;  %v7255_v56 = vcombine.low %v3497_v62, %v3500_v19  ;;  %v7246_v6 = vrot.slane %v3417_v54, 9 }
 0x179   : > { %8151 = vmatmul.mubr.bf16.gmra.mxu0 %v7250_v34  ;;  %v10233_v47 = vadd.f32 %v7617_v11, %v7541_v36  ;;  %v7547_v31 = vadd.f32 %v7546_v35, %v7545_v7 }
 0x17a   : > { %8154 = vmatprep.mubr.bf16.mxu0 %v7251_v29  ;;  %v7619_v10 = vpop.f32.mrf.mxu1  ;;  %v7548_v42 = vpop.f32.mrf.mxu0  ;;  %v3505_v29 = vrot.slane %v3503_v16, 4 }
 0x17b   : > { %v7620_v8 = vadd.f32 %v7619_v10, %v7618_v46 }
 0x17c   : > { %v7621_v38 = vpop.f32.mrf.mxu1  ;;  %v7549_v12 = vpop.f32.mrf.mxu0  ;;  %v3507_v49 = vsel %vm9233_vm11, %v3505_v29, %v3506_v41 }
 0x17d   : > { %v10237_v61 = vadd.f32 %v7620_v8, %v7544_v28  ;;  %v7550_v5 = vadd.f32 %v7549_v12, %v7548_v42  ;;  %v3504_v28 = vsel %vm9233_vm11, %v7246_v6, %v3503_v16 }
 0x17e   : > { %v7622_v24 = vpop.f32.mrf.mxu1  ;;  %v7551_v33 = vpop.f32.mrf.mxu0  ;;  %v7256_v44 = vcombine.low %v3504_v28, %v3507_v49 }
 0x17f   : > { %v7623_v58 = vadd.f32 %v7622_v24, %v7621_v38 }
 0x180   : > { %v7624_v15 = vpop.f32.mrf.mxu1  ;;  %v7552_v17 = vpop.f32.mrf.mxu0 }
 0x181   : > { %8155 = vmatmul.mubr.bf16.gmra.mxu0 %v7252_v13  ;;  %v10251_v14 = vadd.f32 %v7623_v58, %v7547_v31  ;;  %v7553_v13 = vadd.f32 %v7552_v17, %v7551_v33 }
 0x182   : > { %8158 = vmatprep.mubr.bf16.mxu0 %v7253_v0  ;;  %v7625_v34 = vpop.f32.mrf.mxu1 }
 0x183   : > { %v7626_v22 = vadd.f32 %v7625_v34, %v7624_v15  ;;  %v7554_v1 = vpop.f32.mrf.mxu0 }
 0x184   : > { %v7627_v27 = vpop.f32.mrf.mxu1 }
 0x185   : > { %v10254_v55 = vadd.f32 %v7626_v22, %v7550_v5  ;;  %v7555_v48 = vpop.f32.mrf.mxu0 }
 0x186   : > { %v7556_v26 = vadd.f32 %v7555_v48, %v7554_v1  ;;  %v7628_v21 = vpop.f32.mrf.mxu1 }
 0x187   : > { %v7629_v36 = vadd.f32 %v7628_v21, %v7627_v27  ;;  %v7557_v59 = vpop.f32.mrf.mxu0 }
 0x188   : > { %v7630_v7 = vpop.f32.mrf.mxu1 }
 0x189   : > { %8159 = vmatmul.mubr.bf16.gmra.mxu0 %v7254_v43  ;;  %v10260_v11 = vadd.f32 %v7629_v36, %v7553_v13  ;;  %v7558_v25 = vpop.f32.mrf.mxu0 }
 0x18a   : > { %8162 = vmatprep.mubr.bf16.mxu0 %v7255_v56  ;;  %v7559_v30 = vadd.f32 %v7558_v25, %v7557_v59  ;;  %v7631_v20 = vpop.f32.mrf.mxu1 }
 0x18b   : > { %v7632_v46 = vadd.f32 %v7631_v20, %v7630_v7  ;;  %v7560_v35 = vpop.f32.mrf.mxu0 }
 0x18c   : > { %v7633_v51 = vpop.f32.mrf.mxu1 }
 0x18d   : > { %v10262_v2 = vadd.f32 %v7632_v46, %v7556_v26  ;;  %v7561_v53 = vpop.f32.mrf.mxu0 }
 0x18e   : > { %v7562_v31 = vadd.f32 %v7561_v53, %v7560_v35  ;;  %v7634_v10 = vpop.f32.mrf.mxu1 }
 0x18f   : > { %v7635_v42 = vadd.f32 %v7634_v10, %v7633_v51  ;;  %v7563_v63 = vpop.f32.mrf.mxu0 }
 0x190   : > { %v7636_v8 = vpop.f32.mrf.mxu1 }
 0x191   : > { %8163 = vmatmul.mubr.bf16.gmra.mxu0 %v7256_v44  ;;  %v10264_v0 = vadd.f32 %v7635_v42, %v7559_v30  ;;  %v7564_v57 = vpop.f32.mrf.mxu0 }
 0x192   : > { %v7565_v37 = vadd.f32 %v7564_v57, %v7563_v63  ;;  %v7637_v50 = vpop.f32.mrf.mxu1 }
 0x193   : > { %v7638_v38 = vadd.f32 %v7637_v50, %v7636_v8 }
 0x194   : > { %v7639_v12 = vpop.f32.mrf.mxu1 }
 0x195   : > { %v10266_v40 = vadd.f32 %v7638_v38, %v7562_v31 }
 0x196   : > { %v7640_v4 = vpop.f32.mrf.mxu1 }
 0x197   : > { %v7641_v24 = vadd.f32 %v7640_v4, %v7639_v12 }
 0x198   : > { %v7566_v5 = vpop.f32.mrf.mxu0 }
 0x199   : > { %v10268_v58 = vadd.f32 %v7641_v24, %v7565_v37 }
 0x19a   : > { %v7567_v33 = vpop.f32.mrf.mxu0 }
 0x19b   : > { %v7568_v60 = vadd.f32 %v7567_v33, %v7566_v5  ;;  %v7642_v52 = vpop.f32.mrf.mxu1 }
 0x19c   : > { %v7569_v16 = vpop.f32.mrf.mxu0 }
 0x19d   : > { %v7643_v15 = vpop.f32.mrf.mxu1 }
 0x19e   : > { %v7570_v17 = vpop.f32.mrf.mxu0  ;;  %v7644_v62 = vadd.f32 %v7643_v15, %v7642_v52 }
 0x19f   : > { %v7571_v19 = vadd.f32 %v7570_v17, %v7569_v16  ;;  %v7645_v54 = vpop.f32.mrf.mxu1 }
 0x1a0   : > { %v10270_v13 = vadd.f32 %v7644_v62, %v7568_v60 }
 0x1a1   : > { %v7646_v34 = vpop.f32.mrf.mxu1 }
 0x1a2   : > { %v7647_v43 = vadd.f32 %v7646_v34, %v7645_v54 }
 0x1a3   : > { %v7572_v22 = vpop.f32.mrf.mxu0 }
 0x1a4   : > { %v10272_v1 = vadd.f32 %v7647_v43, %v7571_v19 }
 0x1a5   : > { %v7573_v56 = vpop.f32.mrf.mxu0 }
 0x1a6   : > { %v7574_v6 = vadd.f32 %v7573_v56, %v7572_v22  ;;  %v7648_v29 = vpop.f32.mrf.mxu1 }
 0x1a7   : > { %v7575_v41 = vpop.f32.mrf.mxu0 }
 0x1a8   : > { %v7649_v27 = vpop.f32.mrf.mxu1 }
 0x1a9   : > { %v7576_v48 = vpop.f32.mrf.mxu0  ;;  %v7650_v26 = vadd.f32 %v7649_v27, %v7648_v29 }
 0x1aa   : > { %v7577_v21 = vadd.f32 %v7576_v48, %v7575_v41  ;;  %v7651_v36 = vpop.f32.mrf.mxu1 }
 0x1ab   : > { %v10274_v59 = vadd.f32 %v7650_v26, %v7574_v6  ;;  %v7578_v28 = vpop.f32.mrf.mxu0 }
 0x1ac   : > { %v7652_v49 = vpop.f32.mrf.mxu1 }
 0x1ad   : > { %v7579_v7 = vpop.f32.mrf.mxu0  ;;  %v7653_v25 = vadd.f32 %v7652_v49, %v7651_v36 }
 0x1ae   : > { %v7580_v30 = vadd.f32 %v7579_v7, %v7578_v28  ;;  %v7654_v20 = vpop.f32.mrf.mxu1 }
 0x1af   : > { %v10276_v44 = vadd.f32 %v7653_v25, %v7577_v21  ;;  %v7581_v46 = vpop.f32.mrf.mxu0 }
 0x1b0   : > { %v7655_v35 = vpop.f32.mrf.mxu1 }
 0x1b1   : > { %v7582_v51 = vpop.f32.mrf.mxu0  ;;  %v7656_v53 = vadd.f32 %v7655_v35, %v7654_v20 }
 0x1b2   : > { %v7583_v31 = vadd.f32 %v7582_v51, %v7581_v46  ;;  %v7657_v10 = vpop.f32.mrf.mxu1 }
 0x1b3   : > { %v10278_v42 = vadd.f32 %v7656_v53, %v7580_v30 }
 0x1b4   : > { %v7658_v8 = vpop.f32.mrf.mxu1 }
 0x1b5   : > { %11494 = vst [vmem:[#allocation30_spill] sm:$0xff] %v10278_v42  ;;  %v7584_v63 = vpop.f32.mrf.mxu0  ;;  %v7659_v57 = vadd.f32 %v7658_v8, %v7657_v10 }
 0x1b7   : > { %v7585_v37 = vpop.f32.mrf.mxu0  ;;  %v10280_v38 = vadd.f32 %v7659_v57, %v7583_v31 }
 0x1b8   : > { %v7586_v50 = vadd.f32 %v7585_v37, %v7584_v63  ;;  %v7660_v12 = vpop.f32.mrf.mxu1 }
 0x1b9   : > { %11495 = vst [vmem:[#allocation31_spill] sm:$0xff] %v10280_v38  ;;  %v7587_v4 = vpop.f32.mrf.mxu0 }
 0x1ba   : > { %v7661_v5 = vpop.f32.mrf.mxu1 }
 0x1bb   : > { %v7588_v24 = vpop.f32.mrf.mxu0  ;;  %v7662_v33 = vadd.f32 %v7661_v5, %v7660_v12 }
 0x1bc   : > { %v7589_v60 = vadd.f32 %v7588_v24, %v7587_v4  ;;  %v7663_v52 = vpop.f32.mrf.mxu1 }
 0x1bd   : > { %v10282_v16 = vadd.f32 %v7662_v33, %v7586_v50 }
 0x1be   : > { %v7664_v15 = vpop.f32.mrf.mxu1 }
 0x1bf   : > { %v7665_v17 = vadd.f32 %v7664_v15, %v7663_v52 }
 0x1c0   : > { %v7590_v62 = vpop.f32.mrf.mxu0 }
 0x1c1   : > { %v10284_v19 = vadd.f32 %v7665_v17, %v7589_v60 }
 0x1c2   : > { %v7591_v54 = vpop.f32.mrf.mxu0 }
 0x1c3   : > { %v7592_v34 = vadd.f32 %v7591_v54, %v7590_v62  ;;  %v7666_v43 = vpop.f32.mrf.mxu1 }
 0x1c4   : > { %v7593_v22 = vpop.f32.mrf.mxu0 }
 0x1c5   : > { %v7667_v56 = vpop.f32.mrf.mxu1 }
 0x1c6   : > { %v7594_v6 = vpop.f32.mrf.mxu0  ;;  %v7668_v29 = vadd.f32 %v7667_v56, %v7666_v43 }
 0x1c7   : > { %v7595_v41 = vadd.f32 %v7594_v6, %v7593_v22  ;;  %v7669_v27 = vpop.f32.mrf.mxu1 }
 0x1c8   : > { %v10286_v48 = vadd.f32 %v7668_v29, %v7592_v34  ;;  %v7688_v26 = vpop.f32.mrf.mxu0 }
 0x1c9   : > { %v7670_v21 = vpop.f32.mrf.mxu1 }
 0x1ca   : > { %11496 = vst [vmem:[#allocation32_spill] sm:$0xff] %v10286_v48  ;;  %v7689_v36 = vpop.f32.mrf.mxu0  ;;  %v7671_v28 = vadd.f32 %v7670_v21, %v7669_v27 }
 0x1cb   : > { %v7690_v49 = vadd.f32 %v7689_v36, %v7688_v26  ;;  %v10288_v7 = vpop.f32.mrf.mxu1 }
 0x1cc   : > { %v10290_v25 = vadd.f32 %v7671_v28, %v7595_v41  ;;  %v7691_v30 = vpop.f32.mrf.mxu0 }
 0x1cd   : > { %v10293_v20 = vadd.f32 %v7690_v49, %v10228_v39  ;;  %v10295_v46 = vpop.f32.mrf.mxu1 }
 0x1ce   : > { %11497 = vst [vmem:[#allocation33_spill] sm:$0xff] %v10290_v25  ;;  %v7692_v35 = vpop.f32.mrf.mxu0 }
 0x1cf   : > { %v7693_v51 = vadd.f32 %v7692_v35, %v7691_v30  ;;  %v10297_v53 = vpop.f32.mrf.mxu1 }
 0x1d0   : > { %v7694_v31 = vpop.f32.mrf.mxu0 }
 0x1d1   : > { %v10300_v10 = vadd.f32 %v7693_v51, %v10233_v47  ;;  %v10302_v63 = vpop.f32.mrf.mxu1 }
 0x1d2   : > { %v7695_v8 = vpop.f32.mrf.mxu0 }
 0x1d3   : > { %v7696_v57 = vadd.f32 %v7695_v8, %v7694_v31  ;;  %v10304_v37 = vpop.f32.mrf.mxu1 }
 0x1d4   : > { %v7697_v50 = vpop.f32.mrf.mxu0 }
 0x1d5   : > { %v10307_v39 = vadd.f32 %v7696_v57, %v10237_v61  ;;  %v10309_v12 = vpop.f32.mrf.mxu1 }
 0x1d6   : > { %v7698_v4 = vpop.f32.mrf.mxu0 }
 0x1d7   : > { %v7699_v5 = vadd.f32 %v7698_v4, %v7697_v50  ;;  %v10311_v24 = vpop.f32.mrf.mxu1 }
 0x1d8   : > { %v7700_v47 = vpop.f32.mrf.mxu0 }
 0x1d9   : > { %v10314_v33 = vadd.f32 %v7699_v5, %v10251_v14  ;;  %v10316_v60 = vpop.f32.mrf.mxu1 }
 0x1da   : > { %v7701_v52 = vpop.f32.mrf.mxu0 }
 0x1db   : > { %v7702_v15 = vadd.f32 %v7701_v52, %v7700_v47 }
 0x1dc   : > { %v7703_v17 = vpop.f32.mrf.mxu0 }
 0x1dd   : > { %v10319_v62 = vadd.f32 %v7702_v15, %v10254_v55  ;;  %v10321_v61 = vpop.f32.mrf.mxu1 }
 0x1de   : > { %v7704_v54 = vpop.f32.mrf.mxu0 }
 0x1df   : > { %v7705_v34 = vadd.f32 %v7704_v54, %v7703_v17  ;;  %v10323_v43 = vpop.f32.mrf.mxu1 }
 0x1e1   : > { %v10326_v22 = vadd.f32 %v7705_v34, %v10260_v11  ;;  %v10328_v14 = vpop.f32.mrf.mxu1 }
 0x1e3   : > { %v10330_v56 = vpop.f32.mrf.mxu0  ;;  %v10332_v6 = vpop.f32.mrf.mxu1 }
 0x1e5   : > { %v7707_v29 = vpop.f32.mrf.mxu0 }
 0x1e7   : > { %v7709_v41 = vpop.f32.mrf.mxu0  ;;  %v10334_v27 = vpop.f32.mrf.mxu1 }
 0x1e9   : > { %v7710_v55 = vpop.f32.mrf.mxu0  ;;  %v10336_v26 = vpop.f32.mrf.mxu1 }
 0x1ea   : > { %v7711_v21 = vadd.f32 %v7710_v55, %v7709_v41 }
 0x1eb   : > { %v10338_v36 = vpop.f32.mrf.mxu1 }
 0x1ec   : > { %v10341_v28 = vadd.f32 %v7711_v21, %v10264_v0 }
 0x1ed   : > { %v7712_v11 = vpop.f32.mrf.mxu0  ;;  %v10343_v49 = vpop.f32.mrf.mxu1 }
 0x1ef   : > { %v7713_v30 = vpop.f32.mrf.mxu0 }
 0x1f0   : > { %v7714_v35 = vadd.f32 %v7713_v30, %v7712_v11 }
 0x1f1   : > { %v7715_v51 = vpop.f32.mrf.mxu0 }
 0x1f2   : > { %v10346_v31 = vadd.f32 %v7714_v35, %v10266_v40  ;;  %v10348_v8 = vpop.f32.mrf.mxu1 }
 0x1f3   : > { %v7716_v57 = vpop.f32.mrf.mxu0 }
 0x1f4   : > { %11498 = vst [vmem:[#allocation34_spill] sm:$0xff] %v10346_v31  ;;  %v7717_v50 = vadd.f32 %v7716_v57, %v7715_v51  ;;  %v7789_v4 = vpop.f32.mrf.mxu1  ;;  %v7769_v31 = vadd.f32 %v10302_v63, %v10297_v53 }
 0x1f6   : > { %v10351_v5 = vadd.f32 %v7717_v50, %v10268_v58  ;;  %v7791_v47 = vpop.f32.mrf.mxu1 }
 0x1f8   : > { %11499 = vst [vmem:[#allocation35_spill] sm:$0xff] %v10351_v5  ;;  %v7718_v0 = vpop.f32.mrf.mxu0  ;;  %v7792_v52 = vpop.f32.mrf.mxu1 }
 0x1fa   : > { %v7719_v15 = vpop.f32.mrf.mxu0 }
 0x1fc   : > { %v7721_v17 = vpop.f32.mrf.mxu0  ;;  %v7794_v54 = vpop.f32.mrf.mxu1 }
 0x1fe   : > { %v7722_v34 = vpop.f32.mrf.mxu0  ;;  %v7795_v41 = vpop.f32.mrf.mxu1 }
 0x200   : > { %v7797_v55 = vpop.f32.mrf.mxu1 }
 0x202   : > { %v7724_v21 = vpop.f32.mrf.mxu0  ;;  %v7798_v30 = vpop.f32.mrf.mxu1 }
 0x204   : > { %v7725_v40 = vpop.f32.mrf.mxu0 }
 0x205   : > { %v7726_v11 = vadd.f32 %v7725_v40, %v7724_v21 }
 0x206   : > { %v7727_v35 = vpop.f32.mrf.mxu0 }
 0x207   : > { %v10354_v51 = vadd.f32 %v7726_v11, %v10274_v59  ;;  %v7800_v58 = vpop.f32.mrf.mxu1 }
 0x208   : > { %v7728_v57 = vpop.f32.mrf.mxu0 }
 0x209   : > { %11500 = vst [vmem:[#allocation36_spill] sm:$0xff] %v10354_v51  ;;  %v7729_v50 = vadd.f32 %v7728_v57, %v7727_v35  ;;  %v7801_v18 = vpop.f32.mrf.mxu1  ;;  %v7766_v51 = vadd.f32 %v10295_v46, %v10288_v7  ;;  %v7781_v7 = vadd.f32 %v10332_v6, %v10328_v14  ;;  %v7784_v46 = vadd.f32 %v10336_v26, %v10334_v27 }
 0x20a   : > { %v7793_v14 = vadd.f32 %v7792_v52, %v7791_v47  ;;  %v7796_v6 = vadd.f32 %v7795_v41, %v7794_v54  ;;  %v7799_v27 = vadd.f32 %v7798_v30, %v7797_v55  ;;  %v11506_v30 = vld [vmem:[#allocation30_spill] sm:$0xff] }
 0x20b   : > { %v10357_v45 = vadd.f32 %v7729_v50, %v10276_v44  ;;  %v7803_v3 = vpop.f32.mrf.mxu1  ;;  %v3388_v63 = vadd.f32 %v7766_v51, %v10293_v20 }
 0x20d   : > { %11501 = vst [vmem:[#allocation37_spill] sm:$0xff] %v10357_v45  ;;  %v7730_v32 = vpop.f32.mrf.mxu0  ;;  %v7804_v48 = vpop.f32.mrf.mxu1 }
 0x20f   : > { %v7731_v23 = vpop.f32.mrf.mxu0 }
 0x210   : > { %v11504_v54 = vld [vmem:[#allocation36_spill] sm:$0xff] }
 0x211   : > { %v7733_v9 = vpop.f32.mrf.mxu0  ;;  %v7806_v21 = vpop.f32.mrf.mxu1 }
 0x213   : > { %v7734_v25 = vpop.f32.mrf.mxu0  ;;  %v7807_v11 = vpop.f32.mrf.mxu1 }
 0x214   : > { %v11505_v41 = vld [vmem:[#allocation37_spill] sm:$0xff] }
 0x215   : > { %v7809_v50 = vpop.f32.mrf.mxu1 }
 0x217   : > { %v7736_v38 = vpop.f32.mrf.mxu0  ;;  %v7810_v45 = vpop.f32.mrf.mxu1 }
 0x219   : > { %v7737_v40 = vpop.f32.mrf.mxu0 }
 0x21a   : > { %v7738_v42 = vadd.f32 %v7737_v40, %v7736_v38  ;;  %v7772_v38 = vadd.f32 %v10309_v12, %v10304_v37  ;;  %v7720_v37 = vadd.f32 %v7719_v15, %v7718_v0  ;;  %v7723_v12 = vadd.f32 %v7722_v34, %v7721_v17 }
 0x21b   : > { %v7739_v5 = vpop.f32.mrf.mxu0  ;;  %v7802_v15 = vadd.f32 %v7801_v18, %v7800_v58  ;;  %v7805_v17 = vadd.f32 %v7804_v48, %v7803_v3  ;;  %v11502_v18 = vld [vmem:[#allocation34_spill] sm:$0xff]  ;;  %v11507_v58 = vld [vmem:[#allocation31_spill] sm:$0xff] }
 0x21c   : > { %v10360_v59 = vadd.f32 %v7738_v42, %v10282_v16  ;;  %v7708_v42 = vadd.f32 %v7707_v29, %v10330_v56  ;;  %v3390_v29 = vadd.f32 %v7772_v38, %v10307_v39 }
 0x21d   : > { %v7740_v35 = vpop.f32.mrf.mxu0  ;;  %v10417_v55 = vadd.f32 %v7805_v17, %v11505_v41  ;;  %v4092_v41 = vld [vmem:[#allocation3] sm:$0xf] }
 0x21e   : > { %v7741_v57 = vadd.f32 %v7740_v35, %v7739_v5  ;;  %v7775_v5 = vadd.f32 %v10316_v60, %v10311_v24  ;;  %v3389_v24 = vadd.f32 %v7769_v31, %v10300_v10  ;;  %v2763_v60 = vadd.f32 %v7708_v42, %v10262_v2 }
 0x21f   : > { %v10390_v10 = vadd.f32 %v7781_v7, %v10326_v22  ;;  %v2767_v2 = vadd.f32 %v7720_v37, %v10270_v13  ;;  %v7735_v31 = vadd.f32 %v7734_v25, %v7733_v9  ;;  %v11503_v22 = vld [vmem:[#allocation35_spill] sm:$0xff]  ;;  %v7808_v13 = vadd.f32 %v7807_v11, %v7806_v21 }
 0x220   : > { %v10363_v44 = vadd.f32 %v7741_v57, %v10284_v19  ;;  %v7778_v19 = vadd.f32 %v10323_v43, %v10321_v61  ;;  %v7787_v61 = vadd.f32 %v10343_v49, %v10338_v36  ;;  %v7790_v43 = vadd.f32 %v7789_v4, %v10348_v8 }
 0x221   : > { %v3391_v20 = vadd.f32 %v7775_v5, %v10314_v33  ;;  %v3394_v34 = vadd.f32 %v7784_v46, %v2763_v60  ;;  %v2768_v36 = vadd.f32 %v7723_v12, %v10272_v1  ;;  %v7732_v49 = vadd.f32 %v7731_v23, %v7730_v32  ;;  %v10397_v33 = vld [vmem:[%s11416_s2] ss:$0 sm:$0xff] }
 0x222   : > { %v3392_v0 = vadd.f32 %v7778_v19, %v10319_v62  ;;  %v10400_v3 = vadd.f32 %v7787_v61, %v10341_v28  ;;  %v10403_v48 = vadd.f32 %v7790_v43, %v11502_v18  ;;  %v10406_v4 = vadd.f32 %v7793_v14, %v11503_v22  ;;  %v4099_v22 = vld [vmem:[#allocation3 + $0xc] sm:$0xf] }
 0x223   : > { %v7811_v1 = vadd.f32 %v7810_v45, %v7809_v50  ;;  %v10408_v32 = vadd.f32 %v7796_v6, %v2767_v2  ;;  %v10410_v9 = vadd.f32 %v7799_v27, %v2768_v36  ;;  %v10414_v28 = vadd.f32 %v7802_v15, %v11504_v54  ;;  %v11509_v27 = vld [vmem:[#allocation33_spill] sm:$0xff] }
 0x224   : > { %v2771_v51 = vadd.f32 %v7732_v49, %v11506_v30  ;;  %v2772_v21 = vadd.f32 %v7735_v31, %v11507_v58 }
 0x226   : > { %v10422_v46 = vadd.f32 %v7808_v13, %v2771_v51 }
 0x229   : > { %v7742_v40 = vpop.f32.mrf.mxu0  ;;  %v7812_v16 = vpop.f32.mrf.mxu1 }
 0x22b   : > { %v7743_v35 = vpop.f32.mrf.mxu0  ;;  %v7813_v53 = vpop.f32.mrf.mxu1 }
 0x22c   : > { %v7814_v45 = vadd.f32 %v7813_v53, %v7812_v16  ;;  %v7744_v11 = vadd.f32 %v7743_v35, %v7742_v40  ;;  %v11508_v16 = vld [vmem:[#allocation32_spill] sm:$0xff] }
 0x22d   : > { %v7745_v56 = vpop.f32.mrf.mxu0  ;;  %v7815_v39 = vpop.f32.mrf.mxu1 }
 0x22e   : > { %v10428_v40 = vadd.f32 %v7744_v11, %v11508_v16  ;;  %v10431_v61 = vadd.f32 %v7814_v45, %v10360_v59 }
 0x22f   : > { %v7746_v26 = vpop.f32.mrf.mxu0  ;;  %v7816_v25 = vpop.f32.mrf.mxu1 }
 0x230   : > { %v7817_v5 = vadd.f32 %v7816_v25, %v7815_v39  ;;  %v7747_v19 = vadd.f32 %v7746_v26, %v7745_v56 }
 0x231   : > { %v8148_v8 = vpop.f32.mrf.mxu0 }
 0x232   : > { %v3727_v62 = vadd.f32 %v8148_v8, %v3390_v29  ;;  %v10434_v26 = vadd.f32 %v7747_v19, %v11509_v27  ;;  %v10439_v59 = vadd.f32 %v7817_v5, %v10363_v44 }
 0x233   : > { %v3646_v23 = vpop.f32.mrf.mxu0 }
 0x234   : > { %v3754_v47 = vadd.f32 %v10397_v33, %v3727_v62  ;;  %v3725_v52 = vadd.f32 %v3646_v23, %v3388_v63  ;;  %v10424_v63 = vadd.f32 %v7811_v1, %v2772_v21 }
 0x235   : > { %v8149_v57 = vpop.f32.mrf.mxu0 }
 0x236   : > { %vm3774_vm15 = vcmp.gt.f32.partialorder %v3754_v47, 0.0  ;;  %v3794_v50 = vmul.f32 0.01, %v3754_v47  ;;  %v3752_v38 = vadd.f32 %v10397_v33, %v3725_v52  ;;  %v3728_v42 = vadd.f32 %v8149_v57, %v3391_v20 }
 0x237   : > { %v3649_v7 = vpop.f32.mrf.mxu0 }
 0x238   : > { %v3814_v37 = vsel %vm3774_vm15, %v3754_v47, %v3794_v50  ;;  %vm3772_vm0 = vcmp.gt.f32.partialorder %v3752_v38, 0.0  ;;  %v3792_v12 = vmul.f32 0.01, %v3752_v38  ;;  %v3755_v29 = vadd.f32 %v10397_v33, %v3728_v42  ;;  %v7818_v56 = vpop.f32.mrf.mxu1 }
 0x239   : > { %v7501_v35 = vpack.c.bf16 %v3814_v37, %v3814_v37  ;;  %v3726_v53 = vadd.f32 %v3649_v7, %v3389_v24  ;;  %v8152_v60 = vpop.f32.mrf.mxu0  ;;  %v4103_v7 = vld [vmem:[#allocation3 + $0x14] sm:$0x1] }
 0x23a   : > { %v3812_v43 = vsel %vm3772_vm0, %v3752_v38, %v3792_v12  ;;  %vm3775_vm1 = vcmp.gt.f32.partialorder %v3755_v29, 0.0  ;;  %v3795_v14 = vmul.f32 0.01, %v3755_v29  ;;  %v3731_v6 = vadd.f32 %v8152_v60, %v3394_v34  ;;  %v7819_v2 = vpop.f32.mrf.mxu1 }
 0x23b   : > { %v3910_v20 = vshrl.u32 %v7501_v35, 16  ;;  %v7499_v15 = vpack.c.bf16 %v3812_v43, %v3812_v43  ;;  %v3753_v17 = vadd.f32 %v10397_v33, %v3726_v53  ;;  %v3662_v39 = vpop.f32.mrf.mxu0  ;;  %v10441_v31 = vadd.f32 %v7819_v2, %v7818_v56 }
 0x23c   : > { %v3815_v36 = vsel %vm3775_vm1, %v3755_v29, %v3795_v14  ;;  %v3758_v24 = vadd.f32 %v10397_v33, %v3731_v6  ;;  %v3729_v49 = vadd.f32 %v3662_v39, %v3392_v0  ;;  %v3913_v34 = vshll.u32 %v7501_v35, 16 }
 0x23d   : > { %v3912_v8 = vrot.slane %v3910_v20, 7  ;;  %v3893_v62 = vshrl.u32 %v7499_v15, 16  ;;  %v8153_v18 = vpop.f32.mrf.mxu0  ;;  %v3896_v13 = vshll.u32 %v7499_v15, 16  ;;  %v7502_v1 = vpack.c.bf16 %v3815_v36, %v3815_v36 }
 0x23e   : > { %vm3773_vm2 = vcmp.gt.f32.partialorder %v3753_v17, 0.0  ;;  %v3793_v23 = vmul.f32 0.01, %v3753_v17  ;;  %vm3778_vm5 = vcmp.gt.f32.partialorder %v3758_v24, 0.0  ;;  %v3798_v52 = vmul.f32 0.01, %v3758_v24 }
 0x23f   : > { %v3915_v25 = vor.u32 %v3913_v34, %v3912_v8  ;;  %v3895_v47 = vrot.slane %v3893_v62, 7  ;;  %v3665_v54 = vpop.f32.mrf.mxu0  ;;  %v3916_v0 = vrot.slane %v3912_v8, 4  ;;  %v3918_v44 = vshrl.u32 %v7502_v1, 16 }
 0x240   : > { %v3813_v30 = vsel %vm3773_vm2, %v3753_v17, %v3793_v23  ;;  %v3756_v51 = vadd.f32 %v10397_v33, %v3729_v49  ;;  %v3921_v57 = vshll.u32 %v7502_v1, 16  ;;  %v3818_v5 = vsel %vm3778_vm5, %v3758_v24, %v3798_v52  ;;  %v4096_v24 = vld [vmem:[#allocation3 + $0x8] sm:$0x1] }
 0x241   : > { %v4100_v21 = vsel %vm9183_vm8, %v3915_v25, %v4099_v22  ;;  %v3898_v45 = vor.u32 %v3896_v13, %v3895_v47  ;;  %v3899_v11 = vrot.slane %v3895_v47, 4  ;;  %v8156_v50 = vpop.f32.mrf.mxu0  ;;  %v3920_v38 = vrot.slane %v3918_v44, 7  ;;  %v4113_v13 = vld [vmem:[#allocation3 + $0x24] sm:$0xf] }
 0x242   : > { %4101 = vst [vmem:[#allocation3 + $0xc] sm:$0xf] %v4100_v21  ;;  %v7500_v42 = vpack.c.bf16 %v3813_v30, %v3813_v30  ;;  %vm3776_vm6 = vcmp.gt.f32.partialorder %v3756_v51, 0.0  ;;  %v7505_v37 = vpack.c.bf16 %v3818_v5, %v3818_v5  ;;  %v3796_v12 = vmul.f32 0.01, %v3756_v51 }
 0x243   : > { %v4093_v19 = vsel %vm9183_vm8, %v3898_v45, %v4092_v41  ;;  %v3732_v29 = vadd.f32 %v8153_v18, %v10400_v3  ;;  %v3678_v16 = vpop.f32.mrf.mxu0  ;;  %v3923_v35 = vor.u32 %v3921_v57, %v3920_v38  ;;  %v3925_v53 = vrot.slane %v3920_v38, 4 }
 0x244   : > { %4094 = vst [vmem:[#allocation3] sm:$0xf] %v4093_v19  ;;  %v3901_v60 = vshrl.u32 %v7500_v42, 16  ;;  %v3904_v56 = vshll.u32 %v7500_v42, 16  ;;  %v3944_v43 = vshrl.u32 %v7505_v37, 16  ;;  %v3947_v14 = vshll.u32 %v7505_v37, 16 }
 0x245   : > { %v3816_v6 = vsel %vm3776_vm6, %v3756_v51, %v3796_v12  ;;  %v3759_v27 = vadd.f32 %v10397_v33, %v3732_v29  ;;  %v8157_v20 = vpop.f32.mrf.mxu0  ;;  %v3924_v17 = vsel %vm9175_vm7, %v3916_v0, %v3923_v35  ;;  %v4104_v2 = vsel %vm9088_vm3, %v3925_v53, %v4103_v7  ;;  %v4106_v51 = vld [vmem:[#allocation3 + $0x18] sm:$0xf]  ;;  %v7821_v53 = vpop.f32.mrf.mxu1 }
 0x246   : > { %v3903_v36 = vrot.slane %v3901_v60, 7  ;;  %v7503_v3 = vpack.c.bf16 %v3816_v6, %v3816_v6  ;;  %4102 = vst [vmem:[#allocation3 + $0x10] sm:$0xf] %v3924_v17  ;;  %4105 = vst [vmem:[#allocation3 + $0x14] sm:$0x1] %v4104_v2  ;;  %v10455_v49 = vrot.slane %v3944_v43, 7  ;;  %v3730_v34 = vadd.f32 %v3665_v54, %v10390_v10 }
 0x247   : > { %vm3779_vm9 = vcmp.gt.f32.partialorder %v3759_v27, 0.0  ;;  %v3799_v8 = vmul.f32 0.01, %v3759_v27  ;;  %v3681_v62 = vpop.f32.mrf.mxu0  ;;  %v3735_v7 = vadd.f32 %v8156_v50, %v10408_v32  ;;  %v3733_v35 = vadd.f32 %v3678_v16, %v10403_v48  ;;  %v4117_v50 = vld [vmem:[#allocation3 + $0x2c] sm:$0x1] }
 0x248   : > { %v3906_v18 = vor.u32 %v3904_v56, %v3903_v36  ;;  %v3908_v22 = vrot.slane %v3903_v36, 4  ;;  %v3927_v1 = vshrl.u32 %v7503_v3, 16  ;;  %v3930_v23 = vshll.u32 %v7503_v3, 16 }
 0x249   : > { %v4165_v25 = vld [vmem:[#allocation3 + $0xc] sm:$0x1]  ;;  %v3949_v47 = vor.u32 %v3947_v14, %v10455_v49  ;;  %v3950_v52 = vrot.slane %v10455_v49, 4  ;;  %v3819_v0 = vsel %vm3779_vm9, %v3759_v27, %v3799_v8  ;;  %v3757_v41 = vadd.f32 %v10397_v33, %v3730_v34  ;;  %v10471_v42 = vpop.f32.mrf.mxu0 }
 0x24a   : > { %v4166_v44 = vsel %vm9088_vm3, 0, %v4165_v25  ;;  %v3907_v10 = vsel %vm9175_vm7, %v3899_v11, %v3906_v18  ;;  %v4097_v54 = vsel %vm9088_vm3, %v3908_v22, %v4096_v24  ;;  %v10467_v30 = vrot.slane %v3927_v1, 7 }
 0x24b   : > { %4167 = vst [vmem:[#allocation3 + $0xc] sm:$0x1] %v4166_v44  ;;  %v4162_v21 = vld [vmem:[#allocation3] sm:$0x1]  ;;  %4095 = vst [vmem:[#allocation3 + $0x4] sm:$0xf] %v3907_v10  ;;  %v4114_v45 = vsel %vm9183_vm8, %v3949_v47, %v4113_v13  ;;  %v7506_v57 = vpack.c.bf16 %v3819_v0, %v3819_v0  ;;  %v3762_v14 = vadd.f32 %v10397_v33, %v3735_v7  ;;  %v3694_v16 = vpop.f32.mrf.mxu0 }
 0x24c   : > { %4098 = vst [vmem:[#allocation3 + $0x8] sm:$0x1] %v4097_v54  ;;  %vm3777_vm10 = vcmp.gt.f32.partialorder %v3757_v41, 0.0  ;;  %v3797_v38 = vmul.f32 0.01, %v3757_v41  ;;  %v4163_v11 = vsel %vm9088_vm3, 0, %v4162_v21  ;;  %v3932_v5 = vor.u32 %v3930_v23, %v10467_v30 }
 0x24d   : > { %4115 = vst [vmem:[#allocation3 + $0x24] sm:$0xf] %v4114_v45  ;;  %v3933_v19 = vrot.slane %v10467_v30, 4  ;;  %4164 = vst [vmem:[#allocation3] sm:$0x1] %v4163_v11  ;;  %v3952_v37 = vshrl.u32 %v7506_v57, 16  ;;  %v3736_v6 = vadd.f32 %v8157_v20, %v10410_v9  ;;  %v3760_v2 = vadd.f32 %v10397_v33, %v3733_v35  ;;  %v7822_v20 = vpop.f32.mrf.mxu1 }
 0x24e   : > { %v3955_v12 = vshll.u32 %v7506_v57, 16  ;;  %v3817_v29 = vsel %vm3777_vm10, %v3757_v41, %v3797_v38  ;;  %v4195_v60 = vld [vmem:[#allocation3 + $0x14] sm:$0x1]  ;;  %v4107_v56 = vsel %vm9183_vm8, %v3932_v5, %v4106_v51  ;;  %v3734_v48 = vadd.f32 %v3681_v62, %v10406_v4  ;;  %v4110_v47 = vld [vmem:[#allocation3 + $0x20] sm:$0x1]  ;;  %v8161_v41 = vpop.f32.mrf.mxu0 }
 0x24f   : > { %v7504_v43 = vpack.c.bf16 %v3817_v29, %v3817_v29  ;;  %v4196_v17 = vsel %vm9123_vm4, 0, %v4195_v60  ;;  %4108 = vst [vmem:[#allocation3 + $0x18] sm:$0xf] %v4107_v56  ;;  %v3954_v32 = vrot.slane %v3952_v37, 7  ;;  %vm3782_vm12 = vcmp.gt.f32.partialorder %v3762_v14, 0.0 }
 0x250   : > { %4197 = vst [vmem:[#allocation3 + $0x14] sm:$0x1] %v4196_v17  ;;  %v3802_v24 = vmul.f32 0.01, %v3762_v14  ;;  %vm3780_vm13 = vcmp.gt.f32.partialorder %v3760_v2, 0.0  ;;  %v3763_v13 = vadd.f32 %v10397_v33, %v3736_v6  ;;  %v3761_v1 = vadd.f32 %v10397_v33, %v3734_v48  ;;  %v10506_v29 = vpop.f32.mrf.mxu0 }
 0x251   : > { %v3935_v36 = vshrl.u32 %v7504_v43, 16  ;;  %v3938_v3 = vshll.u32 %v7504_v43, 16  ;;  %v3957_v49 = vor.u32 %v3955_v12, %v3954_v32  ;;  %v3959_v8 = vrot.slane %v3954_v32, 4  ;;  %v4127_v35 = vld [vmem:[#allocation3 + $0x3c] sm:$0xf] }
 0x252   : > { %v3800_v9 = vmul.f32 0.01, %v3760_v2  ;;  %v3822_v22 = vsel %vm3782_vm12, %v3762_v14, %v3802_v24  ;;  %v10498_v51 = vadd.f32 %v7822_v20, %v7821_v53  ;;  %vm3783_vm15 = vcmp.gt.f32.partialorder %v3763_v13, 0.0  ;;  %v4120_v32 = vld [vmem:[#allocation3 + $0x30] sm:$0xf] }
 0x253   : > { %v4192_v34 = vld [vmem:[#allocation3 + $0x8] sm:$0x1]  ;;  %v3937_v18 = vrot.slane %v3935_v36, 7  ;;  %v3958_v23 = vsel %vm9175_vm7, %v3950_v52, %v3957_v49  ;;  %v4118_v25 = vsel %vm9088_vm3, %v3959_v8, %v4117_v50  ;;  %v7509_v0 = vpack.c.bf16 %v3822_v22, %v3822_v22 }
 0x254   : > { %v4193_v4 = vsel %vm9123_vm4, 0, %v4192_v34  ;;  %v4171_v62 = vld [vmem:[#allocation3 + $0x24] sm:$0x1]  ;;  %4116 = vst [vmem:[#allocation3 + $0x28] sm:$0xf] %v3958_v23  ;;  %v3820_v30 = vsel %vm3780_vm13, %v3760_v2, %v3800_v9  ;;  %vm3781_vm0 = vcmp.gt.f32.partialorder %v3761_v1, 0.0  ;;  %v3737_v56 = vadd.f32 %v3694_v16, %v10414_v28  ;;  %v10516_v28 = vpop.f32.mrf.mxu0 }
 0x255   : > { %4194 = vst [vmem:[#allocation3 + $0x8] sm:$0x1] %v4193_v4  ;;  %v4172_v44 = vsel %vm9088_vm3, 0, %v4171_v62  ;;  %4119 = vst [vmem:[#allocation3 + $0x2c] sm:$0x1] %v4118_v25  ;;  %v3940_v10 = vor.u32 %v3938_v3, %v3937_v18  ;;  %v3942_v54 = vrot.slane %v3937_v18, 4  ;;  %v7507_v21 = vpack.c.bf16 %v3820_v30, %v3820_v30 }
 0x256   : > { %4173 = vst [vmem:[#allocation3 + $0x24] sm:$0x1] %v4172_v44  ;;  %v3978_v52 = vshrl.u32 %v7509_v0, 16  ;;  %v4168_v45 = vld [vmem:[#allocation3 + $0x18] sm:$0x1]  ;;  %v3981_v11 = vshll.u32 %v7509_v0, 16  ;;  %v3764_v48 = vadd.f32 %v10397_v33, %v3737_v56  ;;  %v3740_v36 = vadd.f32 %v8161_v41, %v10424_v63  ;;  %v3710_v41 = vpop.f32.mrf.mxu0 }
 0x257   : > { %v3941_v57 = vsel %vm9175_vm7, %v3933_v19, %v3940_v10  ;;  %v4111_v38 = vsel %vm9088_vm3, %v3942_v54, %v4110_v47  ;;  %v3803_v5 = vmul.f32 0.01, %v3763_v13  ;;  %v4169_v7 = vsel %vm9088_vm3, 0, %v4168_v45  ;;  %v4131_v34 = vld [vmem:[#allocation3 + $0x44] sm:$0x1] }
 0x258   : > { %4109 = vst [vmem:[#allocation3 + $0x1c] sm:$0xf] %v3941_v57  ;;  %4112 = vst [vmem:[#allocation3 + $0x20] sm:$0x1] %v4111_v38  ;;  %v3980_v37 = vrot.slane %v3978_v52, 7  ;;  %v3961_v12 = vshrl.u32 %v7507_v21, 16  ;;  %v3739_v19 = vadd.f32 %v10471_v42, %v10422_v46  ;;  %v3767_v62 = vadd.f32 %v10397_v33, %v3740_v36 }
 0x259   : > { %4170 = vst [vmem:[#allocation3 + $0x18] sm:$0x1] %v4169_v7  ;;  %v3823_v53 = vsel %vm3783_vm15, %v3763_v13, %v3803_v5  ;;  %v3801_v60 = vmul.f32 0.01, %v3761_v1  ;;  %v3964_v6 = vshll.u32 %v7507_v21, 16  ;;  %vm3784_vm2 = vcmp.gt.f32.partialorder %v3764_v48, 0.0 }
 0x25a   : > { %v3983_v43 = vor.u32 %v3981_v11, %v3980_v37  ;;  %v3963_v14 = vrot.slane %v3961_v12, 7  ;;  %v7510_v17 = vpack.c.bf16 %v3823_v53, %v3823_v53  ;;  %v3766_v2 = vadd.f32 %v10397_v33, %v3739_v19  ;;  %v4124_v21 = vld [vmem:[#allocation3 + $0x38] sm:$0x1]  ;;  %v8165_v19 = vpop.f32.mrf.mxu0 }
 0x25b   : > { %v3821_v50 = vsel %vm3781_vm0, %v3761_v1, %v3801_v60  ;;  %v3984_v24 = vrot.slane %v3980_v37, 4  ;;  %v3804_v4 = vmul.f32 0.01, %v3764_v48  ;;  %vm3787_vm5 = vcmp.gt.f32.partialorder %v3767_v62, 0.0 }
 0x25c   : > { %v4201_v3 = vld [vmem:[#allocation3 + $0x2c] sm:$0x1]  ;;  %v4128_v49 = vsel %vm9183_vm8, %v3983_v43, %v4127_v35  ;;  %v3966_v46 = vor.u32 %v3964_v6, %v3963_v14  ;;  %v3986_v42 = vshrl.u32 %v7510_v17, 16  ;;  %v3989_v8 = vshll.u32 %v7510_v17, 16 }
 0x25d   : > { %v4202_v16 = vsel %vm9123_vm4, 0, %v4201_v3  ;;  %4129 = vst [vmem:[#allocation3 + $0x3c] sm:$0xf] %v4128_v49  ;;  %v7508_v9 = vpack.c.bf16 %v3821_v50, %v3821_v50  ;;  %vm3786_vm1 = vcmp.gt.f32.partialorder %v3766_v2, 0.0  ;;  %v3806_v18 = vmul.f32 0.01, %v3766_v2 }
 0x25e   : > { %4203 = vst [vmem:[#allocation3 + $0x2c] sm:$0x1] %v4202_v16  ;;  %v4121_v63 = vsel %vm9183_vm8, %v3966_v46, %v4120_v32  ;;  %v3988_v20 = vrot.slane %v3986_v42, 7  ;;  %v3824_v54 = vsel %vm3784_vm2, %v3764_v48, %v3804_v4  ;;  %v3807_v57 = vmul.f32 0.01, %v3767_v62 }
 0x25f   : > { %v4198_v22 = vld [vmem:[#allocation3 + $0x20] sm:$0x1]  ;;  %4122 = vst [vmem:[#allocation3 + $0x30] sm:$0xf] %v4121_v63  ;;  %v3969_v13 = vshrl.u32 %v7508_v9, 16  ;;  %v3972_v1 = vshll.u32 %v7508_v9, 16  ;;  %v3826_v0 = vsel %vm3786_vm1, %v3766_v2, %v3806_v18  ;;  %v7511_v45 = vpack.c.bf16 %v3824_v54, %v3824_v54  ;;  %v3713_v9 = vpop.f32.mrf.mxu0 }
 0x260   : > { %v4199_v23 = vsel %vm9123_vm4, 0, %v4198_v22  ;;  %v3991_v25 = vor.u32 %v3989_v8, %v3988_v20  ;;  %v3993_v47 = vrot.slane %v3988_v20, 4  ;;  %v7513_v10 = vpack.c.bf16 %v3826_v0, %v3826_v0  ;;  %v4141_v32 = vld [vmem:[#allocation3 + $0x54] sm:$0xf]  ;;  %v4134_v3 = vld [vmem:[#allocation3 + $0x48] sm:$0xf] }
 0x261   : > { %4200 = vst [vmem:[#allocation3 + $0x20] sm:$0x1] %v4199_v23  ;;  %v3971_v44 = vrot.slane %v3969_v13, 7  ;;  %v3967_v38 = vrot.slane %v3963_v14, 4  ;;  %v3995_v35 = vshrl.u32 %v7511_v45, 16  ;;  %v3827_v53 = vsel %vm3787_vm5, %v3767_v62, %v3807_v57 }
 0x262   : > { %v3992_v30 = vsel %vm9175_vm7, %v3984_v24, %v3991_v25  ;;  %v4132_v52 = vsel %vm9088_vm3, %v3993_v47, %v4131_v34  ;;  %v4012_v7 = vshrl.u32 %v7513_v10, 16  ;;  %v4015_v12 = vshll.u32 %v7513_v10, 16 }
 0x263   : > { %4130 = vst [vmem:[#allocation3 + $0x40] sm:$0xf] %v3992_v30  ;;  %4133 = vst [vmem:[#allocation3 + $0x44] sm:$0x1] %v4132_v52  ;;  %v3974_v11 = vor.u32 %v3972_v1, %v3971_v44  ;;  %v3976_v5 = vrot.slane %v3971_v44, 4  ;;  %v3738_v60 = vadd.f32 %v10506_v29, %v10417_v55  ;;  %v10538_v50 = vrot.slane %v3995_v35, 7 }
 0x264   : > { %v4177_v37 = vld [vmem:[#allocation3 + $0x3c] sm:$0x1]  ;;  %v4014_v6 = vrot.slane %v4012_v7, 7  ;;  %v3998_v2 = vshll.u32 %v7511_v45, 16  ;;  %v7514_v55 = vpack.c.bf16 %v3827_v53, %v3827_v53  ;;  %v3406_v24 = vadd.f32 %v10441_v31, %v10428_v40 }
 0x265   : > { %v4178_v56 = vsel %vm9088_vm3, 0, %v4177_v37  ;;  %v3975_v43 = vsel %vm9175_vm7, %v3967_v38, %v3974_v11  ;;  %v4125_v14 = vsel %vm9088_vm3, %v3976_v5, %v4124_v21  ;;  %v3765_v29 = vadd.f32 %v10397_v33, %v3738_v60  ;;  %v4145_v1 = vld [vmem:[#allocation3 + $0x5c] sm:$0x1]  ;;  %v4138_v11 = vld [vmem:[#allocation3 + $0x50] sm:$0x1] }
 0x266   : > { %4179 = vst [vmem:[#allocation3 + $0x3c] sm:$0x1] %v4178_v56  ;;  %v4174_v17 = vld [vmem:[#allocation3 + $0x30] sm:$0x1]  ;;  %4123 = vst [vmem:[#allocation3 + $0x34] sm:$0xf] %v3975_v43  ;;  %v4017_v36 = vor.u32 %v4015_v12, %v4014_v6  ;;  %v3741_v49 = vadd.f32 %v3710_v41, %v10431_v61  ;;  %v4000_v42 = vor.u32 %v3998_v2, %v10538_v50 }
 0x267   : > { %4126 = vst [vmem:[#allocation3 + $0x38] sm:$0x1] %v4125_v14  ;;  %v4175_v48 = vsel %vm9088_vm3, 0, %v4174_v17  ;;  %v4018_v46 = vrot.slane %v4014_v6, 4  ;;  %v4020_v16 = vshrl.u32 %v7514_v55, 16  ;;  %v4023_v8 = vshll.u32 %v7514_v55, 16 }
 0x268   : > { %4176 = vst [vmem:[#allocation3 + $0x30] sm:$0x1] %v4175_v48  ;;  %v4142_v63 = vsel %vm9183_vm8, %v4017_v36, %v4141_v32  ;;  %vm3785_vm6 = vcmp.gt.f32.partialorder %v3765_v29, 0.0  ;;  %v3805_v20 = vmul.f32 0.01, %v3765_v29  ;;  %v3743_v34 = vadd.f32 %v10516_v28, %v3406_v24 }
 0x269   : > { %4143 = vst [vmem:[#allocation3 + $0x54] sm:$0xf] %v4142_v63  ;;  %v4135_v40 = vsel %vm9183_vm8, %v4000_v42, %v4134_v3  ;;  %v4022_v61 = vrot.slane %v4020_v16, 7  ;;  %v3768_v31 = vadd.f32 %v10397_v33, %v3741_v49  ;;  %v3407_v22 = vadd.f32 %v10498_v51, %v10434_v26  ;;  %v4148_v63 = vld [vmem:[#allocation3 + $0x60] sm:$0xf] }
 0x26a   : > { %v4207_v18 = vld [vmem:[#allocation3 + $0x44] sm:$0x1]  ;;  %4136 = vst [vmem:[#allocation3 + $0x48] sm:$0xf] %v4135_v40  ;;  %v3825_v4 = vsel %vm3785_vm6, %v3765_v29, %v3805_v20  ;;  %v3770_v62 = vadd.f32 %v10397_v33, %v3743_v34  ;;  %v3742_v28 = vadd.f32 %v3713_v9, %v10439_v59  ;;  %v4001_v30 = vrot.slane %v10538_v50, 4 }
 0x26b   : > { %v4208_v13 = vsel %vm9123_vm4, 0, %v4207_v18  ;;  %v4025_v23 = vor.u32 %v4023_v8, %v4022_v61  ;;  %v4027_v25 = vrot.slane %v4022_v61, 4  ;;  %v7512_v47 = vpack.c.bf16 %v3825_v4, %v3825_v4  ;;  %v4155_v29 = vld [vmem:[#allocation3 + $0x6c] sm:$0xf]  ;;  %v4159_v40 = vld [vmem:[#allocation3 + $0x74] sm:$0x1] }
 0x26c   : > { %4209 = vst [vmem:[#allocation3 + $0x44] sm:$0x1] %v4208_v13  ;;  %vm3788_vm9 = vcmp.gt.f32.partialorder %v3768_v31, 0.0  ;;  %vm3790_vm10 = vcmp.gt.f32.partialorder %v3770_v62, 0.0  ;;  %v3810_v41 = vmul.f32 0.01, %v3770_v62  ;;  %v3744_v44 = vadd.f32 %v8165_v19, %v3407_v22 }
 0x26d   : > { %v3769_v26 = vadd.f32 %v10397_v33, %v3742_v28  ;;  %v4026_v10 = vsel %vm9175_vm7, %v4018_v46, %v4025_v23  ;;  %v4146_v59 = vsel %vm9088_vm3, %v4027_v25, %v4145_v1  ;;  %v4003_v54 = vshrl.u32 %v7512_v47, 16 }
 0x26e   : > { %v4204_v0 = vld [vmem:[#allocation3 + $0x38] sm:$0x1]  ;;  %4144 = vst [vmem:[#allocation3 + $0x58] sm:$0xf] %v4026_v10  ;;  %4147 = vst [vmem:[#allocation3 + $0x5c] sm:$0x1] %v4146_v59  ;;  %v3830_v52 = vsel %vm3790_vm10, %v3770_v62, %v3810_v41  ;;  %v3771_v45 = vadd.f32 %v10397_v33, %v3744_v44 }
 0x26f   : > { %v4205_v51 = vsel %vm9123_vm4, 0, %v4204_v0  ;;  %v3808_v21 = vmul.f32 0.01, %v3768_v31  ;;  %v4005_v57 = vrot.slane %v4003_v54, 7  ;;  %v4006_v38 = vshll.u32 %v7512_v47, 16 }
 0x270   : > { %4206 = vst [vmem:[#allocation3 + $0x38] sm:$0x1] %v4205_v51  ;;  %v7517_v5 = vpack.c.bf16 %v3830_v52, %v3830_v52  ;;  %v3809_v7 = vmul.f32 0.01, %v3769_v26  ;;  %v4183_v37 = vld [vmem:[#allocation3 + $0x54] sm:$0x1] }
 0x271   : > { %v3828_v12 = vsel %vm3788_vm9, %v3768_v31, %v3808_v21  ;;  %vm3791_vm12 = vcmp.gt.f32.partialorder %v3771_v45, 0.0  ;;  %v3811_v35 = vmul.f32 0.01, %v3771_v45  ;;  %vm3789_vm13 = vcmp.gt.f32.partialorder %v3769_v26, 0.0  ;;  %v4180_v60 = vld [vmem:[#allocation3 + $0x48] sm:$0x1] }
 0x272   : > { %v4184_v53 = vsel %vm9088_vm3, 0, %v4183_v37  ;;  %v4008_v19 = vor.u32 %v4006_v38, %v4005_v57  ;;  %v4010_v56 = vrot.slane %v4005_v57, 4  ;;  %v4046_v43 = vshrl.u32 %v7517_v5, 16  ;;  %v4152_v47 = vld [vmem:[#allocation3 + $0x68] sm:$0x1] }
 0x273   : > { %4185 = vst [vmem:[#allocation3 + $0x54] sm:$0x1] %v4184_v53  ;;  %v4181_v33 = vsel %vm9088_vm3, 0, %v4180_v60  ;;  %v4049_v14 = vshll.u32 %v7517_v5, 16  ;;  %v7515_v6 = vpack.c.bf16 %v3828_v12, %v3828_v12  ;;  %v3831_v17 = vsel %vm3791_vm12, %v3771_v45, %v3811_v35 }
 0x274   : > { %4182 = vst [vmem:[#allocation3 + $0x48] sm:$0x1] %v4181_v33  ;;  %v4009_v32 = vsel %vm9175_vm7, %v4001_v30, %v4008_v19  ;;  %v4139_v50 = vsel %vm9088_vm3, %v4010_v56, %v4138_v11  ;;  %v4048_v2 = vrot.slane %v4046_v43, 7  ;;  %v7518_v55 = vpack.c.bf16 %v3831_v17, %v3831_v17 }
 0x275   : > { %4137 = vst [vmem:[#allocation3 + $0x4c] sm:$0xf] %v4009_v32  ;;  %4140 = vst [vmem:[#allocation3 + $0x50] sm:$0x1] %v4139_v50  ;;  %v4029_v48 = vshrl.u32 %v7515_v6, 16  ;;  %v3829_v36 = vsel %vm3789_vm13, %v3769_v26, %v3809_v7  ;;  %v4032_v16 = vshll.u32 %v7515_v6, 16 }
 0x276   : > { %v4213_v3 = vld [vmem:[#allocation3 + $0x5c] sm:$0x1]  ;;  %v4051_v24 = vor.u32 %v4049_v14, %v4048_v2  ;;  %v4054_v49 = vshrl.u32 %v7518_v55, 16  ;;  %v7516_v8 = vpack.c.bf16 %v3829_v36, %v3829_v36  ;;  %v4057_v34 = vshll.u32 %v7518_v55, 16 }
 0x277   : > { %v4214_v46 = vsel %vm9123_vm4, 0, %v4213_v3  ;;  %v4031_v42 = vrot.slane %v4029_v48, 7  ;;  %v4052_v31 = vrot.slane %v4048_v2, 4 }
 0x278   : > { %4215 = vst [vmem:[#allocation3 + $0x5c] sm:$0x1] %v4214_v46  ;;  %v4156_v9 = vsel %vm9183_vm8, %v4051_v24, %v4155_v29  ;;  %v4056_v20 = vrot.slane %v4054_v49, 7  ;;  %v4037_v61 = vshrl.u32 %v7516_v8, 16  ;;  %v4040_v62 = vshll.u32 %v7516_v8, 16 }
 0x279   : > { %4157 = vst [vmem:[#allocation3 + $0x6c] sm:$0xf] %v4156_v9  ;;  %v4034_v18 = vor.u32 %v4032_v16, %v4031_v42  ;;  %v4035_v41 = vrot.slane %v4031_v42, 4 }
 0x27a   : > { %v4059_v22 = vor.u32 %v4057_v34, %v4056_v20  ;;  %v4061_v13 = vrot.slane %v4056_v20, 4  ;;  %v4039_v4 = vrot.slane %v4037_v61, 7 }
 0x27b   : > { %v4149_v1 = vsel %vm9183_vm8, %v4034_v18, %v4148_v63 }
 0x27c   : > { %v4210_v28 = vld [vmem:[#allocation3 + $0x50] sm:$0x1]  ;;  %4150 = vst [vmem:[#allocation3 + $0x60] sm:$0xf] %v4149_v1  ;;  %v4060_v23 = vsel %vm9175_vm7, %v4052_v31, %v4059_v22  ;;  %v4160_v25 = vsel %vm9088_vm3, %v4061_v13, %v4159_v40  ;;  %v4042_v44 = vor.u32 %v4040_v62, %v4039_v4  ;;  %v4044_v58 = vrot.slane %v4039_v4, 4 }
 0x27d   : > { %v4211_v0 = vsel %vm9123_vm4, 0, %v4210_v28  ;;  %4158 = vst [vmem:[#allocation3 + $0x70] sm:$0xf] %v4060_v23  ;;  %4161 = vst [vmem:[#allocation3 + $0x74] sm:$0x1] %v4160_v25 }
 0x27e   : > { %4212 = vst [vmem:[#allocation3 + $0x50] sm:$0x1] %v4211_v0  ;;  %v4043_v26 = vsel %vm9175_vm7, %v4035_v41, %v4042_v44  ;;  %v4153_v51 = vsel %vm9088_vm3, %v4044_v58, %v4152_v47 }
 0x27f   : > { %4151 = vst [vmem:[#allocation3 + $0x64] sm:$0xf] %v4043_v26  ;;  %4154 = vst [vmem:[#allocation3 + $0x68] sm:$0x1] %v4153_v51 }
 0x280   : > { %v4189_v10 = vld [vmem:[#allocation3 + $0x6c] sm:$0x1] }
 0x281   : > { %v4190_v59 = vsel %vm9088_vm3, 0, %v4189_v10 }
 0x282   : > { %4191 = vst [vmem:[#allocation3 + $0x6c] sm:$0x1] %v4190_v59 }
 0x283   : > { %v4186_v54 = vld [vmem:[#allocation3 + $0x60] sm:$0x1] }
 0x284   : > { %v4187_v30 = vsel %vm9088_vm3, 0, %v4186_v54  ;;  %v4219_v52 = vld [vmem:[#allocation3 + $0x74] sm:$0x1]  ;;  %4225 = sbr.rel (%p7286_p0) target bundleno = 652 (0x28c), region = 68 }
 0x285   : > { %4188 = vst [vmem:[#allocation3 + $0x60] sm:$0x1] %v4187_v30  ;;  %v4220_v15 = vsel %vm9123_vm4, 0, %v4219_v52 }
 0x286   : > { %4221 = vst [vmem:[#allocation3 + $0x74] sm:$0x1] %v4220_v15  ;;  %v4216_v21 = vld [vmem:[#allocation3 + $0x68] sm:$0x1] }
 0x287   : > { %v4217_v45 = vsel %vm9123_vm4, 0, %v4216_v21 }
 0x288   : > { %4218 = vst [vmem:[#allocation3 + $0x68] sm:$0x1] %v4217_v45 }
 0x289   : > { %v8839_v57 = vmov 0  }
 0x28a   : > { %4226 = vst [vmem:[#allocation3] sm:$0xf] %v8839_v57  ;;  %4227 = vst [vmem:[#allocation3 + $0x4] sm:$0xf] %v8839_v57 }
 0x28b   : > { %4228 = vst [vmem:[#allocation3 + $0x8] sm:$0x1] %v8839_v57 }
 0x28c PF: > { %p7287_p4 = scmp.ne.s32.totalorder %s9211_s12, 16 }
 0x28e   : > { %4232 = sbr.rel (%p7287_p4) target bundleno = 662 (0x296), region = 72 }
 0x293   : > { %v8840_v39 = vmov 0  }
 0x294   : > { %4234 = vst [vmem:[#allocation3 + $0x6c] sm:$0xf] %v8840_v39  ;;  %4235 = vst [vmem:[#allocation3 + $0x70] sm:$0xf] %v8840_v39 }
 0x295   : > { %4236 = vst [vmem:[#allocation3 + $0x74] sm:$0x1] %v8840_v39 }
 0x296 PF: > { %v8491_v27 = vld [vmem:[#allocation9 + $0xf8] sm:$0xff]   ;;  %v8495_v7 = vld [vmem:[#allocation9 + $0xf0] sm:$0xff]   ;;  %v8499_v53 = vld [vmem:[#allocation9 + $0xe8] sm:$0xff]   ;;  %s11516_s24 = sld [smem:[#allocation18_spill]]  ;;  %s7519_s22 = sshll.u32 %s8813_s30, 4 }
 0x297   : > { %v8492_v38 = vld [vmem:[#allocation9 + $0x78] sm:$0xff]   ;;  %7842 = vmatprep.subr.bf16.mxu1 %v8491_v27  ;;  %v8496_v37 = vld [vmem:[#allocation9 + $0x70] sm:$0xff]   ;;  %v8500_v60 = vld [vmem:[#allocation9 + $0x68] sm:$0xff]   ;;  %s11517_s30 = sld [smem:[#allocation20_spill]]  ;;  %s6876_s1 = sshll.u32 %s10603_s27, 4  ;;  %s11348_s1 = int_to_ptr.vmem [resolvable:$true] %s6876_s1 }
 0x298   : > { %v8493_v11 = vld [vmem:[#allocation9 + $0xb8] sm:$0xff]   ;;  %7906 = vmatprep.subr.bf16.mxu0 %v8492_v38  ;;  %v8497_v12 = vld [vmem:[#allocation9 + $0xb0] sm:$0xff]   ;;  %v8501_v19 = vld [vmem:[#allocation9 + $0xa8] sm:$0xff]   ;;  %s11518_s15 = sld [smem:[#allocation41_spill]]  ;;  %s11354_s16 = scalar_lea.sflag [#allocation6], %s352_s8 }
 0x299   : > { %v8494_v5 = vld [vmem:[#allocation9 + $0x38] sm:$0xff]   ;;  %7843 = vmatpush3.bf16.msra.mxu1 %v8493_v11  ;;  %v8498_v35 = vld [vmem:[#allocation9 + $0x30] sm:$0xff]   ;;  %v8502_v56 = vld [vmem:[#allocation9 + $0x28] sm:$0xff]   ;;  %s8701_s19 = scalar_lea.vmem %s11348_s1, 2048  ;;  %s8841_s9 = smov [#allocation12]  }
 0x29a   : > { %7907 = vmatpush3.bf16.msra.mxu0 %v8494_v5  ;;  %7844 = vmatprep.subr.bf16.mxu1 %v8495_v7  ;;  %v8503_v43 = vld [vmem:[#allocation9 + $0xe0] sm:$0xff]   ;;  %v8507_v17 = vld [vmem:[#allocation9 + $0xd8] sm:$0xff]   ;;  %v8511_v55 = vld [vmem:[#allocation9 + $0xd0] sm:$0xff]   ;;  %p8702_p6 = scmp.ne.s32.totalorder %s11348_s1, %s8701_s19  ;;  %s8705_s14 = sshll.u32 %s8841_s9, 4  ;;  %s8706_s14 = int_to_ptr.vmem [resolvable:$false] %s8705_s14 }
 0x29b   : > { %7908 = vmatprep.subr.bf16.mxu0 %v8496_v37  ;;  %v8504_v33 = vld [vmem:[#allocation9 + $0x60] sm:$0xff]   ;;  %v8508_v32 = vld [vmem:[#allocation9 + $0x58] sm:$0xff]   ;;  %v8512_v29 = vld [vmem:[#allocation9 + $0x50] sm:$0xff]   ;;  %p8708_p8 = scmp.lt.s32.totalorder %s11348_s1, %s8706_s14 }
 0x29c   : > { %v8505_v14 = vld [vmem:[#allocation9 + $0xa0] sm:$0xff]   ;;  %v8509_v50 = vld [vmem:[#allocation9 + $0x98] sm:$0xff]   ;;  %v8513_v48 = vld [vmem:[#allocation9 + $0x90] sm:$0xff]   ;;  %s7469_s7 = sshll.u32 %s11516_s24, 5 }
 0x29d   : > { %7845 = vmatpush3.bf16.msra.mxu1 %v8497_v12  ;;  %v8506_v6 = vld [vmem:[#allocation9 + $0x20] sm:$0xff]   ;;  %v8510_v2 = vld [vmem:[#allocation9 + $0x18] sm:$0xff]   ;;  %v8514_v36 = vld [vmem:[#allocation9 + $0x10] sm:$0xff]   ;;  %s6873_s5 = sadd.s32 %s7519_s22, %s7469_s7  ;;  %p11519_p13 = scmp.ne.s32.totalorder %s11517_s30, 0 }
 0x29e   : > { %7909 = vmatpush3.bf16.msra.mxu0 %v8498_v35  ;;  %7846 = vmatprep.subr.bf16.mxu1 %v8499_v53  ;;  %v8515_v3 = vld [vmem:[#allocation9 + $0xc8] sm:$0xff]   ;;  %v8519_v42 = vld [vmem:[#allocation9 + $0xc0] sm:$0xff]   ;;  %v8523_v63 = vld [vmem:[#allocation3 + $0xc] sm:$0xff]   ;;  %s7470_s17 = sshll.u32 %s6873_s5, 7 }
 0x29f   : > { %7910 = vmatprep.subr.bf16.mxu0 %v8500_v60  ;;  %v8516_v24 = vld [vmem:[#allocation9 + $0x48] sm:$0xff]   ;;  %v8520_v16 = vld [vmem:[#allocation9 + $0x40] sm:$0xff]   ;;  %v4253_v18 = vld [vmem:[#allocation3 + $0x8] sm:$0x1]  ;;  %4902 = vmatprep.mubr.bf16.mxu1 %v8523_v63  ;;  %s11346_s18 = scalar_lea.hbm %s11518_s15, %s7470_s17  ;;  %p8703_p11 = pnand %p8702_p6, %p11519_p13 }
 0x2a0   : > { %v8517_v49 = vld [vmem:[#allocation9 + $0x88] sm:$0xff]   ;;  %v8521_v8 = vld [vmem:[#allocation9 + $0x80] sm:$0xff]   ;;  %v4281_v1 = vshll.u32 %v4253_v18, 16  ;;  %v4594_v4 = vrot.slane %v4253_v18, 5  ;;  %v8525_v51 = vld [vmem:[#allocation9 + $0x178] sm:$0xff]  }
 0x2a1   : > { %7847 = vmatpush3.bf16.msra.mxu1 %v8501_v19  ;;  %v8518_v46 = vld [vmem:[#allocation9 + $0x8] sm:$0xff]   ;;  %v8522_v9 = vld [vmem:[#allocation9] sm:$0xff]   ;;  %v8526_v10 = vld [vmem:[#allocation9 + $0x138] sm:$0xff]   ;;  %p8704_p5 = pneg %p8703_p11 }
 0x2a2   : > { %7911 = vmatpush3.bf16.msra.mxu0 %v8502_v56  ;;  %7848 = vmatprep.subr.bf16.mxu1 %v8503_v43  ;;  %v4237_v20 = vld [vmem:[#allocation3] sm:$0xf]  ;;  %v4238_v34 = vld [vmem:[#allocation3 + $0x4] sm:$0xf]  ;;  %v4283_v41 = vrot.slane %v4281_v1, 5  ;;  %v8527_v15 = vld [vmem:[#allocation3 + $0x18] sm:$0xff]  }
 0x2a3   : > { %7912 = vmatprep.subr.bf16.mxu0 %v8504_v33  ;;  %v4262_v40 = vshrl.u32 %v4237_v20, 16  ;;  %v4265_v61 = vshll.u32 %v4237_v20, 16  ;;  %v4271_v31 = vshll.u32 %v4238_v34, 16  ;;  %v4275_v22 = vshrl.u32 %v4238_v34, 16  ;;  %v4565_v13 = vld [vmem:[#allocation3] sm:$0xe] }
 0x2a4   : > { %v7304_v62 = vrot.slane %v4565_v13, 9  ;;  %v4591_v28 = vrot.slane %v4238_v34, 5  ;;  %v7288_v52 = vcombine.low %v4237_v20, %v4238_v34  ;;  %v10611_v21 = vld [vmem:[#allocation3 + $0xc] sm:$0xf]  ;;  %v10613_v45 = vld [vmem:[#allocation3 + $0x10] sm:$0xf] }
 0x2a5   : > { %7849 = vmatpush3.bf16.msra.mxu1 %v8505_v14  ;;  %v4264_v23 = vrot.slane %v4262_v40, 4  ;;  %v4267_v25 = vrot.slane %v4265_v61, 5  ;;  %v4273_v47 = vrot.slane %v4271_v31, 5  ;;  %v4277_v0 = vrot.slane %v4275_v22, 4  ;;  %v4254_v38 = vld [vmem:[#allocation3 + $0x14] sm:$0x1] }
 0x2a6   : > { %7913 = vmatpush3.bf16.msra.mxu0 %v8506_v6  ;;  %7850 = vmatprep.subr.bf16.mxu1 %v8507_v17  ;;  %v4592_v58 = vsel %vm9233_vm11, %v7304_v62, %v4591_v28  ;;  %v4593_v26 = vrot.slane %v4591_v28, 4  ;;  %v4286_v11 = vshrl.u32 %v10611_v21, 16  ;;  %v8529_v5 = vld [vmem:[#allocation9 + $0x170] sm:$0xff]   ;;  %v4289_v7 = vshll.u32 %v10611_v21, 16  ;;  %v4567_v40 = vld [vmem:[#allocation3 + $0x18] sm:$0xe] }
 0x2a7   : > { %7914 = vmatprep.subr.bf16.mxu0 %v8508_v32  ;;  %v4268_v59 = vor.u32 %v4267_v25, %v4264_v23  ;;  %v4278_v54 = vor.u32 %v4277_v0, %v4273_v47  ;;  %v4295_v37 = vshll.u32 %v10613_v45, 16  ;;  %v4299_v12 = vshrl.u32 %v10613_v45, 16  ;;  %v4566_v53 = vld [vmem:[#allocation3 + $0xc] sm:$0xe]  ;;  %v8533_v1 = vld [vmem:[#allocation9 + $0x168] sm:$0xff]  }
 0x2a8   : > { %v4595_v30 = vsel %vm9233_vm11, %v4593_v26, %v4594_v4  ;;  %v4305_v35 = vshll.u32 %v4254_v38, 16  ;;  %v4288_v43 = vrot.slane %v4286_v11, 4  ;;  %v7305_v33 = vrot.slane %v4566_v53, 9  ;;  %v8534_v25 = vld [vmem:[#allocation9 + $0x128] sm:$0xff]   ;;  %v6311_v60 = vld [vmem:[#allocation3 + $0x48] sm:$0xe] }
 0x2a9   : > { %7851 = vmatpush3.bf16.msra.mxu1 %v8509_v50  ;;  %v4269_v57 = vrot.slane %v4268_v59, 4  ;;  %v4279_v39 = vrot.slane %v4278_v54, 4  ;;  %v7312_v27 = vcombine.low %v4592_v58, %v4595_v30  ;;  %v4291_v6 = vrot.slane %v4289_v7, 5  ;;  %v8530_v50 = vld [vmem:[#allocation9 + $0x130] sm:$0xff]   ;;  %v8537_v54 = vld [vmem:[#allocation9 + $0x160] sm:$0xff]   ;;  %v6625_v44 = vld [vmem:[%s9135_s13 + $0x30] sm:$0xff] }
 0x2aa   : > { %7915 = vmatpush3.bf16.msra.mxu0 %v8510_v2  ;;  %7852 = vmatprep.subr.bf16.mxu1 %v8511_v55  ;;  %v4297_v17 = vrot.slane %v4295_v37, 5  ;;  %v4301_v32 = vrot.slane %v4299_v12, 4  ;;  %v4307_v2 = vrot.slane %v4305_v35, 5  ;;  %v4598_v55 = vrot.slane %v10613_v45, 5  ;;  %v4568_v35 = vld [vmem:[#allocation3 + $0x24] sm:$0xe] }
 0x2ab   : > { %7916 = vmatprep.subr.bf16.mxu0 %v8512_v29  ;;  %v4274_v19 = vsel %vm9321_vm14, %v4269_v57, %v4273_v47  ;;  %v4284_v56 = vsel %vm9321_vm14, %v4279_v39, %v4283_v41  ;;  %v4601_v29 = vrot.slane %v4254_v38, 5  ;;  %v4256_v39 = vld [vmem:[#allocation3 + $0x2c] sm:$0x1]  ;;  %v8538_v38 = vld [vmem:[#allocation9 + $0x120] sm:$0xff]  }
 0x2ac   : > { %v7296_v14 = vcombine.low %v4274_v19, %v4284_v56 }
 0x2ad   : > { %7853 = vmatpush3.bf16.msra.mxu1 %v8513_v48  ;;  %v4292_v48 = vor.u32 %v4291_v6, %v4288_v43  ;;  %v4353_v43 = vshll.u32 %v4256_v39, 16 }
 0x2ae   : > { %7917 = vmatpush3.bf16.msra.mxu0 %v8514_v36  ;;  %7854 = vmatprep.subr.bf16.mxu1 %v8515_v3  ;;  %v4302_v36 = vor.u32 %v4301_v32, %v4297_v17  ;;  %v10624_v3 = vld [vmem:[#allocation3 + $0x18] sm:$0xf] }
 0x2af   : > { %7918 = vmatprep.subr.bf16.mxu0 %v8516_v24  ;;  %5095 = vmatprep.mubr.bf16.mxu0 %v7296_v14  ;;  %v4599_v24 = vsel %vm9233_vm11, %v7305_v33, %v4598_v55  ;;  %v4293_v63 = vrot.slane %v4292_v48, 4  ;;  %v4313_v34 = vshll.u32 %v10624_v3, 16 }
 0x2b0   : > { %v4303_v20 = vrot.slane %v4302_v36, 4 }
 0x2b1   : > { %7855 = vmatpush3.bf16.msra.mxu1 %v8517_v49  ;;  %v4600_v49 = vrot.slane %v4598_v55, 4  ;;  %v4298_v4 = vsel %vm9321_vm14, %v4293_v63, %v4297_v17  ;;  %v4315_v23 = vrot.slane %v4313_v34, 5  ;;  %v7307_v55 = vrot.slane %v4568_v35, 9  ;;  %v4258_v35 = vld [vmem:[#allocation3 + $0x44] sm:$0x1] }
 0x2b2   : > { %7919 = vmatpush3.bf16.msra.mxu0 %v8518_v46  ;;  %7856 = vmatprep.subr.bf16.mxu1 %v8519_v42  ;;  %v7289_v46 = vcombine.low %v10611_v21, %v10613_v45  ;;  %v8531_v42 = vld [vmem:[#allocation3 + $0x24] sm:$0xff]   ;;  %v4308_v62 = vsel %vm9321_vm14, %v4303_v20, %v4307_v2  ;;  %v4355_v2 = vrot.slane %v4353_v43, 5 }
 0x2b3   : > { %7920 = vmatprep.subr.bf16.mxu0 %v8520_v16  ;;  %v10630_v16 = vld [vmem:[#allocation3 + $0x1c] sm:$0xf]  ;;  %v4602_v61 = vsel %vm9233_vm11, %v4600_v49, %v4601_v29  ;;  %v7297_v47 = vcombine.low %v4298_v4, %v4308_v62  ;;  %v10662_v49 = vld [vmem:[#allocation3 + $0x30] sm:$0xf] }
 0x2b4   : > { %v4319_v18 = vshll.u32 %v10630_v16, 16  ;;  %v4323_v22 = vshrl.u32 %v10630_v16, 16  ;;  %v7313_v28 = vcombine.low %v4599_v24, %v4602_v61  ;;  %v7290_v29 = vcombine.low %v10624_v3, %v10630_v16  ;;  %v8539_v62 = vld [vmem:[#allocation3 + $0x3c] sm:$0xff]  }
 0x2b5   : > { %7857 = vmatpush3.bf16.msra.mxu1 %v8521_v8  ;;  %v4255_v8 = vld [vmem:[#allocation3 + $0x20] sm:$0x1]  ;;  %v4615_v24 = vrot.slane %v4256_v39, 5  ;;  %v4361_v63 = vshll.u32 %v10662_v49, 16 }
 0x2b6   : > { %7921 = vmatpush3.bf16.msra.mxu0 %v8522_v9  ;;  %7970 = vmatprep.subr.bf16.mxu1 %v8525_v51  ;;  %v4310_v9 = vshrl.u32 %v10624_v3, 16  ;;  %v4329_v13 = vshll.u32 %v4255_v8, 16  ;;  %v4321_v0 = vrot.slane %v4319_v18, 5  ;;  %v4325_v41 = vrot.slane %v4323_v22, 4  ;;  %v4569_v18 = vld [vmem:[#allocation3 + $0x30] sm:$0xe] }
 0x2b7   : > { %v7306_v51 = vrot.slane %v4567_v40, 9  ;;  %v4608_v59 = vrot.slane %v4255_v8, 5  ;;  %v4257_v8 = vld [vmem:[#allocation3 + $0x38] sm:$0x1]  ;;  %v8541_v40 = vld [vmem:[#allocation9 + $0x158] sm:$0xff]   ;;  %v4363_v22 = vrot.slane %v4361_v63, 5 }
 0x2b8   : > { %4903 = vmatmul.mubr.bf16.vlgmr.msra.gmra.mxu1 %v7312_v27  ;;  %v4312_v31 = vrot.slane %v4310_v9, 4  ;;  %v4331_v58 = vrot.slane %v4329_v13, 5  ;;  %v4326_v30 = vor.u32 %v4325_v41, %v4321_v0  ;;  %v4358_v9 = vshrl.u32 %v10662_v49, 16  ;;  %v8549_v63 = vld [vmem:[#allocation9 + $0x150] sm:$0xff]  }
 0x2b9   : > { %7971 = vmatpush3.bf16.msra.mxu1 %v8526_v10  ;;  %4910 = vmatprep.mubr.bf16.mxu1 %v8527_v15  ;;  %v4605_v10 = vrot.slane %v10630_v16, 5  ;;  %v10645_v15 = vld [vmem:[#allocation3 + $0x28] sm:$0xf] }
 0x2ba   : > { %7972 = vmatprep.subr.bf16.mxu1 %v8529_v5  ;;  %5096 = vmatmul.mubr.bf16.vlgmr.msra.gmra.mxu0 %v7288_v52  ;;  %v4316_v26 = vor.u32 %v4315_v23, %v4312_v31  ;;  %v10643_v52 = vld [vmem:[#allocation3 + $0x24] sm:$0xf]  ;;  %v4327_v11 = vrot.slane %v4326_v30, 4  ;;  %v8535_v5 = vld [vmem:[#allocation3 + $0x30] sm:$0xff]   ;;  %v4343_v37 = vshll.u32 %v10645_v15, 16  ;;  %v4347_v12 = vshrl.u32 %v10645_v15, 16 }
 0x2bb   : > { %5103 = vmatprep.mubr.bf16.mxu0 %v7297_v47  ;;  %v4606_v45 = vsel %vm9233_vm11, %v7306_v51, %v4605_v10  ;;  %v4607_v57 = vrot.slane %v4605_v10, 4  ;;  %v4334_v27 = vshrl.u32 %v10643_v52, 16  ;;  %v4337_v7 = vshll.u32 %v10643_v52, 16 }
 0x2bc   : > { %v4317_v21 = vrot.slane %v4316_v26, 4  ;;  %v4332_v33 = vsel %vm9321_vm14, %v4327_v11, %v4331_v58  ;;  %v4345_v17 = vrot.slane %v4343_v37, 5  ;;  %v4612_v36 = vrot.slane %v10645_v15, 5  ;;  %v8542_v58 = vld [vmem:[#allocation9 + $0x118] sm:$0xff]  }
 0x2bd   : > { %7973 = vmatpush3.bf16.msra.mxu1 %v8530_v50  ;;  %v4609_v19 = vsel %vm9233_vm11, %v4607_v57, %v4608_v59  ;;  %v4336_v56 = vrot.slane %v4334_v27, 4  ;;  %v4339_v6 = vrot.slane %v4337_v7, 5  ;;  %v4349_v50 = vrot.slane %v4347_v12, 4  ;;  %v8544_v27 = vld [vmem:[#allocation9 + $0x1b8] sm:$0xff]   ;;  %v10687_v12 = vld [vmem:[#allocation3 + $0x3c] sm:$0xf] }
 0x2be   : > { %7974 = vmatprep.subr.bf16.mxu1 %v8533_v1  ;;  %v4322_v53 = vsel %vm9321_vm14, %v4317_v21, %v4321_v0  ;;  %v7314_v14 = vcombine.low %v4606_v45, %v4609_v19  ;;  %v4613_v3 = vsel %vm9233_vm11, %v7307_v55, %v4612_v36  ;;  %v4614_v16 = vrot.slane %v4612_v36, 4  ;;  %v4570_v55 = vld [vmem:[#allocation3 + $0x3c] sm:$0xe] }
 0x2bf   : > { %v7298_v32 = vcombine.low %v4322_v53, %v4332_v33  ;;  %v4340_v48 = vor.u32 %v4339_v6, %v4336_v56  ;;  %v4360_v31 = vrot.slane %v4358_v9, 4  ;;  %v4377_v23 = vshll.u32 %v4257_v8, 16  ;;  %v8547_v6 = vld [vmem:[#allocation9 + $0x1b0] sm:$0xff]  }
 0x2c0   : > { %4911 = vmatmul.mubr.bf16.gmra.mxu1 %v7313_v28  ;;  %v4616_v4 = vsel %vm9233_vm11, %v4614_v16, %v4615_v24  ;;  %v7308_v10 = vrot.slane %v4569_v18, 9  ;;  %v4622_v45 = vrot.slane %v4257_v8, 5  ;;  %v7291_v57 = vcombine.low %v10643_v52, %v10645_v15  ;;  %v10689_v52 = vld [vmem:[#allocation3 + $0x40] sm:$0xf] }
 0x2c1   : > { %4918 = vmatprep.mubr.bf16.mxu1 %v8531_v42  ;;  %7975 = vmatpush3.bf16.msra.mxu1 %v8534_v25  ;;  %v10664_v42 = vld [vmem:[#allocation3 + $0x34] sm:$0xf]  ;;  %v4341_v20 = vrot.slane %v4340_v48, 4  ;;  %v7315_v47 = vcombine.low %v4613_v3, %v4616_v4  ;;  %v4364_v0 = vor.u32 %v4363_v22, %v4360_v31  ;;  %v4379_v51 = vrot.slane %v4377_v23, 5 }
 0x2c2   : > { %5104 = vmatmul.mubr.bf16.gmra.mxu0 %v7289_v46  ;;  %7976 = vmatprep.subr.bf16.mxu1 %v8537_v54  ;;  %v4350_v46 = vor.u32 %v4349_v50, %v4345_v17  ;;  %v4367_v34 = vshll.u32 %v10664_v42, 16  ;;  %v4371_v13 = vshrl.u32 %v10664_v42, 16  ;;  %v4619_v59 = vrot.slane %v10664_v42, 5  ;;  %v8543_v54 = vld [vmem:[#allocation9 + $0x1f8] sm:$0xff]  }
 0x2c3   : > { %5111 = vmatprep.mubr.bf16.mxu0 %v7298_v32  ;;  %v4346_v1 = vsel %vm9321_vm14, %v4341_v20, %v4345_v17  ;;  %v4365_v30 = vrot.slane %v4364_v0, 4  ;;  %8034 = vmatprep.subr.bf16.mxu0 %v8543_v54  ;;  %v4382_v53 = vshrl.u32 %v10687_v12, 16  ;;  %v4385_v19 = vshll.u32 %v10687_v12, 16  ;;  %v8546_v32 = vld [vmem:[#allocation3 + $0x48] sm:$0xff]   ;;  %v8554_v4 = vld [vmem:[#allocation3 + $0x54] sm:$0xff]  }
 0x2c4   : > { %v4351_v61 = vrot.slane %v4350_v46, 4  ;;  %v4369_v28 = vrot.slane %v4367_v34, 5  ;;  %v4373_v41 = vrot.slane %v4371_v13, 4  ;;  %v4621_v39 = vrot.slane %v4619_v59, 4  ;;  %8035 = vmatpush3.bf16.msra.mxu0 %v8544_v27  ;;  %v8550_v34 = vld [vmem:[#allocation9 + $0x110] sm:$0xff]   ;;  %v8552_v13 = vld [vmem:[#allocation9 + $0x1a8] sm:$0xff]  }
 0x2c5   : > { %7977 = vmatpush3.bf16.msra.mxu1 %v8538_v38  ;;  %v4620_v7 = vsel %vm9233_vm11, %v7308_v10, %v4619_v59  ;;  %v4391_v43 = vshll.u32 %v10689_v52, 16  ;;  %v4395_v33 = vshrl.u32 %v10689_v52, 16  ;;  %v4384_v50 = vrot.slane %v4382_v53, 4  ;;  %v8555_v10 = vld [vmem:[#allocation9 + $0x1a0] sm:$0xff]   ;;  %v8559_v53 = vld [vmem:[#allocation9 + $0x1d8] sm:$0xff]  }
 0x2c6   : > { %7978 = vmatprep.subr.bf16.mxu1 %v8541_v40  ;;  %v4356_v25 = vsel %vm9321_vm14, %v4351_v61, %v4355_v2  ;;  %v4374_v21 = vor.u32 %v4373_v41, %v4369_v28  ;;  %v4370_v38 = vsel %vm9321_vm14, %v4365_v30, %v4369_v28  ;;  %v4623_v37 = vsel %vm9233_vm11, %v4621_v39, %v4622_v45  ;;  %v8551_v40 = vld [vmem:[#allocation9 + $0x1e8] sm:$0xff]  }
 0x2c7   : > { %v7299_v26 = vcombine.low %v4346_v1, %v4356_v25  ;;  %v7316_v17 = vcombine.low %v4620_v7, %v4623_v37  ;;  %v4387_v2 = vrot.slane %v4385_v19, 5  ;;  %v4393_v48 = vrot.slane %v4391_v43, 5  ;;  %v10710_v25 = vld [vmem:[#allocation3 + $0x4c] sm:$0xf]  ;;  %v8557_v7 = vld [vmem:[#allocation9 + $0x148] sm:$0xff]   ;;  %v8560_v19 = vld [vmem:[#allocation9 + $0x198] sm:$0xff]  }
 0x2c8   : > { %4919 = vmatmul.mubr.bf16.gmra.mxu1 %v7314_v14  ;;  %v4375_v11 = vrot.slane %v4374_v21, 4  ;;  %v4401_v14 = vshll.u32 %v4258_v35, 16  ;;  %v4397_v36 = vrot.slane %v4395_v33, 4  ;;  %v7309_v24 = vrot.slane %v4570_v55, 9  ;;  %v4571_v21 = vld [vmem:[#allocation3 + $0x48] sm:$0xe] }
 0x2c9   : > { %4926 = vmatprep.mubr.bf16.mxu1 %v8535_v5  ;;  %7979 = vmatpush3.bf16.msra.mxu1 %v8542_v58  ;;  %v8545_v5 = vld [vmem:[#allocation9 + $0x1f0] sm:$0xff]   ;;  %v4629_v46 = vrot.slane %v4258_v35, 5  ;;  %v4388_v8 = vor.u32 %v4387_v2, %v4384_v50  ;;  %v7292_v20 = vcombine.low %v10662_v49, %v10664_v42  ;;  %v8553_v42 = vld [vmem:[#allocation9 + $0x1e0] sm:$0xff]   ;;  %v4415_v58 = vshll.u32 %v10710_v25, 16  ;;  %v8558_v37 = vld [vmem:[#allocation9 + $0x108] sm:$0xff]  }
 0x2ca   : > { %5112 = vmatmul.mubr.bf16.gmra.mxu0 %v7290_v29  ;;  %v4380_v15 = vsel %vm9321_vm14, %v4375_v11, %v4379_v51  ;;  %8036 = vmatprep.subr.bf16.mxu0 %v8545_v5  ;;  %v4626_v29 = vrot.slane %v10689_v52, 5  ;;  %v4398_v3 = vor.u32 %v4397_v36, %v4393_v48  ;;  %v4403_v16 = vrot.slane %v4401_v14, 5  ;;  %v8561_v43 = vld [vmem:[#allocation9 + $0x1d0] sm:$0xff]   ;;  %v10727_v50 = vld [vmem:[#allocation3 + $0x54] sm:$0xf] }
 0x2cb   : > { %5119 = vmatprep.mubr.bf16.mxu0 %v7299_v26  ;;  %v7300_v56 = vcombine.low %v4370_v38, %v4380_v15  ;;  %8037 = vmatpush3.bf16.msra.mxu0 %v8547_v6  ;;  %v4389_v18 = vrot.slane %v4388_v8, 4  ;;  %v4419_v26 = vshrl.u32 %v10710_v25, 16  ;;  %v7293_v59 = vcombine.low %v10687_v12, %v10689_v52  ;;  %v10729_v55 = vld [vmem:[#allocation3 + $0x58] sm:$0xf] }
 0x2cc   : > { %v4628_v9 = vrot.slane %v4626_v29, 4  ;;  %7980 = vmatprep.subr.bf16.mxu1 %v8549_v63  ;;  %v4399_v61 = vrot.slane %v4398_v3, 4  ;;  %v4627_v31 = vsel %vm9233_vm11, %v7309_v24, %v4626_v29  ;;  %8038 = vmatprep.subr.bf16.mxu0 %v8551_v40  ;;  %v4417_v45 = vrot.slane %v4415_v58, 5  ;;  %v4260_v29 = vld [vmem:[#allocation3 + $0x5c] sm:$0x1]  ;;  %v8563_v63 = vld [vmem:[#allocation9 + $0x190] sm:$0xff]  }
 0x2cd   : > { %7981 = vmatpush3.bf16.msra.mxu1 %v8550_v34  ;;  %v4394_v49 = vsel %vm9321_vm14, %v4389_v18, %v4393_v48  ;;  %v7310_v27 = vrot.slane %v4571_v21, 9  ;;  %v4633_v11 = vrot.slane %v10710_v25, 5  ;;  %v4430_v48 = vshrl.u32 %v10727_v50, 16 }
 0x2ce   : > { %v4630_v22 = vsel %vm9233_vm11, %v4628_v9, %v4629_v46  ;;  %v4404_v1 = vsel %vm9321_vm14, %v4399_v61, %v4403_v16  ;;  %7982 = vmatprep.subr.bf16.mxu1 %v8557_v7  ;;  %v4433_v36 = vshll.u32 %v10727_v50, 16  ;;  %v4439_v46 = vshll.u32 %v10729_v55, 16  ;;  %v4572_v16 = vld [vmem:[#allocation3 + $0x54] sm:$0xe] }
 0x2cf   : > { %v7301_v28 = vcombine.low %v4394_v49, %v4404_v1  ;;  %v7317_v23 = vcombine.low %v4627_v31, %v4630_v22  ;;  %8039 = vmatpush3.bf16.msra.mxu0 %v8552_v13  ;;  %v4634_v12 = vsel %vm9233_vm11, %v7310_v27, %v4633_v11  ;;  %v4635_v52 = vrot.slane %v4633_v11, 4  ;;  %v8565_v49 = vld [vmem:[#allocation9 + $0x140] sm:$0xff]  }
 0x2d0   : > { %4927 = vmatmul.mubr.bf16.gmra.mxu1 %v7315_v47  ;;  %v4259_v47 = vld [vmem:[#allocation3 + $0x50] sm:$0x1]  ;;  %8040 = vmatprep.subr.bf16.mxu0 %v8553_v42  ;;  %v4443_v8 = vshrl.u32 %v10729_v55, 16  ;;  %v4449_v9 = vshll.u32 %v4260_v29, 16  ;;  %v4435_v3 = vrot.slane %v4433_v36, 5  ;;  %v4441_v34 = vrot.slane %v4439_v46, 5 }
 0x2d1   : > { %4934 = vmatprep.mubr.bf16.mxu1 %v8539_v62  ;;  %v10708_v62 = vld [vmem:[#allocation3 + $0x48] sm:$0xf]  ;;  %v4425_v51 = vshll.u32 %v4259_v47, 16  ;;  %v4636_v5 = vrot.slane %v4259_v47, 5  ;;  %7983 = vmatpush3.bf16.msra.mxu1 %v8558_v37  ;;  %v7311_v61 = vrot.slane %v4572_v16, 9  ;;  %v4640_v22 = vrot.slane %v10729_v55, 5 }
 0x2d2   : > { %5120 = vmatmul.mubr.bf16.gmra.mxu0 %v7291_v57  ;;  %v4406_v0 = vshrl.u32 %v10708_v62, 16  ;;  %v4409_v41 = vshll.u32 %v10708_v62, 16  ;;  %v4421_v57 = vrot.slane %v4419_v26, 4  ;;  %v7294_v24 = vcombine.low %v10708_v62, %v10710_v25  ;;  %v8566_v42 = vld [vmem:[#allocation9 + $0x100] sm:$0xff]   ;;  %7984 = vmatprep.subr.bf16.mxu1 %v8565_v49  ;;  %v8568_v25 = vld [vmem:[#allocation9 + $0x188] sm:$0xff]  }
 0x2d3   : > { %5127 = vmatprep.mubr.bf16.mxu0 %v7300_v56  ;;  %v4427_v39 = vrot.slane %v4425_v51, 5  ;;  %8041 = vmatpush3.bf16.msra.mxu0 %v8555_v10  ;;  %v4637_v14 = vsel %vm9233_vm11, %v4635_v52, %v4636_v5  ;;  %v4445_v18 = vrot.slane %v4443_v8, 4  ;;  %v4451_v40 = vrot.slane %v4449_v9, 5  ;;  %v5161_v51 = vld [vmem:[#allocation3 + $0x10] sm:$0xf]  ;;  %v8570_v11 = vld [vmem:[#allocation9 + $0x180] sm:$0xff]  }
 0x2d4   : > { %v4408_v54 = vrot.slane %v4406_v0, 4  ;;  %v4411_v30 = vrot.slane %v4409_v41, 5  ;;  %v4422_v15 = vor.u32 %v4421_v57, %v4417_v45  ;;  %8042 = vmatprep.subr.bf16.mxu0 %v8559_v53  ;;  %v4643_v13 = vrot.slane %v4260_v29, 5  ;;  %v8569_v0 = vld [vmem:[#allocation9 + $0x1c0] sm:$0xff]   ;;  %v5160_v53 = vld [vmem:[#allocation3 + $0xc] sm:$0xf] }
 0x2d5   : > { %v4446_v1 = vor.u32 %v4445_v18, %v4441_v34  ;;  %v4641_v62 = vsel %vm9233_vm11, %v7311_v61, %v4640_v22  ;;  %7985 = vmatpush3.bf16.msra.mxu1 %v8566_v42  ;;  %v7295_v26 = vcombine.low %v10727_v50, %v10729_v55  ;;  %v5198_v21 = vshrl.u32 %v5161_v51, 16  ;;  %v5164_v9 = vld [vmem:[#allocation3 + $0x1c] sm:$0xf]  ;;  %v5377_v18 = vld [vmem:[#allocation3 + $0x18] sm:$0xe] }
 0x2d6   : > { %v4412_v38 = vor.u32 %v4411_v30, %v4408_v54  ;;  %v4423_v56 = vrot.slane %v4422_v15, 4  ;;  %v5162_v54 = vld [vmem:[#allocation3 + $0x14] sm:$0x1]  ;;  %v5194_v30 = vshll.u32 %v5161_v51, 16 }
 0x2d7   : > { %8043 = vmatpush3.bf16.msra.mxu0 %v8560_v19  ;;  %v4447_v47 = vrot.slane %v4446_v1, 4  ;;  %v5200_v7 = vrot.slane %v5198_v21, 4  ;;  %v5413_v37 = vrot.slane %v5162_v54, 5  ;;  %v10748_v15 = vld [vmem:[#allocation9 + $0x238] sm:$0xff]   ;;  %v5417_v1 = vrot.slane %v5164_v9, 5 }
 0x2d8   : > { %4935 = vmatmul.mubr.bf16.gmra.mxu1 %v7316_v17  ;;  %v4413_v35 = vrot.slane %v4412_v38, 4  ;;  %v4428_v6 = vsel %vm9321_vm14, %v4423_v56, %v4427_v39  ;;  %v7318_v17 = vcombine.low %v4634_v12, %v4637_v14  ;;  %8044 = vmatprep.subr.bf16.mxu0 %v8561_v43  ;;  %v5204_v39 = vshll.u32 %v5162_v54, 16 }
 0x2d9   : > { %4942 = vmatprep.mubr.bf16.mxu1 %v8546_v32  ;;  %v8562_v32 = vld [vmem:[#allocation3 + $0x60] sm:$0xff]   ;;  %v4452_v10 = vsel %vm9321_vm14, %v4447_v47, %v4451_v40  ;;  %v5410_v38 = vrot.slane %v5161_v51, 5  ;;  %v5196_v5 = vrot.slane %v5194_v30, 5  ;;  %v5185_v56 = vshrl.u32 %v5160_v53, 16  ;;  %8166 = vmatprep.subr.bf16.mxu1 %v10748_v15  ;;  %v5163_v40 = vld [vmem:[#allocation3 + $0x18] sm:$0xf] }
 0x2da   : > { %5128 = vmatmul.mubr.bf16.gmra.mxu0 %v7292_v20  ;;  %v4418_v33 = vsel %vm9321_vm14, %v4413_v35, %v4417_v45  ;;  %v4432_v20 = vrot.slane %v4430_v48, 4  ;;  %v5376_v45 = vld [vmem:[#allocation3 + $0xc] sm:$0xe]  ;;  %v5206_v35 = vrot.slane %v5204_v39, 5  ;;  %v5188_v43 = vshll.u32 %v5160_v53, 16 }
 0x2db   : > { %5135 = vmatprep.mubr.bf16.mxu0 %v7301_v28  ;;  %v7302_v2 = vcombine.low %v4418_v33, %v4428_v6  ;;  %8045 = vmatpush3.bf16.msra.mxu0 %v8563_v63  ;;  %v4642_v28 = vrot.slane %v4640_v22, 4  ;;  %v7360_v27 = vrot.slane %v5376_v45, 9  ;;  %v5412_v52 = vrot.slane %v5410_v38, 4  ;;  %v10753_v33 = vld [vmem:[#allocation3 + $0x18] sm:$0xf]  ;;  %v8573_v30 = vld [vmem:[#allocation9 + $0x230] sm:$0xff]  }
 0x2dc   : > { %v4436_v31 = vor.u32 %v4435_v3, %v4432_v20  ;;  %v5201_v19 = vor.u32 %v5200_v7, %v5196_v5  ;;  %v10757_v6 = vld [vmem:[#allocation3 + $0x1c] sm:$0xf]  ;;  %v5798_v50 = vshll.u32 %v10753_v33, 16  ;;  %v5187_v29 = vrot.slane %v5185_v56, 4  ;;  %v5165_v63 = vld [vmem:[#allocation3 + $0x20] sm:$0x1] }
 0x2dd   : > { %v4644_v58 = vsel %vm9233_vm11, %v4642_v28, %v4643_v13  ;;  %v5411_v12 = vsel %vm9233_vm11, %v7360_v27, %v5410_v38  ;;  %v5414_v14 = vsel %vm9233_vm11, %v5412_v52, %v5413_v37  ;;  %v5190_v48 = vrot.slane %v5188_v43, 5  ;;  %v10780_v27 = vld [vmem:[#allocation3 + $0x28] sm:$0xf]  ;;  %v10782_v38 = vld [vmem:[#allocation10 + $0x38] sm:$0xff]   ;;  %v5787_v37 = vld [vmem:[#allocation3 + $0x2c] sm:$0x1] }
 0x2de   : > { %v7376_v55 = vcombine.low %v5411_v12, %v5414_v14  ;;  %v5804_v46 = vshll.u32 %v10757_v6, 16  ;;  %v5808_v8 = vshrl.u32 %v10757_v6, 16  ;;  %v7361_v13 = vrot.slane %v5377_v18, 9  ;;  %v5166_v18 = vld [vmem:[#allocation3 + $0x24] sm:$0xf] }
 0x2df   : > { %v5191_v3 = vor.u32 %v5190_v48, %v5187_v29  ;;  %v5222_v39 = vshrl.u32 %v5164_v9, 16  ;;  %v5228_v7 = vshll.u32 %v5165_v63, 16  ;;  %v5832_v14 = vshrl.u32 %v10780_v27, 16  ;;  %v5378_v29 = vld [vmem:[#allocation3 + $0x24] sm:$0xe]  ;;  %v10792_v48 = vld [vmem:[#allocation10 + $0x30] sm:$0xff]  }
 0x2e0   : > { %4943 = vmatmul.mubr.bf16.gmra.mxu1 %v7317_v23  ;;  %v8567_v23 = vld [vmem:[#allocation9 + $0x1c8] sm:$0xff]   ;;  %v5810_v22 = vrot.slane %v5808_v8, 4  ;;  %v6343_v8 = vrot.slane %v5787_v37, 5 }
 0x2e1   : > { %4950 = vmatprep.mubr.bf16.mxu1 %v8554_v4  ;;  %v4437_v4 = vrot.slane %v4436_v31, 4  ;;  %8046 = vmatprep.subr.bf16.mxu0 %v8567_v23  ;;  %v5806_v31 = vrot.slane %v5804_v46, 5  ;;  %v5192_v49 = vrot.slane %v5191_v3, 4  ;;  %v5209_v23 = vshrl.u32 %v5163_v40, 16 }
 0x2e2   : > { %5136 = vmatmul.mubr.bf16.gmra.mxu0 %v7293_v59  ;;  %v7319_v59 = vcombine.low %v4641_v62, %v4644_v58  ;;  %v5218_v58 = vshll.u32 %v5164_v9, 16  ;;  %v5224_v53 = vrot.slane %v5222_v39, 4  ;;  %v5230_v56 = vrot.slane %v5228_v7, 5  ;;  %v5168_v9 = vld [vmem:[#allocation3 + $0x2c] sm:$0x1] }
 0x2e3   : > { %5143 = vmatprep.mubr.bf16.mxu0 %v7302_v2  ;;  %v4442_v41 = vsel %vm9321_vm14, %v4437_v4, %v4441_v34  ;;  %8047 = vmatpush3.bf16.msra.mxu0 %v8568_v25  ;;  %v5202_v2 = vrot.slane %v5201_v19, 4  ;;  %v7400_v34 = vcombine.low %v10753_v33, %v10757_v6  ;;  %v5420_v4 = vrot.slane %v5165_v63, 5  ;;  %v10824_v7 = vld [vmem:[#allocation3 + $0x38] sm:$0x1] }
 0x2e4   : > { %v7303_v57 = vcombine.low %v4442_v41, %v4452_v10  ;;  %8048 = vmatprep.subr.bf16.mxu0 %v8569_v0  ;;  %v5811_v28 = vor.u32 %v5810_v22, %v5806_v31  ;;  %v5212_v25 = vshll.u32 %v5163_v40, 16  ;;  %v5197_v47 = vsel %vm9321_vm14, %v5192_v49, %v5196_v5  ;;  %v8577_v40 = vld [vmem:[#allocation9 + $0x220] sm:$0xff]   ;;  %v5167_v22 = vld [vmem:[#allocation3 + $0x28] sm:$0xf] }
 0x2e5   : > { %v5207_v20 = vsel %vm9321_vm14, %v5202_v2, %v5206_v35  ;;  %v5418_v0 = vsel %vm9233_vm11, %v7361_v13, %v5417_v1  ;;  %v5419_v41 = vrot.slane %v5417_v1, 4  ;;  %v5211_v54 = vrot.slane %v5209_v23, 4 }
 0x2e6   : > { %v7368_v51 = vcombine.low %v5197_v47, %v5207_v20  ;;  %v5214_v45 = vrot.slane %v5212_v25, 5  ;;  %v6340_v46 = vrot.slane %v10780_v27, 5  ;;  %v7362_v13 = vrot.slane %v5378_v29, 9  ;;  %v5171_v29 = vld [vmem:[#allocation3 + $0x38] sm:$0x1] }
 0x2e7   : > { %8049 = vmatpush3.bf16.msra.mxu0 %v8570_v11  ;;  %v5421_v21 = vsel %vm9233_vm11, %v5419_v41, %v5420_v4  ;;  %v5424_v1 = vrot.slane %v5167_v22, 5  ;;  %v5427_v4 = vrot.slane %v5168_v9, 5  ;;  %v5233_v25 = vshrl.u32 %v5166_v18, 16 }
 0x2e8   : > { %4951 = vmatmul.mubr.bf16.gmra.mxu1 %v7318_v17  ;;  %v10759_v17 = vld [vmem:[#allocation3 + $0x20] sm:$0x1]  ;;  %v7377_v5 = vcombine.low %v5418_v0, %v5421_v21  ;;  %v5215_v52 = vor.u32 %v5214_v45, %v5211_v54  ;;  %8198 = vmatprep.subr.bf16.mxu0 %v10782_v38  ;;  %v5242_v54 = vshll.u32 %v5167_v22, 16  ;;  %v10818_v21 = vld [vmem:[#allocation3 + $0x34] sm:$0xf] }
 0x2e9   : > { %4958 = vmatprep.mubr.bf16.mxu1 %v8562_v32  ;;  %v5795_v32 = vshrl.u32 %v10753_v33, 16  ;;  %v5814_v16 = vshll.u32 %v10759_v17, 16  ;;  %v5828_v33 = vshll.u32 %v10780_v27, 16  ;;  %v5425_v0 = vsel %vm9233_vm11, %v7362_v13, %v5424_v1  ;;  %v10820_v45 = vld [vmem:[#allocation10 + $0x28] sm:$0xff]  }
 0x2ea   : > { %5144 = vmatmul.mubr.bf16.gmra.mxu0 %v7294_v24  ;;  %v5800_v24 = vrot.slane %v5798_v50, 5  ;;  %v5216_v50 = vrot.slane %v5215_v52, 4  ;;  %v5426_v41 = vrot.slane %v5424_v1, 4  ;;  %v5434_v13 = vrot.slane %v5171_v29, 5 }
 0x2eb   : > { %5151 = vmatprep.mubr.bf16.mxu0 %v7303_v57  ;;  %v5797_v36 = vrot.slane %v5795_v32, 4  ;;  %v5816_v42 = vrot.slane %v5814_v16, 5  ;;  %v5220_v57 = vrot.slane %v5218_v58, 5  ;;  %v8575_v32 = vld [vmem:[#allocation9 + $0x228] sm:$0xff]   ;;  %v5236_v58 = vshll.u32 %v5166_v18, 16 }
 0x2ec   : > { %v5428_v39 = vsel %vm9233_vm11, %v5426_v41, %v5427_v4  ;;  %v10848_v41 = vld [vmem:[#allocation3 + $0x40] sm:$0xf] }
 0x2ed   : > { %v5801_v61 = vor.u32 %v5800_v24, %v5797_v36  ;;  %v5225_v2 = vor.u32 %v5224_v53, %v5220_v57  ;;  %v5830_v36 = vrot.slane %v5828_v33, 5  ;;  %v5834_v24 = vrot.slane %v5832_v14, 4 }
 0x2ee   : > { %v5221_v63 = vsel %vm9321_vm14, %v5216_v50, %v5220_v57  ;;  %v5852_v14 = vshll.u32 %v10818_v21, 16 }
 0x2ef   : > { %v5802_v62 = vrot.slane %v5801_v61, 4  ;;  %v5226_v20 = vrot.slane %v5225_v2, 4  ;;  %v5835_v61 = vor.u32 %v5834_v24, %v5830_v36  ;;  %v5856_v2 = vshrl.u32 %v10818_v21, 16 }
 0x2f0   : > { %4959 = vmatmul.mubr.bf16.gmra.mxu1 %v7319_v59  ;;  %v5812_v59 = vrot.slane %v5811_v28, 4 }
 0x2f1   : > { %5688 = vmatprep.mubr.bf16.mxu1 %v7376_v55  ;;  %v5807_v10 = vsel %vm9321_vm14, %v5802_v62, %v5806_v31  ;;  %v5231_v49 = vsel %vm9321_vm14, %v5226_v20, %v5230_v56  ;;  %v5836_v28 = vrot.slane %v5835_v61, 4  ;;  %v5169_v20 = vld [vmem:[#allocation3 + $0x30] sm:$0xf] }
 0x2f2   : > { %5152 = vmatmul.mubr.bf16.gmra.mxu0 %v7295_v26  ;;  %v10774_v26 = vld [vmem:[#allocation3 + $0x24] sm:$0xf]  ;;  %v5817_v11 = vsel %vm9321_vm14, %v5812_v59, %v5816_v42  ;;  %v7369_v62 = vcombine.low %v5221_v63, %v5231_v49  ;;  %v5235_v59 = vrot.slane %v5233_v25, 4  ;;  %v10838_v61 = vld [vmem:[#allocation10 + $0x18] sm:$0xff]   ;;  %v5257_v1 = vshrl.u32 %v5169_v20, 16 }
 0x2f3   : > { %v5819_v35 = vshrl.u32 %v10774_v26, 16  ;;  %v7408_v12 = vcombine.low %v5807_v10, %v5817_v11  ;;  %v5822_v19 = vshll.u32 %v10774_v26, 16  ;;  %v7401_v31 = vcombine.low %v10774_v26, %v10780_v27  ;;  %v10813_v26 = vld [vmem:[#allocation3 + $0x30] sm:$0xf] }
 0x2f4   : > { %v5238_v11 = vrot.slane %v5236_v58, 5  ;;  %v5843_v53 = vshrl.u32 %v10813_v26, 16  ;;  %v5846_v33 = vshll.u32 %v10813_v26, 16  ;;  %v7402_v63 = vcombine.low %v10813_v26, %v10818_v21  ;;  %v8587_v58 = vld [vmem:[#allocation9 + $0x208] sm:$0xff]  }
 0x2f5   : > { %v5821_v43 = vrot.slane %v5819_v35, 4  ;;  %6226 = vmatprep.mubr.bf16.mxu0 %v7408_v12  ;;  %v5824_v55 = vrot.slane %v5822_v19, 5  ;;  %v7378_v35 = vcombine.low %v5425_v0, %v5428_v39  ;;  %v5244_v12 = vrot.slane %v5242_v54, 5  ;;  %v10828_v19 = vld [vmem:[#allocation10 + $0x20] sm:$0xff]  }
 0x2f6   : > { %v5239_v56 = vor.u32 %v5238_v11, %v5235_v59  ;;  %v5845_v50 = vrot.slane %v5843_v53, 4  ;;  %v5260_v4 = vshll.u32 %v5169_v20, 16 }
 0x2f7   : > { %v5825_v3 = vor.u32 %v5824_v55, %v5821_v43  ;;  %v5862_v55 = vshll.u32 %v10824_v7, 16 }
 0x2f8   : > { %5689 = vmatmul.mubr.bf16.vlgmr.msra.gmra.mxu1 %v7368_v51  ;;  %v8579_v51 = vld [vmem:[#allocation9 + $0x218] sm:$0xff]   ;;  %v5240_v24 = vrot.slane %v5239_v56, 4  ;;  %v5262_v59 = vrot.slane %v5260_v4, 5  ;;  %v5380_v56 = vld [vmem:[#allocation3 + $0x3c] sm:$0xe] }
 0x2f9   : > { %8167 = vmatpush3.bf16.msra.mxu1 %v10748_v15  ;;  %5696 = vmatprep.mubr.bf16.mxu1 %v7377_v5  ;;  %v5838_v15 = vshll.u32 %v5787_v37, 16  ;;  %v5826_v42 = vrot.slane %v5825_v3, 4  ;;  %v5252_v5 = vshll.u32 %v5168_v9, 16  ;;  %v5379_v37 = vld [vmem:[#allocation3 + $0x30] sm:$0xe]  ;;  %v5854_v9 = vrot.slane %v5852_v14, 5 }
 0x2fa   : > { %8168 = vmatprep.subr.bf16.mxu1 %v8573_v30  ;;  %6227 = vmatmul.mubr.bf16.vlgmr.msra.gmra.mxu0 %v7400_v34  ;;  %v6342_v34 = vrot.slane %v6340_v46, 4  ;;  %v5864_v18 = vrot.slane %v5862_v55, 5  ;;  %v8591_v55 = vld [vmem:[#allocation9 + $0x200] sm:$0xff]  }
 0x2fb   : > { %v5840_v16 = vrot.slane %v5838_v15, 5  ;;  %8199 = vmatpush3.bf16.msra.mxu0 %v10782_v38  ;;  %v5831_v47 = vsel %vm9321_vm14, %v5826_v42, %v5830_v36  ;;  %v5254_v43 = vrot.slane %v5252_v5, 5  ;;  %v5170_v15 = vld [vmem:[#allocation3 + $0x34] sm:$0xf]  ;;  %v8583_v36 = vld [vmem:[#allocation9 + $0x210] sm:$0xff]   ;;  %v5276_v5 = vshll.u32 %v5171_v29, 16 }
 0x2fc   : > { %8200 = vmatprep.subr.bf16.mxu0 %v10792_v48  ;;  %v10807_v23 = vsel %vm9233_vm11, %v6342_v34, %v6343_v8  ;;  %v5848_v8 = vrot.slane %v5846_v33, 5  ;;  %v5245_v34 = vsel %vm9321_vm14, %v5240_v24, %v5244_v12  ;;  %v5266_v54 = vshll.u32 %v5170_v15, 16 }
 0x2fd   : > { %8169 = vmatpush3.bf16.msra.mxu1 %v8573_v30  ;;  %v5841_v10 = vsel %vm9321_vm14, %v5836_v28, %v5840_v16  ;;  %v5246_v30 = vshrl.u32 %v5167_v22, 16  ;;  %v5858_v16 = vrot.slane %v5856_v2, 4  ;;  %v5431_v22 = vrot.slane %v5170_v15, 5  ;;  %v5172_v2 = vld [vmem:[#allocation3 + $0x3c] sm:$0xf] }
 0x2fe   : > { %8170 = vmatprep.subr.bf16.mxu1 %v8575_v32  ;;  %v7409_v57 = vcombine.low %v5831_v47, %v5841_v10  ;;  %v5259_v10 = vrot.slane %v5257_v1, 4  ;;  %v5270_v11 = vshrl.u32 %v5170_v15, 16  ;;  %v5268_v53 = vrot.slane %v5266_v54, 5 }
 0x2ff   : > { %8201 = vmatpush3.bf16.msra.mxu0 %v10792_v48  ;;  %v5248_v52 = vrot.slane %v5246_v30, 4  ;;  %v5859_v42 = vor.u32 %v5858_v16, %v5854_v9  ;;  %v5433_v0 = vrot.slane %v5431_v22, 4  ;;  %v10852_v30 = vld [vmem:[#allocation10 + $0x10] sm:$0xff]   ;;  %v5278_v14 = vrot.slane %v5276_v5, 5 }
 0x300   : > { %5697 = vmatmul.mubr.bf16.gmra.mxu1 %v7369_v62  ;;  %8202 = vmatprep.subr.bf16.mxu0 %v10820_v45  ;;  %v10844_v62 = vld [vmem:[#allocation3 + $0x3c] sm:$0xf]  ;;  %v5272_v33 = vrot.slane %v5270_v11, 4  ;;  %v5876_v24 = vshll.u32 %v10848_v41, 16  ;;  %v5281_v26 = vshrl.u32 %v5172_v2, 16 }
 0x301   : > { %8171 = vmatpush3.bf16.msra.mxu1 %v8575_v32  ;;  %6234 = vmatprep.mubr.bf16.mxu0 %v7409_v57  ;;  %v5249_v32 = vor.u32 %v5248_v52, %v5244_v12  ;;  %v5435_v39 = vsel %vm9233_vm11, %v5433_v0, %v5434_v13  ;;  %v5263_v52 = vor.u32 %v5262_v59, %v5259_v10  ;;  %v5870_v29 = vshll.u32 %v10844_v62, 16  ;;  %v10891_v10 = vld [vmem:[#allocation3 + $0x4c] sm:$0xf] }
 0x302   : > { %8172 = vmatprep.subr.bf16.mxu1 %v8577_v40  ;;  %6235 = vmatmul.mubr.bf16.gmra.mxu0 %v7401_v31  ;;  %v5849_v31 = vor.u32 %v5848_v8, %v5845_v50  ;;  %v10863_v50 = vld [vmem:[#allocation3 + $0x44] sm:$0x1]  ;;  %v5173_v8 = vld [vmem:[#allocation3 + $0x40] sm:$0xf]  ;;  %v5273_v20 = vor.u32 %v5272_v33, %v5268_v53  ;;  %v10902_v33 = vld [vmem:[#allocation3 + $0x50] sm:$0x1] }
 0x303   : > { %5704 = vmatprep.mubr.bf16.mxu1 %v7378_v35  ;;  %8203 = vmatpush3.bf16.msra.mxu0 %v10820_v45  ;;  %v5250_v3 = vrot.slane %v5249_v32, 4  ;;  %v5867_v32 = vshrl.u32 %v10844_v62, 16  ;;  %v5264_v15 = vrot.slane %v5263_v52, 4  ;;  %v5438_v1 = vrot.slane %v5173_v8, 5 }
 0x304   : > { %8204 = vmatprep.subr.bf16.mxu0 %v10828_v19  ;;  %v5850_v25 = vrot.slane %v5849_v31, 4  ;;  %v5878_v31 = vrot.slane %v5876_v24, 5  ;;  %v5274_v13 = vrot.slane %v5273_v20, 4  ;;  %v5900_v20 = vshll.u32 %v10891_v10, 16 }
 0x305   : > { %8173 = vmatpush3.bf16.msra.mxu1 %v8577_v40  ;;  %v7363_v40 = vrot.slane %v5379_v37, 9  ;;  %v5255_v49 = vsel %vm9321_vm14, %v5250_v3, %v5254_v43  ;;  %v10858_v37 = vld [vmem:[#allocation3 + $0x44] sm:$0x1]  ;;  %v5869_v3 = vrot.slane %v5867_v32, 4  ;;  %v5440_v0 = vrot.slane %v5438_v1, 4 }
 0x306   : > { %8174 = vmatprep.subr.bf16.mxu1 %v8579_v51  ;;  %v7370_v28 = vcombine.low %v5245_v34, %v5255_v49  ;;  %v5855_v57 = vsel %vm9321_vm14, %v5850_v25, %v5854_v9  ;;  %v10870_v9 = vld [vmem:[#allocation10 + $0x8] sm:$0xff]   ;;  %v5886_v16 = vshll.u32 %v10858_v37, 16  ;;  %v5872_v34 = vrot.slane %v5870_v29, 5  ;;  %v5381_v29 = vld [vmem:[#allocation3 + $0x48] sm:$0xe] }
 0x307   : > { %v5432_v47 = vsel %vm9233_vm11, %v7363_v40, %v5431_v22  ;;  %8205 = vmatpush3.bf16.msra.mxu0 %v10828_v19  ;;  %v5269_v40 = vsel %vm9321_vm14, %v5264_v15, %v5268_v53  ;;  %v5279_v25 = vsel %vm9321_vm14, %v5274_v13, %v5278_v14  ;;  %v5177_v15 = vld [vmem:[#allocation3 + $0x50] sm:$0x1]  ;;  %v5902_v13 = vrot.slane %v5900_v20, 5  ;;  %v5382_v20 = vld [vmem:[#allocation3 + $0x54] sm:$0xe] }
 0x308   : > { %8206 = vmatprep.subr.bf16.mxu0 %v10838_v61  ;;  %5705 = vmatmul.mubr.bf16.gmra.mxu1 %v7370_v28  ;;  %v7379_v12 = vcombine.low %v5432_v47, %v5435_v39  ;;  %v5888_v49 = vrot.slane %v5886_v16, 5  ;;  %v5873_v4 = vor.u32 %v5872_v34, %v5869_v3  ;;  %v5441_v28 = vrot.slane %v10863_v50, 5  ;;  %v5175_v3 = vld [vmem:[#allocation3 + $0x48] sm:$0xf] }
 0x309   : > { %8175 = vmatpush3.bf16.msra.mxu1 %v8579_v51  ;;  %v5860_v51 = vrot.slane %v5859_v42, 4  ;;  %v7364_v42 = vrot.slane %v5380_v56, 9  ;;  %v7371_v59 = vcombine.low %v5269_v40, %v5279_v25  ;;  %v5283_v39 = vrot.slane %v5281_v26, 4 }
 0x30a   : > { %8176 = vmatprep.subr.bf16.mxu1 %v8583_v36  ;;  %5712 = vmatprep.mubr.bf16.mxu1 %v7379_v12  ;;  %v5874_v54 = vrot.slane %v5873_v4, 4  ;;  %v5442_v11 = vsel %vm9233_vm11, %v5440_v0, %v5441_v28  ;;  %v5294_v12 = vshrl.u32 %v5173_v8, 16  ;;  %v5904_v40 = vshrl.u32 %v10891_v10, 16  ;;  %v5176_v28 = vld [vmem:[#allocation3 + $0x4c] sm:$0xf] }
 0x30b   : > { %v5865_v35 = vsel %vm9321_vm14, %v5860_v51, %v5864_v18  ;;  %8207 = vmatpush3.bf16.msra.mxu0 %v10838_v61  ;;  %v7403_v18 = vcombine.low %v10844_v62, %v10848_v41  ;;  %v5439_v47 = vsel %vm9233_vm11, %v7364_v42, %v5438_v1  ;;  %v10889_v51 = vld [vmem:[#allocation3 + $0x48] sm:$0xf]  ;;  %v5910_v34 = vshll.u32 %v10902_v33, 16 }
 0x30c   : > { %v7410_v43 = vcombine.low %v5855_v57, %v5865_v35  ;;  %8208 = vmatprep.subr.bf16.mxu0 %v10852_v30  ;;  %v5290_v35 = vshll.u32 %v5173_v8, 16  ;;  %v5879_v52 = vsel %vm9321_vm14, %v5874_v54, %v5878_v31  ;;  %v7380_v56 = vcombine.low %v5439_v47, %v5442_v11 }
 0x30d   : > { %8177 = vmatpush3.bf16.msra.mxu1 %v8583_v36  ;;  %v5880_v36 = vshrl.u32 %v10848_v41, 16  ;;  %v5894_v8 = vshll.u32 %v10889_v51, 16  ;;  %v5906_v4 = vrot.slane %v5904_v40, 4  ;;  %v7365_v25 = vrot.slane %v5381_v29, 9 }
 0x30e   : > { %8178 = vmatprep.subr.bf16.mxu1 %v8587_v58  ;;  %6242 = vmatprep.mubr.bf16.mxu0 %v7410_v43  ;;  %v5300_v43 = vshll.u32 %v10863_v50, 16  ;;  %v5445_v47 = vrot.slane %v5176_v28, 5  ;;  %v5448_v0 = vrot.slane %v5177_v15, 5  ;;  %v5308_v54 = vshll.u32 %v5175_v3, 16 }
 0x30f   : > { %6243 = vmatmul.mubr.bf16.gmra.mxu0 %v7402_v63  ;;  %v5882_v22 = vrot.slane %v5880_v36, 4  ;;  %v10883_v63 = vld [vmem:[#allocation10] sm:$0xff]   ;;  %v5891_v36 = vshrl.u32 %v10889_v51, 16 }
 0x310   : > { %8209 = vmatpush3.bf16.msra.mxu0 %v10852_v30  ;;  %5713 = vmatmul.mubr.bf16.gmra.mxu1 %v7371_v59  ;;  %v5302_v24 = vrot.slane %v5300_v43, 5  ;;  %v5305_v59 = vshrl.u32 %v5175_v3, 16  ;;  %v5447_v11 = vrot.slane %v5445_v47, 4 }
 0x311   : > { %8179 = vmatpush3.bf16.msra.mxu1 %v8587_v58  ;;  %v5883_v62 = vor.u32 %v5882_v22, %v5878_v31  ;;  %8210 = vmatprep.subr.bf16.mxu0 %v10870_v9  ;;  %v5284_v58 = vshll.u32 %v5172_v2, 16  ;;  %v5292_v2 = vrot.slane %v5290_v35, 5  ;;  %v5893_v31 = vrot.slane %v5891_v36, 4 }
 0x312   : > { %8180 = vmatprep.subr.bf16.mxu1 %v8591_v55  ;;  %5720 = vmatprep.mubr.bf16.mxu1 %v7380_v56  ;;  %v5896_v22 = vrot.slane %v5894_v8, 5  ;;  %v5307_v35 = vrot.slane %v5305_v59, 4  ;;  %v5449_v43 = vsel %vm9233_vm11, %v5447_v11, %v5448_v0 }
 0x313   : > { %v5884_v57 = vrot.slane %v5883_v62, 4  ;;  %v5286_v5 = vrot.slane %v5284_v58, 5  ;;  %v5912_v62 = vrot.slane %v5910_v34, 5  ;;  %v5907_v58 = vor.u32 %v5906_v4, %v5902_v13 }
 0x314   : > { %8211 = vmatpush3.bf16.msra.mxu0 %v10870_v9  ;;  %v5897_v26 = vor.u32 %v5896_v22, %v5893_v31 }
 0x315   : > { %8181 = vmatpush3.bf16.msra.mxu1 %v8591_v55  ;;  %v5889_v53 = vsel %vm9321_vm14, %v5884_v57, %v5888_v49  ;;  %8212 = vmatprep.subr.bf16.mxu0 %v10883_v63  ;;  %v5287_v32 = vor.u32 %v5286_v5, %v5283_v39  ;;  %v5296_v55 = vrot.slane %v5294_v12, 4  ;;  %v7404_v49 = vcombine.low %v10889_v51, %v10891_v10 }
 0x316   : > { %8230 = vmatprep.subr.bf16.mxu1 %v10782_v38  ;;  %v7411_v14 = vcombine.low %v5879_v52, %v5889_v53  ;;  %v5898_v39 = vrot.slane %v5897_v26, 4  ;;  %v5446_v51 = vsel %vm9233_vm11, %v7365_v25, %v5445_v47  ;;  %v5908_v5 = vrot.slane %v5907_v58, 4  ;;  %v10919_v53 = vld [vmem:[#allocation3 + $0x54] sm:$0xf] }
 0x317   : > { %v5288_v50 = vrot.slane %v5287_v32, 4  ;;  %v5297_v16 = vor.u32 %v5296_v55, %v5292_v2  ;;  %v5310_v12 = vrot.slane %v5308_v54, 5  ;;  %v5314_v52 = vshll.u32 %v5176_v28, 16  ;;  %v10927_v55 = vld [vmem:[#allocation3 + $0x5c] sm:$0x1] }
 0x318   : > { %6250 = vmatprep.mubr.bf16.mxu0 %v7411_v14  ;;  %8213 = vmatpush3.bf16.msra.mxu0 %v10883_v63  ;;  %v5903_v56 = vsel %vm9321_vm14, %v5898_v39, %v5902_v13  ;;  %v5318_v14 = vshrl.u32 %v5176_v28, 16  ;;  %v5324_v32 = vshll.u32 %v5177_v15, 16  ;;  %v5913_v29 = vsel %vm9321_vm14, %v5908_v5, %v5912_v62  ;;  %v5180_v62 = vld [vmem:[#allocation3 + $0x5c] sm:$0x1]  ;;  %v5178_v28 = vld [vmem:[#allocation3 + $0x54] sm:$0xf] }
 0x319   : > { %6251 = vmatmul.mubr.bf16.gmra.mxu0 %v7403_v18  ;;  %v5293_v42 = vsel %vm9321_vm14, %v5288_v50, %v5292_v2  ;;  %v5298_v1 = vrot.slane %v5297_v16, 4  ;;  %v10925_v2 = vld [vmem:[#allocation3 + $0x58] sm:$0xf]  ;;  %v5311_v36 = vor.u32 %v5310_v12, %v5307_v35  ;;  %v5316_v8 = vrot.slane %v5314_v52, 5 }
 0x31a   : > { %v7412_v3 = vcombine.low %v5903_v56, %v5913_v29  ;;  %v5320_v50 = vrot.slane %v5318_v14, 4  ;;  %v5326_v16 = vrot.slane %v5324_v32, 5  ;;  %v5915_v40 = vshrl.u32 %v10919_v53, 16  ;;  %v10944_v32 = vld [vmem:[#allocation3 + $0x60] sm:$0xf] }
 0x31b   : > { %v5303_v18 = vsel %vm9321_vm14, %v5298_v1, %v5302_v24  ;;  %v7381_v24 = vcombine.low %v5446_v51, %v5449_v43  ;;  %v5312_v34 = vrot.slane %v5311_v36, 4  ;;  %v5918_v15 = vshll.u32 %v10919_v53, 16 }
 0x31c   : > { %v7372_v57 = vcombine.low %v5293_v42, %v5303_v18  ;;  %v5924_v31 = vshll.u32 %v10925_v2, 16  ;;  %v5928_v22 = vshrl.u32 %v10925_v2, 16  ;;  %6258 = vmatprep.mubr.bf16.mxu0 %v7412_v3  ;;  %v5321_v13 = vor.u32 %v5320_v50, %v5316_v8  ;;  %v5179_v18 = vld [vmem:[#allocation3 + $0x58] sm:$0xf] }
 0x31d   : > { %v5917_v42 = vrot.slane %v5915_v40, 4  ;;  %v5934_v1 = vshll.u32 %v10927_v55, 16  ;;  %v7405_v4 = vcombine.low %v10919_v53, %v10925_v2  ;;  %v5317_v26 = vsel %vm9321_vm14, %v5312_v34, %v5316_v8  ;;  %v10954_v34 = vld [vmem:[#allocation3 + $0x68] sm:$0x1] }
 0x31e   : > { %5721 = vmatmul.mubr.bf16.gmra.mxu1 %v7372_v57  ;;  %v5920_v25 = vrot.slane %v5918_v15, 5  ;;  %v5926_v47 = vrot.slane %v5924_v31, 5  ;;  %v5930_v0 = vrot.slane %v5928_v22, 4  ;;  %v5322_v58 = vrot.slane %v5321_v13, 4 }
 0x31f   : > { %5728 = vmatprep.mubr.bf16.mxu1 %v7381_v24  ;;  %v5936_v59 = vrot.slane %v5934_v1, 5  ;;  %v7366_v54 = vrot.slane %v5382_v20, 9  ;;  %v5452_v57 = vrot.slane %v5179_v18, 5  ;;  %v5455_v11 = vrot.slane %v5180_v62, 5  ;;  %v10948_v20 = vld [vmem:[#allocation3 + $0x64] sm:$0xf] }
 0x320   : > { %v5921_v39 = vor.u32 %v5920_v25, %v5917_v42  ;;  %v5931_v51 = vor.u32 %v5930_v0, %v5926_v47  ;;  %v5329_v5 = vshrl.u32 %v5178_v28, 16  ;;  %v5327_v35 = vsel %vm9321_vm14, %v5322_v58, %v5326_v16  ;;  %v5183_v25 = vld [vmem:[#allocation3 + $0x68] sm:$0x1]  ;;  %v5383_v58 = vld [vmem:[#allocation3 + $0x60] sm:$0xe] }
 0x321   : > { %6259 = vmatmul.mubr.bf16.gmra.mxu0 %v7404_v49  ;;  %v5453_v49 = vsel %vm9233_vm11, %v7366_v54, %v5452_v57  ;;  %v5454_v12 = vrot.slane %v5452_v57, 4  ;;  %v5332_v52 = vshll.u32 %v5178_v28, 16  ;;  %v7373_v53 = vcombine.low %v5317_v26, %v5327_v35 }
 0x322   : > { %v5922_v56 = vrot.slane %v5921_v39, 4  ;;  %v5932_v43 = vrot.slane %v5931_v51, 4  ;;  %v5331_v14 = vrot.slane %v5329_v5, 4  ;;  %v5338_v36 = vshll.u32 %v5179_v18, 16  ;;  %v5181_v51 = vld [vmem:[#allocation3 + $0x60] sm:$0xf] }
 0x323   : > { %v5456_v29 = vsel %vm9233_vm11, %v5454_v12, %v5455_v11  ;;  %v5334_v24 = vrot.slane %v5332_v52, 5  ;;  %v5342_v8 = vshrl.u32 %v5179_v18, 16  ;;  %v5348_v40 = vshll.u32 %v5180_v62, 16  ;;  %v5182_v12 = vld [vmem:[#allocation3 + $0x64] sm:$0xf] }
 0x324   : > { %v5927_v3 = vsel %vm9321_vm14, %v5922_v56, %v5926_v47  ;;  %v5937_v50 = vsel %vm9321_vm14, %v5932_v43, %v5936_v59  ;;  %v7382_v16 = vcombine.low %v5453_v49, %v5456_v29  ;;  %v5340_v22 = vrot.slane %v5338_v36, 5 }
 0x325   : > { %v7413_v15 = vcombine.low %v5927_v3, %v5937_v50  ;;  %v5335_v31 = vor.u32 %v5334_v24, %v5331_v14  ;;  %v5344_v13 = vrot.slane %v5342_v8, 4  ;;  %v5350_v42 = vrot.slane %v5348_v40, 5 }
 0x326   : > { %5729 = vmatmul.mubr.bf16.gmra.mxu1 %v7373_v53  ;;  %v5939_v1 = vshrl.u32 %v10944_v32, 16  ;;  %v5942_v28 = vshll.u32 %v10944_v32, 16  ;;  %v5948_v26 = vshll.u32 %v10948_v20, 16  ;;  %v5952_v62 = vshrl.u32 %v10948_v20, 16 }
 0x327   : > { %5736 = vmatprep.mubr.bf16.mxu1 %v7382_v16  ;;  %6266 = vmatprep.mubr.bf16.mxu0 %v7413_v15  ;;  %v5336_v47 = vrot.slane %v5335_v31, 4  ;;  %v5345_v0 = vor.u32 %v5344_v13, %v5340_v22  ;;  %v5958_v18 = vshll.u32 %v10954_v34, 16  ;;  %v7406_v39 = vcombine.low %v10944_v32, %v10948_v20  ;;  %v10969_v31 = vld [vmem:[#allocation3 + $0x6c] sm:$0xf] }
 0x328   : > { %v5941_v59 = vrot.slane %v5939_v1, 4  ;;  %v5944_v54 = vrot.slane %v5942_v28, 5  ;;  %v5950_v57 = vrot.slane %v5948_v26, 5  ;;  %v5954_v35 = vrot.slane %v5952_v62, 4  ;;  %v10975_v28 = vld [vmem:[#allocation3 + $0x70] sm:$0xf] }
 0x329   : > { %6267 = vmatmul.mubr.bf16.gmra.mxu0 %v7405_v4  ;;  %v5341_v11 = vsel %vm9321_vm14, %v5336_v47, %v5340_v22  ;;  %v5346_v5 = vrot.slane %v5345_v0, 4  ;;  %v5960_v49 = vrot.slane %v5958_v18, 5  ;;  %v7367_v53 = vrot.slane %v5383_v58, 9  ;;  %v10979_v18 = vld [vmem:[#allocation3 + $0x74] sm:$0x1] }
 0x32a   : > { %v5945_v52 = vor.u32 %v5944_v54, %v5941_v59  ;;  %v5459_v56 = vrot.slane %v5182_v12, 5  ;;  %v5462_v43 = vrot.slane %v5183_v25, 5  ;;  %v5955_v14 = vor.u32 %v5954_v35, %v5950_v57 }
 0x32b   : > { %v5351_v4 = vsel %vm9321_vm14, %v5346_v5, %v5350_v42  ;;  %v5353_v29 = vshrl.u32 %v5181_v51, 16  ;;  %v5356_v24 = vshll.u32 %v5181_v51, 16  ;;  %v5362_v15 = vshll.u32 %v5182_v12, 16  ;;  %v6307_v5 = vld [vmem:[#allocation3 + $0x18] sm:$0xe] }
 0x32c   : > { %v7374_v36 = vcombine.low %v5341_v11, %v5351_v4  ;;  %v5946_v32 = vrot.slane %v5945_v52, 4  ;;  %v5460_v8 = vsel %vm9233_vm11, %v7367_v53, %v5459_v56  ;;  %v5461_v3 = vrot.slane %v5459_v56, 4  ;;  %v6308_v53 = vld [vmem:[#allocation3 + $0x24] sm:$0xe] }
 0x32d   : > { %v5956_v50 = vrot.slane %v5955_v14, 4  ;;  %v5355_v16 = vrot.slane %v5353_v29, 4  ;;  %v5358_v40 = vrot.slane %v5356_v24, 5  ;;  %v5366_v42 = vshrl.u32 %v5182_v12, 16 }
 0x32e   : > { %5737 = vmatmul.mubr.bf16.gmra.mxu1 %v7374_v36  ;;  %v5951_v22 = vsel %vm9321_vm14, %v5946_v32, %v5950_v57  ;;  %v5463_v13 = vsel %vm9233_vm11, %v5461_v3, %v5462_v43  ;;  %v5372_v1 = vshll.u32 %v5183_v25, 16  ;;  %v5364_v62 = vrot.slane %v5362_v15, 5 }
 0x32f   : > { %v5961_v26 = vsel %vm9321_vm14, %v5956_v50, %v5960_v49  ;;  %v7383_v47 = vcombine.low %v5460_v8, %v5463_v13  ;;  %v5359_v0 = vor.u32 %v5358_v40, %v5355_v16  ;;  %v5368_v59 = vrot.slane %v5366_v42, 4  ;;  %v6309_v40 = vld [vmem:[#allocation3 + $0x30] sm:$0xe] }
 0x330   : > { %v7414_v58 = vcombine.low %v5951_v22, %v5961_v26  ;;  %v5963_v54 = vshrl.u32 %v10969_v31, 16  ;;  %v5966_v51 = vshll.u32 %v10969_v31, 16  ;;  %v5972_v25 = vshll.u32 %v10975_v28, 16  ;;  %v6619_v26 = vld [vmem:[%s9135_s13] sm:$0xff] }
 0x331   : > { %5744 = vmatprep.mubr.bf16.mxu1 %v7383_v47  ;;  %v5360_v57 = vrot.slane %v5359_v0, 4  ;;  %v5976_v11 = vshrl.u32 %v10975_v28, 16  ;;  %v5369_v35 = vor.u32 %v5368_v59, %v5364_v62  ;;  %v5374_v49 = vrot.slane %v5372_v1, 5  ;;  %v6620_v47 = vld [vmem:[%s9135_s13 + $0x8] sm:$0xff] }
 0x332   : > { %6274 = vmatprep.mubr.bf16.mxu0 %v7414_v58  ;;  %v5965_v12 = vrot.slane %v5963_v54, 4  ;;  %v5982_v52 = vshll.u32 %v10979_v18, 16  ;;  %v5968_v43 = vrot.slane %v5966_v51, 5  ;;  %v5974_v4 = vrot.slane %v5972_v25, 5 }
 0x333   : > { %6275 = vmatmul.mubr.bf16.gmra.mxu0 %v7406_v39  ;;  %v5365_v56 = vsel %vm9321_vm14, %v5360_v57, %v5364_v62  ;;  %v5978_v14 = vrot.slane %v5976_v11, 4  ;;  %v5370_v29 = vrot.slane %v5369_v35, 4  ;;  %v7432_v36 = vrot.slane %v6307_v5, 9  ;;  %v6310_v5 = vld [vmem:[#allocation3 + $0x3c] sm:$0xe] }
 0x334   : > { %v5984_v24 = vrot.slane %v5982_v52, 5  ;;  %v6333_v32 = vrot.slane %v10757_v6, 5  ;;  %v5969_v8 = vor.u32 %v5968_v43, %v5965_v12  ;;  %v6336_v50 = vrot.slane %v10759_v17, 5  ;;  %v6622_v12 = vld [vmem:[%s9135_s13 + $0x18] sm:$0xff] }
 0x335   : > { %v5979_v3 = vor.u32 %v5978_v14, %v5974_v4  ;;  %v7433_v16 = vrot.slane %v6308_v53, 9  ;;  %v5375_v39 = vsel %vm9321_vm14, %v5370_v29, %v5374_v49  ;;  %v7407_v17 = vcombine.low %v10969_v31, %v10975_v28  ;;  %v6621_v49 = vld [vmem:[%s9135_s13 + $0x10] sm:$0xff] }
 0x336   : > { %v6334_v15 = vsel %vm9233_vm11, %v7432_v36, %v6333_v32  ;;  %v6335_v22 = vrot.slane %v6333_v32, 4  ;;  %v7375_v13 = vcombine.low %v5365_v56, %v5375_v39  ;;  %v5970_v42 = vrot.slane %v5969_v8, 4  ;;  %v6312_v36 = vld [vmem:[#allocation3 + $0x54] sm:$0xe]  ;;  %v6313_v32 = vld [vmem:[#allocation3 + $0x60] sm:$0xe] }
 0x337   : > { %v5980_v1 = vrot.slane %v5979_v3, 4  ;;  %v6341_v6 = vsel %vm9233_vm11, %v7433_v16, %v6340_v46  ;;  %v7434_v58 = vrot.slane %v6309_v40, 9  ;;  %v6347_v46 = vrot.slane %v10818_v21, 5 }
 0x338   : > { %v6337_v0 = vsel %vm9233_vm11, %v6335_v22, %v6336_v50  ;;  %v7441_v62 = vcombine.low %v6341_v6, %v10807_v23  ;;  %5745 = vmatmul.mubr.bf16.gmra.mxu1 %v7375_v13  ;;  %v5975_v59 = vsel %vm9321_vm14, %v5970_v42, %v5974_v4  ;;  %v6635_v31 = vpack.c.bf16 %v6620_v47, %v6619_v26  ;;  %v6623_v47 = vld [vmem:[%s9135_s13 + $0x20] sm:$0xff] }
 0x339   : > { %v5985_v27 = vsel %vm9321_vm14, %v5980_v1, %v5984_v24  ;;  %v7440_v54 = vcombine.low %v6334_v15, %v6337_v0  ;;  %v6350_v51 = vrot.slane %v10824_v7, 5  ;;  %v6354_v25 = vrot.slane %v10848_v41, 5 }
 0x33a   : > { %v7415_v57 = vcombine.low %v5975_v59, %v5985_v27  ;;  %v6348_v23 = vsel %vm9233_vm11, %v7434_v58, %v6347_v46  ;;  %v6349_v11 = vrot.slane %v6347_v46, 4  ;;  %v6361_v35 = vrot.slane %v10891_v10, 5  ;;  %v6628_v58 = vld [vmem:[%s9135_s13 + $0x48] sm:$0xff]  ;;  %v6629_v27 = vld [vmem:[%s9135_s13 + $0x50] sm:$0xff]  ;;  %v6631_v46 = vld [vmem:[%s9135_s13 + $0x60] sm:$0xff] }
 0x33b   : > { %8182 = vmatprep.mubr.bf16.mxu1 %v7440_v54  ;;  %v7435_v52 = vrot.slane %v6310_v5, 9  ;;  %v6356_v41 = vrot.slane %v6354_v25, 4  ;;  %v6357_v53 = vrot.slane %v10858_v37, 5  ;;  %v7436_v56 = vrot.slane %v6311_v60, 9  ;;  %v6630_v54 = vld [vmem:[%s9135_s13 + $0x58] sm:$0xff] }
 0x33c   : > { %6282 = vmatprep.mubr.bf16.mxu0 %v7415_v57  ;;  %v6351_v21 = vsel %vm9233_vm11, %v6349_v11, %v6350_v51  ;;  %v6363_v43 = vrot.slane %v6361_v35, 4  ;;  %v6364_v4 = vrot.slane %v10902_v33, 5  ;;  %v6636_v14 = vpack.c.bf16 %v6622_v12, %v6621_v49  ;;  %v6632_v57 = vld [vmem:[%s9135_s13 + $0x68] sm:$0xff] }
 0x33d   : > { %6283 = vmatmul.mubr.bf16.gmra.mxu0 %v7407_v17  ;;  %v7442_v7 = vcombine.low %v6348_v23, %v6351_v21  ;;  %v6355_v10 = vsel %vm9233_vm11, %v7435_v52, %v6354_v25  ;;  %v6358_v29 = vsel %vm9233_vm11, %v6356_v41, %v6357_v53  ;;  %v6368_v24 = vrot.slane %v10925_v2, 5  ;;  %v6633_v25 = vld [vmem:[%s9135_s13 + $0x70] sm:$0xff]  ;;  %v6634_v23 = vld [vmem:[%s9135_s13 + $0x78] sm:$0xff] }
 0x33e   : > { %8214 = vmatprep.mubr.bf16.mxu0 %v6635_v31  ;;  %v6362_v37 = vsel %vm9233_vm11, %v7436_v56, %v6361_v35  ;;  %v6365_v33 = vsel %vm9233_vm11, %v6363_v43, %v6364_v4  ;;  %v7443_v8 = vcombine.low %v6355_v10, %v6358_v29  ;;  %v7437_v50 = vrot.slane %v6312_v36, 9 }
 0x33f   : > { %v7444_v3 = vcombine.low %v6362_v37, %v6365_v33  ;;  %v6370_v16 = vrot.slane %v6368_v24, 4  ;;  %v6371_v2 = vrot.slane %v10927_v55, 5  ;;  %v7438_v40 = vrot.slane %v6313_v32, 9 }
 0x340   : > { %8183 = vmatmul.mubr.bf16.vlgmr.msra.gmra.mxu1 %v7441_v62  ;;  %v6378_v15 = vrot.slane %v10954_v34, 5  ;;  %v6382_v22 = vrot.slane %v10975_v28, 5  ;;  %v6385_v26 = vrot.slane %v10979_v18, 5  ;;  %v6624_v18 = vld [vmem:[%s9135_s13 + $0x28] sm:$0xff]  ;;  %v6627_v62 = vld [vmem:[%s9135_s13 + $0x40] sm:$0xff]  ;;  %v6641_v31 = vpack.c.bf16 %v6632_v57, %v6631_v46 }
 0x341   : > { %8238 = vmatpush3.bf16.msra.mxu1 %v10782_v38  ;;  %8186 = vmatprep.mubr.bf16.mxu1 %v7442_v7  ;;  %v6375_v38 = vrot.slane %v10948_v20, 5  ;;  %v6369_v20 = vsel %vm9233_vm11, %v7437_v50, %v6368_v24  ;;  %v6637_v0 = vpack.c.bf16 %v6624_v18, %v6623_v47  ;;  %v6639_v59 = vpack.c.bf16 %v6628_v58, %v6627_v62 }
 0x342   : > { %8231 = vmatprep.subr.bf16.mxu1 %v10792_v48  ;;  %v6384_v6 = vrot.slane %v6382_v22, 4  ;;  %v6642_v21 = vpack.c.bf16 %v6634_v23, %v6633_v25 }
 0x343   : > { %v6377_v39 = vrot.slane %v6375_v38, 4  ;;  %v6376_v55 = vsel %vm9233_vm11, %v7438_v40, %v6375_v38 }
 0x345   : > { %8215 = vmatmul.mubr.bf16.vlgmr.msra.gmra.mxu0 %v6636_v14  ;;  %8239 = vmatpush3.bf16.msra.mxu1 %v10792_v48  ;;  %v6372_v48 = vsel %vm9233_vm11, %v6370_v16, %v6371_v2  ;;  %v6379_v34 = vsel %vm9233_vm11, %v6377_v39, %v6378_v15 }
 0x346   : > { %8232 = vmatprep.subr.bf16.mxu1 %v10820_v45  ;;  %v7445_v13 = vcombine.low %v6369_v20, %v6372_v48  ;;  %v7446_v42 = vcombine.low %v6376_v55, %v6379_v34 }
 0x348   : > { %8187 = vmatmul.mubr.bf16.gmra.mxu1 %v7443_v8 }
 0x349   : > { %8240 = vmatpush3.bf16.msra.mxu1 %v10820_v45  ;;  %8190 = vmatprep.mubr.bf16.mxu1 %v7444_v3  ;;  %v6314_v45 = vld [vmem:[#allocation3 + $0x6c] sm:$0xe] }
 0x34a   : > { %8233 = vmatprep.subr.bf16.mxu1 %v10828_v19  ;;  %v7439_v1 = vrot.slane %v6314_v45, 9 }
 0x34c   : > { %v6383_v28 = vsel %vm9233_vm11, %v7439_v1, %v6382_v22 }
 0x34d   : > { %8241 = vmatpush3.bf16.msra.mxu1 %v10828_v19  ;;  %v6386_v19 = vsel %vm9233_vm11, %v6384_v6, %v6385_v26 }
 0x34e   : > { %8234 = vmatprep.subr.bf16.mxu1 %v10838_v61  ;;  %v7447_v17 = vcombine.low %v6383_v28, %v6386_v19 }
 0x350   : > { %8191 = vmatmul.mubr.bf16.gmra.mxu1 %v7445_v13 }
 0x351   : > { %8242 = vmatpush3.bf16.msra.mxu1 %v10838_v61  ;;  %8194 = vmatprep.mubr.bf16.mxu1 %v7446_v42  ;;  %v6626_v61 = vld [vmem:[%s9135_s13 + $0x38] sm:$0xff]  ;;  %s8707_s13 = scalar_lea.vmem %s8706_s14, 4096 }
 0x352   : > { %8235 = vmatprep.subr.bf16.mxu1 %v10852_v30  ;;  %p8709_p10 = scmp.lt.s32.totalorder %s8707_s13, %s8701_s19 }
 0x354   : > { %p8710_p9 = por %p8709_p10, %p8708_p8 }
 0x355   : > { %8243 = vmatpush3.bf16.msra.mxu1 %v10852_v30  ;;  %v6638_v30 = vpack.c.bf16 %v6626_v61, %v6625_v44 }
 0x356   : > { %8236 = vmatprep.subr.bf16.mxu1 %v10870_v9  ;;  %p8711_p12 = pnand %p8710_p9, %p8704_p5 }
 0x358   : > { %8195 = vmatmul.mubr.bf16.gmra.mxu1 %v7447_v17 }
 0x359   : > { %8244 = vmatpush3.bf16.msra.mxu1 %v10870_v9  ;;  %8218 = vmatprep.mubr.bf16.mxu1 %v6637_v0  ;;  %v6640_v9 = vpack.c.bf16 %v6630_v54, %v6629_v27 }
 0x35a   : > { %8237 = vmatprep.subr.bf16.mxu1 %v10883_v63 }
 0x35d   : > { %8245 = vmatpush3.bf16.msra.mxu1 %v10883_v63 }
 0x360   : > { %8219 = vmatmul.mubr.bf16.vlgmr.msra.gmra.mxu1 %v6638_v30 }
 0x361   : > { %8222 = vmatprep.mubr.bf16.mxu1 %v6639_v59 }
 0x368   : > { %8223 = vmatmul.mubr.bf16.gmra.mxu1 %v6640_v9 }
 0x369   : > { %8226 = vmatprep.mubr.bf16.mxu1 %v6641_v31 }
 0x370   : > { %8227 = vmatmul.mubr.bf16.gmra.mxu1 %v6642_v21 }
 0x378   : > { %v7858_v51 = vpop.f32.mrf.mxu1 }
 0x37a   : > { %v7859_v11 = vpop.f32.mrf.mxu1  ;;  %v7922_v60 = vpop.f32.mrf.mxu0 }
 0x37b   : > { %v7860_v5 = vadd.f32 %v7859_v11, %v7858_v51 }
 0x37c   : > { %v7861_v35 = vpop.f32.mrf.mxu1  ;;  %v7923_v63 = vpop.f32.mrf.mxu0 }
 0x37d   : > { %v7924_v12 = vadd.f32 %v7923_v63, %v7922_v60 }
 0x37e   : > { %v7862_v49 = vpop.f32.mrf.mxu1  ;;  %v7925_v52 = vpop.f32.mrf.mxu0 }
 0x37f   : > { %v7863_v7 = vadd.f32 %v7862_v49, %v7861_v35  ;;  %v11074_v41 = vadd.f32 %v7924_v12, %v7860_v5 }
 0x380   : > { %v7864_v53 = vpop.f32.mrf.mxu1  ;;  %v7926_v56 = vpop.f32.mrf.mxu0 }
 0x381   : > { %v7927_v43 = vadd.f32 %v7926_v56, %v7925_v52 }
 0x382   : > { %v7865_v4 = vpop.f32.mrf.mxu1  ;;  %v7928_v14 = vpop.f32.mrf.mxu0 }
 0x383   : > { %v7866_v10 = vadd.f32 %v7865_v4, %v7864_v53  ;;  %v11076_v29 = vadd.f32 %v7927_v43, %v7863_v7 }
 0x384   : > { %v7867_v24 = vpop.f32.mrf.mxu1  ;;  %v7929_v37 = vpop.f32.mrf.mxu0 }
 0x385   : > { %v7930_v33 = vadd.f32 %v7929_v37, %v7928_v14 }
 0x386   : > { %v7868_v36 = vpop.f32.mrf.mxu1  ;;  %v7931_v38 = vpop.f32.mrf.mxu0 }
 0x387   : > { %v7869_v32 = vadd.f32 %v7868_v36, %v7867_v24  ;;  %v11078_v8 = vadd.f32 %v7930_v33, %v7866_v10 }
 0x388   : > { %v7870_v3 = vpop.f32.mrf.mxu1  ;;  %v7932_v50 = vpop.f32.mrf.mxu0 }
 0x389   : > { %v7933_v16 = vadd.f32 %v7932_v50, %v7931_v38 }
 0x38a   : > { %v7871_v2 = vpop.f32.mrf.mxu1  ;;  %v7934_v40 = vpop.f32.mrf.mxu0 }
 0x38b   : > { %v7872_v39 = vadd.f32 %v7871_v2, %v7870_v3  ;;  %v11080_v15 = vadd.f32 %v7933_v16, %v7869_v32 }
 0x38c   : > { %v7873_v20 = vpop.f32.mrf.mxu1  ;;  %v7935_v48 = vpop.f32.mrf.mxu0 }
 0x38d   : > { %v7936_v22 = vadd.f32 %v7935_v48, %v7934_v40 }
 0x38e   : > { %v7874_v55 = vpop.f32.mrf.mxu1  ;;  %v7937_v34 = vpop.f32.mrf.mxu0 }
 0x38f   : > { %v7875_v45 = vadd.f32 %v7874_v55, %v7873_v20  ;;  %v11082_v13 = vadd.f32 %v7936_v22, %v7872_v39 }
 0x390   : > { %v7876_v42 = vpop.f32.mrf.mxu1  ;;  %v7938_v1 = vpop.f32.mrf.mxu0 }
 0x391   : > { %v7939_v6 = vadd.f32 %v7938_v1, %v7937_v34 }
 0x392   : > { %v7877_v26 = vpop.f32.mrf.mxu1  ;;  %v7940_v28 = vpop.f32.mrf.mxu0 }
 0x393   : > { %v7878_v19 = vadd.f32 %v7877_v26, %v7876_v42  ;;  %v11084_v47 = vadd.f32 %v7939_v6, %v7875_v45 }
 0x394   : > { %v7879_v18 = vpop.f32.mrf.mxu1  ;;  %v7941_v17 = vpop.f32.mrf.mxu0 }
 0x395   : > { %v7942_v0 = vadd.f32 %v7941_v17, %v7940_v28 }
 0x396   : > { %v7880_v44 = vpop.f32.mrf.mxu1  ;;  %v7943_v61 = vpop.f32.mrf.mxu0 }
 0x397   : > { %v7881_v62 = vadd.f32 %v7880_v44, %v7879_v18  ;;  %v11086_v58 = vadd.f32 %v7942_v0, %v7878_v19 }
 0x398   : > { %v7882_v30 = vpop.f32.mrf.mxu1  ;;  %v7944_v59 = vpop.f32.mrf.mxu0 }
 0x399   : > { %v7945_v27 = vadd.f32 %v7944_v59, %v7943_v61 }
 0x39a   : > { %v7883_v54 = vpop.f32.mrf.mxu1  ;;  %v7946_v46 = vpop.f32.mrf.mxu0 }
 0x39b   : > { %v7884_v57 = vadd.f32 %v7883_v54, %v7882_v30  ;;  %v11088_v9 = vadd.f32 %v7945_v27, %v7881_v62 }
 0x39c   : > { %v7885_v31 = vpop.f32.mrf.mxu1  ;;  %v7947_v51 = vpop.f32.mrf.mxu0 }
 0x39d   : > { %v7948_v25 = vadd.f32 %v7947_v51, %v7946_v46 }
 0x39e   : > { %v7886_v23 = vpop.f32.mrf.mxu1  ;;  %v7949_v11 = vpop.f32.mrf.mxu0 }
 0x39f   : > { %v7887_v5 = vadd.f32 %v7886_v23, %v7885_v31  ;;  %v11090_v60 = vadd.f32 %v7948_v25, %v7884_v57 }
 0x3a0   : > { %v7888_v35 = vpop.f32.mrf.mxu1  ;;  %v7950_v21 = vpop.f32.mrf.mxu0 }
 0x3a1   : > { %v7951_v63 = vadd.f32 %v7950_v21, %v7949_v11 }
 0x3a2   : > { %v7889_v49 = vpop.f32.mrf.mxu1  ;;  %v7952_v12 = vpop.f32.mrf.mxu0 }
 0x3a3   : > { %v7890_v7 = vadd.f32 %v7889_v49, %v7888_v35  ;;  %v11092_v52 = vadd.f32 %v7951_v63, %v7887_v5 }
 0x3a4   : > { %v7891_v53 = vpop.f32.mrf.mxu1  ;;  %v7953_v56 = vpop.f32.mrf.mxu0 }
 0x3a5   : > { %v7954_v43 = vadd.f32 %v7953_v56, %v7952_v12 }
 0x3a6   : > { %v7892_v4 = vpop.f32.mrf.mxu1  ;;  %v7955_v14 = vpop.f32.mrf.mxu0 }
 0x3a7   : > { %v7893_v10 = vadd.f32 %v7892_v4, %v7891_v53  ;;  %v11094_v24 = vadd.f32 %v7954_v43, %v7890_v7 }
 0x3a8   : > { %v7894_v37 = vpop.f32.mrf.mxu1  ;;  %v7956_v33 = vpop.f32.mrf.mxu0 }
 0x3a9   : > { %v7957_v36 = vadd.f32 %v7956_v33, %v7955_v14 }
 0x3aa   : > { %v7895_v38 = vpop.f32.mrf.mxu1  ;;  %v7958_v32 = vpop.f32.mrf.mxu0 }
 0x3ab   : > { %v7896_v3 = vadd.f32 %v7895_v38, %v7894_v37  ;;  %v11096_v50 = vadd.f32 %v7957_v36, %v7893_v10 }
 0x3ac   : > { %v7897_v16 = vpop.f32.mrf.mxu1  ;;  %v7959_v2 = vpop.f32.mrf.mxu0 }
 0x3ad   : > { %v7960_v40 = vadd.f32 %v7959_v2, %v7958_v32 }
 0x3ae   : > { %v7898_v39 = vpop.f32.mrf.mxu1  ;;  %v7961_v20 = vpop.f32.mrf.mxu0 }
 0x3af   : > { %v7899_v48 = vadd.f32 %v7898_v39, %v7897_v16  ;;  %v11098_v22 = vadd.f32 %v7960_v40, %v7896_v3 }
 0x3b0   : > { %v7962_v55 = vpop.f32.mrf.mxu0  ;;  %v7900_v34 = vpop.f32.mrf.mxu1 }
 0x3b1   : > { %v7963_v45 = vadd.f32 %v7962_v55, %v7961_v20 }
 0x3b2   : > { %v7964_v42 = vpop.f32.mrf.mxu0  ;;  %v7901_v1 = vpop.f32.mrf.mxu1 }
 0x3b3   : > { %v11100_v6 = vadd.f32 %v7963_v45, %v7899_v48  ;;  %v7902_v26 = vadd.f32 %v7901_v1, %v7900_v34 }
 0x3b4   : > { %v7965_v28 = vpop.f32.mrf.mxu0  ;;  %v7903_v19 = vpop.f32.mrf.mxu1 }
 0x3b5   : > { %v7966_v18 = vadd.f32 %v7965_v28, %v7964_v42 }
 0x3b6   : > { %v7967_v17 = vpop.f32.mrf.mxu0  ;;  %v7904_v0 = vpop.f32.mrf.mxu1 }
 0x3b7   : > { %v11102_v44 = vadd.f32 %v7966_v18, %v7902_v26  ;;  %v7905_v61 = vadd.f32 %v7904_v0, %v7903_v19 }
 0x3b8   : > { %v7968_v62 = vpop.f32.mrf.mxu0  ;;  %v11106_v27 = vpop.f32.mrf.mxu1 }
 0x3b9   : > { %v7969_v30 = vadd.f32 %v7968_v62, %v7967_v17 }
 0x3ba   : > { %v11108_v54 = vpop.f32.mrf.mxu1  ;;  %v11110_v46 = vpop.f32.mrf.mxu0 }
 0x3bb   : > { %v11104_v59 = vadd.f32 %v7969_v30, %v7905_v61 }
 0x3bc   : > { %v11112_v57 = vpop.f32.mrf.mxu1  ;;  %v11114_v31 = vpop.f32.mrf.mxu0 }
 0x3be   : > { %v11116_v51 = vpop.f32.mrf.mxu1  ;;  %v11118_v25 = vpop.f32.mrf.mxu0 }
 0x3c0   : > { %v11120_v23 = vpop.f32.mrf.mxu1  ;;  %v11122_v11 = vpop.f32.mrf.mxu0 }
 0x3c2   : > { %v11124_v5 = vpop.f32.mrf.mxu1  ;;  %v11126_v35 = vpop.f32.mrf.mxu0 }
 0x3c4   : > { %v11128_v21 = vpop.f32.mrf.mxu1  ;;  %v11130_v63 = vpop.f32.mrf.mxu0 }
 0x3c6   : > { %v11132_v49 = vpop.f32.mrf.mxu1  ;;  %v11134_v12 = vpop.f32.mrf.mxu0 }
 0x3c8   : > { %v7998_v7 = vpop.f32.mrf.mxu1  ;;  %v11136_v53 = vpop.f32.mrf.mxu0 }
 0x3ca   : > { %v7999_v56 = vpop.f32.mrf.mxu1 }
 0x3cb   : > { %v8000_v43 = vadd.f32 %v7999_v56, %v7998_v7 }
 0x3cc   : > { %v8001_v4 = vpop.f32.mrf.mxu1 }
 0x3cd   : > { %v5757_v14 = vadd.f32 %v8000_v43, %v11082_v13 }
 0x3ce   : > { %v8002_v37 = vpop.f32.mrf.mxu1 }
 0x3cf   : > { %v8062_v10 = vpop.f32.mrf.mxu0  ;;  %v8003_v36 = vadd.f32 %v8002_v37, %v8001_v4 }
 0x3d0   : > { %v8004_v2 = vpop.f32.mrf.mxu1 }
 0x3d1   : > { %v8063_v33 = vpop.f32.mrf.mxu0  ;;  %v5758_v32 = vadd.f32 %v8003_v36, %v11084_v47 }
 0x3d2   : > { %v8064_v38 = vadd.f32 %v8063_v33, %v8062_v10  ;;  %v8005_v20 = vpop.f32.mrf.mxu1 }
 0x3d3   : > { %v8065_v3 = vpop.f32.mrf.mxu0  ;;  %v8006_v48 = vadd.f32 %v8005_v20, %v8004_v2 }
 0x3d4   : > { %v11140_v16 = vadd.f32 %v8064_v38, %v5757_v14  ;;  %v8007_v13 = vpop.f32.mrf.mxu1 }
 0x3d5   : > { %v8066_v40 = vpop.f32.mrf.mxu0  ;;  %v11147_v45 = vadd.f32 %v8006_v48, %v11086_v58 }
 0x3d6   : > { %v8067_v39 = vadd.f32 %v8066_v40, %v8065_v3  ;;  %v8008_v1 = vpop.f32.mrf.mxu1 }
 0x3d7   : > { %v8009_v47 = vadd.f32 %v8008_v1, %v8007_v13 }
 0x3d8   : > { %v11142_v55 = vadd.f32 %v8067_v39, %v5758_v32 }
 0x3d9   : > { %v11144_v34 = vpop.f32.mrf.mxu0  ;;  %v11154_v28 = vadd.f32 %v8009_v47, %v11088_v9 }
 0x3db   : > { %v11149_v42 = vpop.f32.mrf.mxu0 }
 0x3dd   : > { %v11151_v26 = vpop.f32.mrf.mxu0 }
 0x3de   : > { %v8010_v19 = vpop.f32.mrf.mxu1 }
 0x3df   : > { %v11156_v18 = vpop.f32.mrf.mxu0 }
 0x3e0   : > { %v8011_v17 = vpop.f32.mrf.mxu1 }
 0x3e1   : > { %v8012_v0 = vadd.f32 %v8011_v17, %v8010_v19  ;;  %v8074_v30 = vpop.f32.mrf.mxu0  ;;  %v7994_v17 = vadd.f32 %v11124_v5, %v11120_v23 }
 0x3e2   : > { %v8013_v61 = vpop.f32.mrf.mxu1 }
 0x3e3   : > { %v5761_v62 = vadd.f32 %v8012_v0, %v11090_v60  ;;  %v8075_v7 = vpop.f32.mrf.mxu0 }
 0x3e4   : > { %v8014_v58 = vpop.f32.mrf.mxu1  ;;  %v8076_v43 = vadd.f32 %v8075_v7, %v8074_v30  ;;  %v8058_v7 = vadd.f32 %v11130_v63, %v11126_v35 }
 0x3e5   : > { %v8015_v56 = vadd.f32 %v8014_v58, %v8013_v61  ;;  %v8077_v14 = vpop.f32.mrf.mxu0  ;;  %v5755_v58 = vadd.f32 %v7994_v17, %v11078_v8 }
 0x3e6   : > { %v11160_v10 = vadd.f32 %v8076_v43, %v5761_v62  ;;  %v11162_v9 = vpop.f32.mrf.mxu1  ;;  %v7988_v62 = vadd.f32 %v11108_v54, %v11106_v27  ;;  %v7991_v27 = vadd.f32 %v11116_v51, %v11112_v57  ;;  %v8055_v57 = vadd.f32 %v11122_v11, %v11118_v25 }
 0x3e7   : > { %v5762_v4 = vadd.f32 %v8015_v56, %v11092_v52  ;;  %v8078_v37 = vpop.f32.mrf.mxu0  ;;  %v7997_v56 = vadd.f32 %v11132_v49, %v11128_v21  ;;  %v8061_v21 = vadd.f32 %v11136_v53, %v11134_v12  ;;  %v6293_v63 = vadd.f32 %v8058_v7, %v5755_v58  ;;  %v11240_v12 = vld [vmem:[%s11420_s6] ss:$0 sm:$0xff] }
 0x3e8   : > { %v8079_v33 = vadd.f32 %v8078_v37, %v8077_v14  ;;  %v11164_v36 = vpop.f32.mrf.mxu1  ;;  %v5753_v5 = vadd.f32 %v7988_v62, %v11074_v41  ;;  %v11230_v41 = vld [vmem:[%s11418_s4] ss:$0 sm:$0xff] }
 0x3e9   : > { %v11168_v32 = vpop.f32.mrf.mxu0  ;;  %v5756_v35 = vadd.f32 %v7997_v56, %v11080_v15 }
 0x3ea   : > { %v11166_v38 = vadd.f32 %v8079_v33, %v5762_v4  ;;  %v11170_v60 = vpop.f32.mrf.mxu1  ;;  %v8052_v4 = vadd.f32 %v11114_v31, %v11110_v46  ;;  %v5754_v46 = vadd.f32 %v7991_v27, %v11076_v29 }
 0x3eb   : > { %v11172_v3 = vpop.f32.mrf.mxu0  ;;  %v6294_v17 = vadd.f32 %v8061_v21, %v5756_v35 }
 0x3ec   : > { %v11174_v2 = vpop.f32.mrf.mxu1  ;;  %v6291_v51 = vadd.f32 %v8052_v4, %v5753_v5  ;;  %v6292_v7 = vadd.f32 %v8055_v57, %v5754_v46 }
 0x3ed   : > { %v11176_v52 = vpop.f32.mrf.mxu0 }
 0x3ee   : > { %v11178_v40 = vpop.f32.mrf.mxu1 }
 0x3ef   : > { %v11180_v39 = vpop.f32.mrf.mxu0 }
 0x3f0   : > { %v11182_v20 = vpop.f32.mrf.mxu1 }
 0x3f2   : > { %v11184_v48 = vpop.f32.mrf.mxu1 }
 0x3f3   : > { %v11186_v13 = vpop.f32.mrf.mxu0 }
 0x3f4   : > { %v11190_v47 = vpop.f32.mrf.mxu1 }
 0x3f5   : > { %v11188_v1 = vpop.f32.mrf.mxu0 }
 0x3f7   : > { %v11192_v19 = vpop.f32.mrf.mxu0 }
 0x3f8   : > { %v11196_v0 = vpop.f32.mrf.mxu1 }
 0x3f9   : > { %v11198_v61 = vpop.f32.mrf.mxu0 }
 0x3fa   : > { %v11202_v30 = vpop.f32.mrf.mxu1 }
 0x3fc   : > { %v11211_v23 = vpop.f32.mrf.mxu1 }
 0x3fd   : > { %v11209_v43 = vpop.f32.mrf.mxu0 }
 0x3fe   : > { %v11220_v8 = vpop.f32.mrf.mxu1 }
 0x3ff   : > { %v11218_v54 = vpop.f32.mrf.mxu0 }
 0x400   : > { %v8184_v14 = vpop.f32.mrf.mxu1 }
 0x401   : > { %v11225_v49 = vpop.f32.mrf.mxu0  ;;  %v6582_v31 = vadd.f32 %v8184_v14, %v6293_v63 }
 0x402   : > { %v6517_v37 = vpop.f32.mrf.mxu1 }
 0x403   : > { %v11235_v15 = vpop.f32.mrf.mxu0  ;;  %v6605_v53 = vadd.f32 %v11230_v41, %v6582_v31  ;;  %v6580_v33 = vadd.f32 %v6517_v37, %v6291_v51 }
 0x404   : > { %v8185_v58 = vpop.f32.mrf.mxu1 }
 0x405   : > { %v8216_v62 = vpop.f32.mrf.mxu0  ;;  %v6603_v29 = vadd.f32 %v11230_v41, %v6580_v33  ;;  %v6583_v11 = vadd.f32 %v8185_v58, %v6294_v17 }
 0x406   : > { %v6757_v25 = vadd.f32 %v8216_v62, %v11240_v12  ;;  %v6520_v5 = vpop.f32.mrf.mxu1 }
 0x407   : > { %v6748_v56 = vpop.f32.mrf.mxu0  ;;  %v6606_v27 = vadd.f32 %v11230_v41, %v6583_v11  ;;  %v6581_v14 = vadd.f32 %v6520_v5, %v6292_v7 }
 0x408   : > { %v6813_v4 = vadd.f32 %v6757_v25, %v6605_v53  ;;  %v6749_v63 = vadd.f32 %v11240_v12, %v6748_v56  ;;  %v8188_v35 = vpop.f32.mrf.mxu1 }
 0x409   : > { %v8217_v31 = vpop.f32.mrf.mxu0  ;;  %v6604_v37 = vadd.f32 %v11230_v41, %v6581_v14  ;;  %v8070_v14 = vadd.f32 %v11149_v42, %v11144_v34  ;;  %v8082_v42 = vadd.f32 %v11172_v3, %v11168_v32  ;;  %v8030_v32 = vadd.f32 %v11202_v30, %v11196_v0 }
 0x40a   : > { %v6829_v21 = vmax.f32 %v6813_v4, 0.0  ;;  %v6811_v51 = vadd.f32 %v6749_v63, %v6603_v29  ;;  %v6760_v33 = vadd.f32 %v8217_v31, %v11240_v12  ;;  %v6533_v57 = vpop.f32.mrf.mxu1 }
 0x40b   : > { %v6751_v46 = vpop.f32.mrf.mxu0 }
 0x40c   : > { %6845 = vst [vmem:[%s10603_s27 + $0x10] sm:$0xff] %v6829_v21  ;;  %v6827_v53 = vmax.f32 %v6811_v51, 0.0  ;;  %v6814_v17 = vadd.f32 %v6760_v33, %v6606_v27  ;;  %v6752_v62 = vadd.f32 %v11240_v12, %v6751_v46  ;;  %v8189_v58 = vpop.f32.mrf.mxu1  ;;  %v8018_v27 = vadd.f32 %v11164_v36, %v11162_v9 }
 0x40d   : > { %v8073_v51 = vadd.f32 %v11156_v18, %v11151_v26  ;;  %v8021_v33 = vadd.f32 %v11174_v2, %v11170_v60  ;;  %v6584_v9 = vadd.f32 %v6533_v57, %v11140_v16 }
 0x40e   : > { %6843 = vst [vmem:[%s10603_s27] sm:$0xff] %v6827_v53  ;;  %v6830_v25 = vmax.f32 %v6814_v17, 0.0  ;;  %v6812_v11 = vadd.f32 %v6752_v62, %v6604_v37  ;;  %v6536_v7 = vpop.f32.mrf.mxu1  ;;  %v6297_v37 = vadd.f32 %v8070_v14, %v11147_v45  ;;  %v5763_v34 = vadd.f32 %v8018_v27, %v11094_v24 }
 0x40f   : > { %v6298_v36 = vadd.f32 %v8073_v51, %v11154_v28  ;;  %v5764_v26 = vadd.f32 %v8021_v33, %v11096_v50  ;;  %v8085_v45 = vadd.f32 %v11180_v39, %v11176_v52  ;;  %v6607_v16 = vadd.f32 %v11230_v41, %v6584_v9 }
 0x410   : > { %6846 = vst [vmem:[%s10603_s27 + $0x18] sm:$0xff] %v6830_v25  ;;  %v6828_v56 = vmax.f32 %v6812_v11, 0.0  ;;  %v8192_v29 = vpop.f32.mrf.mxu1  ;;  %v6586_v53 = vadd.f32 %v8188_v35, %v6297_v37  ;;  %v6301_v3 = vadd.f32 %v8082_v42, %v5763_v34  ;;  %v6585_v28 = vadd.f32 %v6536_v7, %v11142_v55 }
 0x411   : > { %v6587_v2 = vadd.f32 %v8189_v58, %v6298_v36  ;;  %v8024_v52 = vadd.f32 %v11182_v20, %v11178_v40  ;;  %v6302_v62 = vadd.f32 %v8085_v45, %v5764_v26  ;;  %v8094_v55 = vadd.f32 %v11218_v54, %v11209_v43 }
 0x412   : > { %6844 = vst [vmem:[%s10603_s27 + $0x8] sm:$0xff] %v6828_v56  ;;  %v6549_v5 = vpop.f32.mrf.mxu1  ;;  %v6609_v60 = vadd.f32 %v11230_v41, %v6586_v53  ;;  %v6590_v39 = vadd.f32 %v8192_v29, %v6301_v3  ;;  %v5767_v56 = vadd.f32 %v8030_v32, %v11102_v44  ;;  %v8033_v7 = vadd.f32 %v11220_v8, %v11211_v23 }
 0x413   : > { %v6610_v25 = vadd.f32 %v11230_v41, %v6587_v2  ;;  %v6588_v40 = vadd.f32 %v6549_v5, %v11160_v10  ;;  %v6608_v29 = vadd.f32 %v11230_v41, %v6585_v28  ;;  %v5765_v37 = vadd.f32 %v8024_v52, %v11098_v22 }
 0x414   : > { %v8193_v4 = vpop.f32.mrf.mxu1  ;;  %v8088_v44 = vadd.f32 %v11188_v1, %v11186_v13  ;;  %v8027_v43 = vadd.f32 %v11190_v47, %v11184_v48  ;;  %v6613_v23 = vadd.f32 %v11230_v41, %v6590_v39  ;;  %v5768_v53 = vadd.f32 %v8033_v7, %v11104_v59 }
 0x415   : > { %v6591_v54 = vadd.f32 %v8193_v4, %v6302_v62  ;;  %v8097_v22 = vadd.f32 %v11235_v15, %v11225_v49  ;;  %v6611_v13 = vadd.f32 %v11230_v41, %v6588_v40  ;;  %v6305_v1 = vadd.f32 %v8094_v55, %v5767_v56 }
 0x416   : > { %v6552_v63 = vpop.f32.mrf.mxu1  ;;  %v5766_v9 = vadd.f32 %v8027_v43, %v11100_v6  ;;  %v8091_v59 = vadd.f32 %v11198_v61, %v11192_v19  ;;  %v6303_v49 = vadd.f32 %v8088_v44, %v5765_v37 }
 0x417   : > { %v6589_v48 = vadd.f32 %v6552_v63, %v11166_v38  ;;  %v6614_v26 = vadd.f32 %v11230_v41, %v6591_v54 }
 0x418   : > { %v11256_v31 = vpop.f32.mrf.mxu1  ;;  %v6304_v32 = vadd.f32 %v8091_v59, %v5766_v9 }
 0x419   : > { %v6594_v36 = vadd.f32 %v11256_v31, %v6305_v1  ;;  %v6612_v19 = vadd.f32 %v11230_v41, %v6589_v48 }
 0x41a   : > { %v11260_v21 = vpop.f32.mrf.mxu1 }
 0x41c   : > { %v11267_v46 = vpop.f32.mrf.mxu1 }
 0x41e   : > { %v11272_v17 = vpop.f32.mrf.mxu1 }
 0x41f   : > { %v6593_v52 = vadd.f32 %v11272_v17, %v6304_v32 }
 0x420   : > { %v8220_v18 = vpop.f32.mrf.mxu1 }
 0x421   : > { %v6773_v24 = vadd.f32 %v8220_v18, %v11240_v12  ;;  %v6592_v18 = vadd.f32 %v11260_v21, %v6303_v49  ;;  %v6616_v17 = vadd.f32 %v11230_v41, %v6593_v52 }
 0x422   : > { %v6764_v35 = vpop.f32.mrf.mxu1 }
 0x423   : > { %v6817_v57 = vadd.f32 %v6773_v24, %v6609_v60  ;;  %v6765_v50 = vadd.f32 %v11240_v12, %v6764_v35  ;;  %v6306_v60 = vadd.f32 %v8097_v22, %v5768_v53  ;;  %v6617_v24 = vadd.f32 %v11230_v41, %v6594_v36 }
 0x424   : > { %v8221_v58 = vpop.f32.mrf.mxu1 }
 0x425   : > { %v6833_v11 = vmax.f32 %v6817_v57, 0.0  ;;  %v6815_v0 = vadd.f32 %v6765_v50, %v6607_v16  ;;  %v6776_v30 = vadd.f32 %v8221_v58, %v11240_v12  ;;  %v6595_v35 = vadd.f32 %v11267_v46, %v6306_v60 }
 0x426   : > { %v6767_v20 = vpop.f32.mrf.mxu1  ;;  %v6615_v57 = vadd.f32 %v11230_v41, %v6592_v18 }
 0x427   : > { %6849 = vst [vmem:[%s10603_s27 + $0x30] sm:$0xff] %v6833_v11  ;;  %v6831_v14 = vmax.f32 %v6815_v0, 0.0  ;;  %v6818_v27 = vadd.f32 %v6776_v30, %v6610_v25  ;;  %v6768_v51 = vadd.f32 %v11240_v12, %v6767_v20  ;;  %v6618_v25 = vadd.f32 %v11230_v41, %v6595_v35 }
 0x428   : > { %v8224_v10 = vpop.f32.mrf.mxu1 }
 0x429   : > { %6847 = vst [vmem:[%s10603_s27 + $0x20] sm:$0xff] %v6831_v14  ;;  %v6834_v8 = vmax.f32 %v6818_v27, 0.0  ;;  %v6816_v5 = vadd.f32 %v6768_v51, %v6608_v29  ;;  %v6789_v33 = vadd.f32 %v8224_v10, %v11240_v12 }
 0x42a   : > { %v6780_v34 = vpop.f32.mrf.mxu1 }
 0x42b   : > { %6850 = vst [vmem:[%s10603_s27 + $0x38] sm:$0xff] %v6834_v8  ;;  %v6832_v47 = vmax.f32 %v6816_v5, 0.0  ;;  %v6821_v4 = vadd.f32 %v6789_v33, %v6613_v23  ;;  %v6781_v42 = vadd.f32 %v11240_v12, %v6780_v34 }
 0x42c   : > { %v8225_v15 = vpop.f32.mrf.mxu1 }
 0x42d   : > { %6848 = vst [vmem:[%s10603_s27 + $0x28] sm:$0xff] %v6832_v47  ;;  %v6837_v38 = vmax.f32 %v6821_v4, 0.0  ;;  %v6819_v63 = vadd.f32 %v6781_v42, %v6611_v13  ;;  %v6792_v45 = vadd.f32 %v8225_v15, %v11240_v12 }
 0x42e   : > { %v6783_v6 = vpop.f32.mrf.mxu1 }
 0x42f   : > { %6853 = vst [vmem:[%s10603_s27 + $0x50] sm:$0xff] %v6837_v38  ;;  %v6835_v61 = vmax.f32 %v6819_v63, 0.0  ;;  %v6822_v31 = vadd.f32 %v6792_v45, %v6614_v26  ;;  %v6784_v2 = vadd.f32 %v11240_v12, %v6783_v6 }
 0x430   : > { %v8228_v3 = vpop.f32.mrf.mxu1 }
 0x431   : > { %6851 = vst [vmem:[%s10603_s27 + $0x40] sm:$0xff] %v6835_v61  ;;  %v6838_v21 = vmax.f32 %v6822_v31, 0.0  ;;  %v6820_v16 = vadd.f32 %v6784_v2, %v6612_v19  ;;  %v6805_v28 = vadd.f32 %v8228_v3, %v11240_v12 }
 0x432   : > { %v6796_v50 = vpop.f32.mrf.mxu1 }
 0x433   : > { %6854 = vst [vmem:[%s10603_s27 + $0x58] sm:$0xff] %v6838_v21  ;;  %v6836_v39 = vmax.f32 %v6820_v16, 0.0  ;;  %v6825_v62 = vadd.f32 %v6805_v28, %v6617_v24  ;;  %v6797_v46 = vadd.f32 %v11240_v12, %v6796_v50 }
 0x434   : > { %v8229_v58 = vpop.f32.mrf.mxu1 }
 0x435   : > { %6852 = vst [vmem:[%s10603_s27 + $0x48] sm:$0xff] %v6836_v39  ;;  %v6841_v11 = vmax.f32 %v6825_v62, 0.0  ;;  %v6823_v0 = vadd.f32 %v6797_v46, %v6615_v57  ;;  %v6808_v30 = vadd.f32 %v8229_v58, %v11240_v12 }
 0x436   : > { %v6799_v56 = vpop.f32.mrf.mxu1 }
 0x437   : > { %6857 = vst [vmem:[%s10603_s27 + $0x70] sm:$0xff] %v6841_v11  ;;  %v6839_v55 = vmax.f32 %v6823_v0, 0.0  ;;  %v6826_v7 = vadd.f32 %v6808_v30, %v6618_v25  ;;  %v6800_v40 = vadd.f32 %v11240_v12, %v6799_v56 }
 0x439   : > { %6855 = vst [vmem:[%s10603_s27 + $0x60] sm:$0xff] %v6839_v55  ;;  %v6842_v20 = vmax.f32 %v6826_v7, 0.0  ;;  %v6824_v29 = vadd.f32 %v6800_v40, %v6616_v17 }
 0x43b   : > { %6858 = vst [vmem:[%s10603_s27 + $0x78] sm:$0xff] %v6842_v20  ;;  %v6840_v41 = vmax.f32 %v6824_v29, 0.0 }
 0x43d   : > { %6856 = vst [vmem:[%s10603_s27 + $0x68] sm:$0xff] %v6840_v41 }
 0x43e   : > { %8714 = shalt.err (!%p8711_p12)
}
 0x43f   : > { %s8715_s8 = scalar_lea.hbm %s11346_s18, 2048  ;;  %s8719_s24 = scalar_lea.hbm %s11518_s15, 8192 }
 0x440   : > { %p8716_p2 = scmp.ne.s32.totalorder %s11346_s18, %s8715_s8  ;;  %p8720_p7 = scmp.lt.s32.totalorder %s11346_s18, %s11518_s15 }
 0x441   : > { %p8721_p0 = scmp.lt.s32.totalorder %s8719_s24, %s8715_s8 }
 0x442   : > { %p8717_p1 = pnand %p8716_p2, %p11519_p13 }
 0x443   : > { %p8722_p4 = por %p8721_p0, %p8720_p7 }
 0x444   : > { %p8718_p3 = pneg %p8717_p1 }
 0x446   : > { %p8723_p6 = pnand %p8722_p4, %p8718_p3 }
 0x448   : > { %8726 = shalt.err (!%p8723_p6)
}
 0x449   : > { %s8842_s5 = smov 128   ;;  %s8843_s17 = smov 8  }
 0x44a   : > { %8260 = dma.vmem_to_hbm [thread:$0]  (%p11519_p13), %s11348_s1, 2048, %s11346_s18, %s11354_s16, %s8842_s5, %s8842_s5, %s8843_s17  }
 0x44b PF: > { %s11520_s23 = sld [smem:[#allocation17_spill]]  ;;  %p8287_p11 = scmp.ge.s32.totalorder %s8829_s11, 2 }
 0x44c   : > { %s11521_s20 = sld [smem:[#allocation21_spill]] }
 0x451   : > { %s6891_s19 = sand.u32 1, %s11520_s23  }
 0x452   : > { %p11522_p5 = scmp.ne.s32.totalorder %s11521_s20, 0  ;;  %s6892_s9 = scalar_lea.sflag [#allocation6], %s6891_s19 }
 0x454   : > { %p8277_p8 = pnand %p8287_p11, %p11522_p5 }
 0x456   : > { %p8278_p10 = pneg %p8277_p8 }
 0x458   : > { %8784 = dma.done.wait (%p8278_p10), %s6892_s9, 2048  }
 0x459   : > { %8786 = vsyncadd (%p8278_p10), %s6892_s9, 4294965248  ;;  %s25_s11 = sadd.s32 1, %s8829_s11   ;;  %s11523_s30 = sld [smem:[#allocation19_spill]] }
 0x45a   : > { %p22_p9 = scmp.ge.s32.totalorder %s25_s11, 6   ;;  %s11524_s9 = sld [smem:[#allocation22_spill]] }
 0x45b   : > { %s11525_s1 = sld [smem:[#allocation23_spill]]  ;;  %s11526_s24 = smov %s8793_s25 }
 0x45c   : > { %s11527_s25 = smov %s8797_s26  ;;  %s11528_s26 = smov %s9031_s3 }
 0x45d   : > { %s11529_s27 = smov %s8805_s28  ;;  %s11530_s28 = smov %s8809_s29 }
 0x45e   : > { %s11531_s29 = smov %s9026_s21  ;;  %s11532_s8 = smov %s8825_s10 }
 0x45f   :  { %24 = sbr.rel (!%p22_p9) target bundleno = 16 (0x10), region = 125 }
 0x461   : > { %s11533_s10 = smov %s11525_s1 }
 0x464   :  { %6897 = vsyncpa [#allocation5], 1 }
 0x465   :  { %6899 = vsyncpa [#allocation5 + $0x1], 1 }
 0x466   :  { %6900 = vsyncpa [#allocation8], 1 }
 0x467   :  { %6901 = vsyncpa [#allocation11], 1 }
 0x468   :  { %6902 = vsyncpa [#allocation6], 1 }
 0x469   :  { %6904 = vsyncpa [#allocation6 + $0x1], 1 }

</bundles_post_ra>
